<compile_context>
chip_gen: v7x
topology: tpu7x:2x2x1
jax: 0.10.0
libtpu: 0.0.40
codegen_flags: <defaults>
</compile_context>

<pallas_src>
import jax
import jax.numpy as jnp
from jax.experimental import pallas as pl
from jax.experimental.pallas import tpu as pltpu

EPS = 1e-5


def make_resblock_kernel(N, H, W, C):
    HP, WP = H + 2, W + 2
    NFLAT = N * HP * WP                       # flattened padded-spatial length
    MP = ((NFLAT + 127) // 128) * 128         # lane-dense (multiple of 128)
    inv_count = 1.0 / float(N * H * W)        # BN normalizer (interior only)

    def kernel(xp_ref, mask_ref, w1_ref, w2_ref,
               g1_ref, b1_ref, g2_ref, b2_ref, o_ref):
        xp = xp_ref[...]        # (C, MP) f32, zero halo + zero tail
        mask = mask_ref[...]    # (1, MP) f32, 1.0 at interior positions

        def conv3x3(inp, w_ref):
            # inp: (C, MP) with zero halo; w_ref: (Cout, 9*Cin),
            # packed as w_t[co, (dh*3+dw)*C + ci] = w[dh, dw, ci, co].
            w = w_ref[...]
            acc = None
            for dh in range(3):
                for dw in range(3):
                    s = (dh - 1) * WP + (dw - 1)     # flat tap offset
                    if s == 0:
                        shifted = inp
                    else:
                        # shifted[c, m] = inp[c, m + s]; roll is XLU-cheap and
                        # never crosses image boundaries for interior m.
                        shifted = pltpu.roll(inp, shift=(-s) % MP, axis=1)
                    tap = dh * 3 + dw
                    for ci in range(C):
                        idx = tap * C + ci
                        # (Cout,1) x (1,MP) broadcast FMA on the VPU.
                        term = w[:, idx:idx + 1] * shifted[ci:ci + 1, :]
                        acc = term if acc is None else acc + term
            return acc          # (C, MP) f32 (garbage at halo/tail, masked later)

        def batchnorm(y, g_ref, b_ref):
            # single-pass masked stats: E[y], E[y^2] over interior positions
            ym = y * mask
            ssum = jnp.sum(ym, axis=1, keepdims=True)        # (C, 1)
            ssq = jnp.sum(ym * ym, axis=1, keepdims=True)    # (C, 1)
            mean = ssum * inv_count
            var = ssq * inv_count - mean * mean
            inv = jax.lax.rsqrt(var + EPS)                   # EUP slot
            # re-mask so the halo stays exactly zero for the next conv's padding
            return ((y - mean) * inv * g_ref[...] + b_ref[...]) * mask

        out = conv3x3(xp, w1_ref)
        out = jnp.maximum(batchnorm(out, g1_ref, b1_ref), 0.0)
        out = conv3x3(out, w2_ref)
        out = batchnorm(out, g2_ref, b2_ref) + xp            # residual (halo 0+0)
        o_ref[...] = jnp.maximum(out, 0.0)                   # lane-dense store

    return kernel, MP, NFLAT


def resblock_forward(x, w1, w2, g1, b1, g2, b2):
    """x: (N, H, W, C) NHWC; w*: (3, 3, Cin, Cout) HWIO; g*/b*: (C,)."""
    N, H, W, C = x.shape
    HP, WP = H + 2, W + 2
    kernel, MP, NFLAT = make_resblock_kernel(N, H, W, C)

    # ---- wrapper-side layout plumbing (XLA): NHWC -> lane-dense (C, MP) ----
    xc = jnp.transpose(x, (3, 0, 1, 2)).astype(jnp.float32)      # (C, N, H, W)
    xp = jnp.pad(xc, ((0, 0), (0, 0), (1, 1), (1, 1)))           # zero halo
    xp = xp.reshape(C, NFLAT)
    xp = jnp.pad(xp, ((0, 0), (0, MP - NFLAT)))                  # zero tail

    hh = jnp.arange(HP)
    ww = jnp.arange(WP)
    m2d = ((hh >= 1) & (hh <= H))[:, None] & ((ww >= 1) & (ww <= W))[None, :]
    mask = jnp.tile(m2d.reshape(-1), (N,))                       # (N*HP*WP,)
    mask = jnp.pad(mask, (0, MP - NFLAT)).astype(jnp.float32).reshape(1, MP)

    def pack_w(w):
        # (3,3,Cin,Cout) -> (Cout, 9*Cin), w_t[co, tap*C+ci] = w[dh,dw,ci,co]
        return (jnp.transpose(w.reshape(9, C, C), (2, 0, 1))
                .reshape(C, 9 * C).astype(jnp.float32))

    out_p = pl.pallas_call(
        kernel,
        out_shape=jax.ShapeDtypeStruct((C, MP), jnp.float32),
        in_specs=[pl.BlockSpec(memory_space=pltpu.MemorySpace.VMEM)] * 8,
        out_specs=pl.BlockSpec(memory_space=pltpu.MemorySpace.VMEM),
    )(xp, mask, pack_w(w1), pack_w(w2),
      g1.reshape(C, 1).astype(jnp.float32),
      b1.reshape(C, 1).astype(jnp.float32),
      g2.reshape(C, 1).astype(jnp.float32),
      b2.reshape(C, 1).astype(jnp.float32))

    # lane-dense slab -> NHWC interior
    out = out_p[:, :NFLAT].reshape(C, N, HP, WP)[:, :, 1:H + 1, 1:W + 1]
    return jnp.transpose(out, (1, 2, 3, 0)).astype(x.dtype)


def ref_forward(x, w1, w2, g1, b1, g2, b2):
    # pure-JAX reference (same math) for a sanity check
    def conv(inp, w):
        return jax.lax.conv_general_dilated(
            inp, w, window_strides=(1, 1), padding=((1, 1), (1, 1)),
            dimension_numbers=('NHWC', 'HWIO', 'NHWC'),
            precision=jax.lax.Precision.HIGHEST)

    def bn(y, g, b):
        mean = jnp.mean(y, axis=(0, 1, 2), keepdims=True)
        var = jnp.mean((y - mean) ** 2, axis=(0, 1, 2), keepdims=True)
        return (y - mean) * jax.lax.rsqrt(var + EPS) * g + b

    out = jnp.maximum(bn(conv(x, w1), g1, b1), 0.0)
    out = bn(conv(out, w2), g2, b2) + x
    return jnp.maximum(out, 0.0)


if __name__ == "__main__":
    key = jax.random.PRNGKey(0)
    N, H, W, C = 2, 16, 16, 4          # stream_size = 4

    k_x, k_w1, k_w2 = jax.random.split(key, 3)
    x = jax.random.normal(k_x, (N, H, W, C), dtype=jnp.float32)

    # Conv2d default init: kaiming-uniform bound = 1/sqrt(fan_in), fan_in = C*3*3
    bound = 1.0 / jnp.sqrt(float(C * 3 * 3))
    w1 = jax.random.uniform(k_w1, (3, 3, C, C), jnp.float32, -bound, bound)
    w2 = jax.random.uniform(k_w2, (3, 3, C, C), jnp.float32, -bound, bound)

    # BatchNorm2d default init: gamma = 1, beta = 0
    g1 = jnp.ones((C,), jnp.float32)
    b1 = jnp.zeros((C,), jnp.float32)
    g2 = jnp.ones((C,), jnp.float32)
    b2 = jnp.zeros((C,), jnp.float32)

    out = resblock_forward(x, w1, w2, g1, b1, g2, b2)
    out = jax.block_until_ready(out)

    ref = jax.block_until_ready(ref_forward(x, w1, w2, g1, b1, g2, b2))
    assert out.shape == (N, H, W, C)
    assert jnp.allclose(out, ref, atol=2e-3, rtol=2e-3), "mismatch vs reference"

    print("KERNEL_OK")
</pallas_src>

<mosaic_0001>
module attributes {stable_mosaic.version = 11 : i64} {
  func.func @kernel(%arg0: memref<4x768xf32, #tpu.memory_space<vmem>>, %arg1: memref<1x768xf32, #tpu.memory_space<vmem>>, %arg2: memref<4x36xf32, #tpu.memory_space<vmem>>, %arg3: memref<4x36xf32, #tpu.memory_space<vmem>>, %arg4: memref<4x1xf32, #tpu.memory_space<vmem>>, %arg5: memref<4x1xf32, #tpu.memory_space<vmem>>, %arg6: memref<4x1xf32, #tpu.memory_space<vmem>>, %arg7: memref<4x1xf32, #tpu.memory_space<vmem>>, %arg8: memref<4x768xf32, #tpu.memory_space<vmem>>) attributes {dimension_semantics = [], scalar_prefetch = 0 : i64, scratch_operands = 0 : i64, tpu.core_type = #tpu.core_type<tc>} {
    %c0 = arith.constant 0 : index
    %c0_0 = arith.constant 0 : index
    %0 = vector.load %arg0[%c0, %c0_0] : memref<4x768xf32, #tpu.memory_space<vmem>>, vector<4x768xf32>
    %c0_1 = arith.constant 0 : index
    %c0_2 = arith.constant 0 : index
    %1 = vector.load %arg1[%c0_1, %c0_2] : memref<1x768xf32, #tpu.memory_space<vmem>>, vector<1x768xf32>
    %c0_3 = arith.constant 0 : index
    %c0_4 = arith.constant 0 : index
    %2 = vector.load %arg2[%c0_3, %c0_4] : memref<4x36xf32, #tpu.memory_space<vmem>>, vector<4x36xf32>
    %c19_i32 = arith.constant 19 : i32
    %3 = tpu.dynamic_rotate %0 by %c19_i32 dim 1 : vector<4x768xf32>, i32 -> vector<4x768xf32>
    %4 = vector.extract_strided_slice %2 {offsets = [0, 0], sizes = [4, 1], strides = [1, 1]} : vector<4x36xf32> to vector<4x1xf32>
    %5 = vector.extract_strided_slice %3 {offsets = [0, 0], sizes = [1, 768], strides = [1, 1]} : vector<4x768xf32> to vector<1x768xf32>
    %6 = vector.broadcast %4 : vector<4x1xf32> to vector<4x768xf32>
    %7 = vector.broadcast %5 : vector<1x768xf32> to vector<4x768xf32>
    %8 = arith.mulf %6, %7 : vector<4x768xf32>
    %9 = vector.extract_strided_slice %2 {offsets = [0, 1], sizes = [4, 1], strides = [1, 1]} : vector<4x36xf32> to vector<4x1xf32>
    %10 = vector.extract_strided_slice %3 {offsets = [1, 0], sizes = [1, 768], strides = [1, 1]} : vector<4x768xf32> to vector<1x768xf32>
    %11 = vector.broadcast %9 : vector<4x1xf32> to vector<4x768xf32>
    %12 = vector.broadcast %10 : vector<1x768xf32> to vector<4x768xf32>
    %13 = arith.mulf %11, %12 : vector<4x768xf32>
    %14 = arith.addf %8, %13 : vector<4x768xf32>
    %15 = vector.extract_strided_slice %2 {offsets = [0, 2], sizes = [4, 1], strides = [1, 1]} : vector<4x36xf32> to vector<4x1xf32>
    %16 = vector.extract_strided_slice %3 {offsets = [2, 0], sizes = [1, 768], strides = [1, 1]} : vector<4x768xf32> to vector<1x768xf32>
    %17 = vector.broadcast %15 : vector<4x1xf32> to vector<4x768xf32>
    %18 = vector.broadcast %16 : vector<1x768xf32> to vector<4x768xf32>
    %19 = arith.mulf %17, %18 : vector<4x768xf32>
    %20 = arith.addf %14, %19 : vector<4x768xf32>
    %21 = vector.extract_strided_slice %2 {offsets = [0, 3], sizes = [4, 1], strides = [1, 1]} : vector<4x36xf32> to vector<4x1xf32>
    %22 = vector.extract_strided_slice %3 {offsets = [3, 0], sizes = [1, 768], strides = [1, 1]} : vector<4x768xf32> to vector<1x768xf32>
    %23 = vector.broadcast %21 : vector<4x1xf32> to vector<4x768xf32>
    %24 = vector.broadcast %22 : vector<1x768xf32> to vector<4x768xf32>
    %25 = arith.mulf %23, %24 : vector<4x768xf32>
    %26 = arith.addf %20, %25 : vector<4x768xf32>
    %c18_i32 = arith.constant 18 : i32
    %27 = tpu.dynamic_rotate %0 by %c18_i32 dim 1 : vector<4x768xf32>, i32 -> vector<4x768xf32>
    %28 = vector.extract_strided_slice %2 {offsets = [0, 4], sizes = [4, 1], strides = [1, 1]} : vector<4x36xf32> to vector<4x1xf32>
    %29 = vector.extract_strided_slice %27 {offsets = [0, 0], sizes = [1, 768], strides = [1, 1]} : vector<4x768xf32> to vector<1x768xf32>
    %30 = vector.broadcast %28 : vector<4x1xf32> to vector<4x768xf32>
    %31 = vector.broadcast %29 : vector<1x768xf32> to vector<4x768xf32>
    %32 = arith.mulf %30, %31 : vector<4x768xf32>
    %33 = arith.addf %26, %32 : vector<4x768xf32>
    %34 = vector.extract_strided_slice %2 {offsets = [0, 5], sizes = [4, 1], strides = [1, 1]} : vector<4x36xf32> to vector<4x1xf32>
    %35 = vector.extract_strided_slice %27 {offsets = [1, 0], sizes = [1, 768], strides = [1, 1]} : vector<4x768xf32> to vector<1x768xf32>
    %36 = vector.broadcast %34 : vector<4x1xf32> to vector<4x768xf32>
    %37 = vector.broadcast %35 : vector<1x768xf32> to vector<4x768xf32>
    %38 = arith.mulf %36, %37 : vector<4x768xf32>
    %39 = arith.addf %33, %38 : vector<4x768xf32>
    %40 = vector.extract_strided_slice %2 {offsets = [0, 6], sizes = [4, 1], strides = [1, 1]} : vector<4x36xf32> to vector<4x1xf32>
    %41 = vector.extract_strided_slice %27 {offsets = [2, 0], sizes = [1, 768], strides = [1, 1]} : vector<4x768xf32> to vector<1x768xf32>
    %42 = vector.broadcast %40 : vector<4x1xf32> to vector<4x768xf32>
    %43 = vector.broadcast %41 : vector<1x768xf32> to vector<4x768xf32>
    %44 = arith.mulf %42, %43 : vector<4x768xf32>
    %45 = arith.addf %39, %44 : vector<4x768xf32>
    %46 = vector.extract_strided_slice %2 {offsets = [0, 7], sizes = [4, 1], strides = [1, 1]} : vector<4x36xf32> to vector<4x1xf32>
    %47 = vector.extract_strided_slice %27 {offsets = [3, 0], sizes = [1, 768], strides = [1, 1]} : vector<4x768xf32> to vector<1x768xf32>
    %48 = vector.broadcast %46 : vector<4x1xf32> to vector<4x768xf32>
    %49 = vector.broadcast %47 : vector<1x768xf32> to vector<4x768xf32>
    %50 = arith.mulf %48, %49 : vector<4x768xf32>
    %51 = arith.addf %45, %50 : vector<4x768xf32>
    %c17_i32 = arith.constant 17 : i32
    %52 = tpu.dynamic_rotate %0 by %c17_i32 dim 1 : vector<4x768xf32>, i32 -> vector<4x768xf32>
    %53 = vector.extract_strided_slice %2 {offsets = [0, 8], sizes = [4, 1], strides = [1, 1]} : vector<4x36xf32> to vector<4x1xf32>
    %54 = vector.extract_strided_slice %52 {offsets = [0, 0], sizes = [1, 768], strides = [1, 1]} : vector<4x768xf32> to vector<1x768xf32>
    %55 = vector.broadcast %53 : vector<4x1xf32> to vector<4x768xf32>
    %56 = vector.broadcast %54 : vector<1x768xf32> to vector<4x768xf32>
    %57 = arith.mulf %55, %56 : vector<4x768xf32>
    %58 = arith.addf %51, %57 : vector<4x768xf32>
    %59 = vector.extract_strided_slice %2 {offsets = [0, 9], sizes = [4, 1], strides = [1, 1]} : vector<4x36xf32> to vector<4x1xf32>
    %60 = vector.extract_strided_slice %52 {offsets = [1, 0], sizes = [1, 768], strides = [1, 1]} : vector<4x768xf32> to vector<1x768xf32>
    %61 = vector.broadcast %59 : vector<4x1xf32> to vector<4x768xf32>
    %62 = vector.broadcast %60 : vector<1x768xf32> to vector<4x768xf32>
    %63 = arith.mulf %61, %62 : vector<4x768xf32>
    %64 = arith.addf %58, %63 : vector<4x768xf32>
    %65 = vector.extract_strided_slice %2 {offsets = [0, 10], sizes = [4, 1], strides = [1, 1]} : vector<4x36xf32> to vector<4x1xf32>
    %66 = vector.extract_strided_slice %52 {offsets = [2, 0], sizes = [1, 768], strides = [1, 1]} : vector<4x768xf32> to vector<1x768xf32>
    %67 = vector.broadcast %65 : vector<4x1xf32> to vector<4x768xf32>
    %68 = vector.broadcast %66 : vector<1x768xf32> to vector<4x768xf32>
    %69 = arith.mulf %67, %68 : vector<4x768xf32>
    %70 = arith.addf %64, %69 : vector<4x768xf32>
    %71 = vector.extract_strided_slice %2 {offsets = [0, 11], sizes = [4, 1], strides = [1, 1]} : vector<4x36xf32> to vector<4x1xf32>
    %72 = vector.extract_strided_slice %52 {offsets = [3, 0], sizes = [1, 768], strides = [1, 1]} : vector<4x768xf32> to vector<1x768xf32>
    %73 = vector.broadcast %71 : vector<4x1xf32> to vector<4x768xf32>
    %74 = vector.broadcast %72 : vector<1x768xf32> to vector<4x768xf32>
    %75 = arith.mulf %73, %74 : vector<4x768xf32>
    %76 = arith.addf %70, %75 : vector<4x768xf32>
    %c1_i32 = arith.constant 1 : i32
    %77 = tpu.dynamic_rotate %0 by %c1_i32 dim 1 : vector<4x768xf32>, i32 -> vector<4x768xf32>
    %78 = vector.extract_strided_slice %2 {offsets = [0, 12], sizes = [4, 1], strides = [1, 1]} : vector<4x36xf32> to vector<4x1xf32>
    %79 = vector.extract_strided_slice %77 {offsets = [0, 0], sizes = [1, 768], strides = [1, 1]} : vector<4x768xf32> to vector<1x768xf32>
    %80 = vector.broadcast %78 : vector<4x1xf32> to vector<4x768xf32>
    %81 = vector.broadcast %79 : vector<1x768xf32> to vector<4x768xf32>
    %82 = arith.mulf %80, %81 : vector<4x768xf32>
    %83 = arith.addf %76, %82 : vector<4x768xf32>
    %84 = vector.extract_strided_slice %2 {offsets = [0, 13], sizes = [4, 1], strides = [1, 1]} : vector<4x36xf32> to vector<4x1xf32>
    %85 = vector.extract_strided_slice %77 {offsets = [1, 0], sizes = [1, 768], strides = [1, 1]} : vector<4x768xf32> to vector<1x768xf32>
    %86 = vector.broadcast %84 : vector<4x1xf32> to vector<4x768xf32>
    %87 = vector.broadcast %85 : vector<1x768xf32> to vector<4x768xf32>
    %88 = arith.mulf %86, %87 : vector<4x768xf32>
    %89 = arith.addf %83, %88 : vector<4x768xf32>
    %90 = vector.extract_strided_slice %2 {offsets = [0, 14], sizes = [4, 1], strides = [1, 1]} : vector<4x36xf32> to vector<4x1xf32>
    %91 = vector.extract_strided_slice %77 {offsets = [2, 0], sizes = [1, 768], strides = [1, 1]} : vector<4x768xf32> to vector<1x768xf32>
    %92 = vector.broadcast %90 : vector<4x1xf32> to vector<4x768xf32>
    %93 = vector.broadcast %91 : vector<1x768xf32> to vector<4x768xf32>
    %94 = arith.mulf %92, %93 : vector<4x768xf32>
    %95 = arith.addf %89, %94 : vector<4x768xf32>
    %96 = vector.extract_strided_slice %2 {offsets = [0, 15], sizes = [4, 1], strides = [1, 1]} : vector<4x36xf32> to vector<4x1xf32>
    %97 = vector.extract_strided_slice %77 {offsets = [3, 0], sizes = [1, 768], strides = [1, 1]} : vector<4x768xf32> to vector<1x768xf32>
    %98 = vector.broadcast %96 : vector<4x1xf32> to vector<4x768xf32>
    %99 = vector.broadcast %97 : vector<1x768xf32> to vector<4x768xf32>
    %100 = arith.mulf %98, %99 : vector<4x768xf32>
    %101 = arith.addf %95, %100 : vector<4x768xf32>
    %102 = vector.extract_strided_slice %2 {offsets = [0, 16], sizes = [4, 1], strides = [1, 1]} : vector<4x36xf32> to vector<4x1xf32>
    %103 = vector.extract_strided_slice %0 {offsets = [0, 0], sizes = [1, 768], strides = [1, 1]} : vector<4x768xf32> to vector<1x768xf32>
    %104 = vector.broadcast %102 : vector<4x1xf32> to vector<4x768xf32>
    %105 = vector.broadcast %103 : vector<1x768xf32> to vector<4x768xf32>
    %106 = arith.mulf %104, %105 : vector<4x768xf32>
    %107 = arith.addf %101, %106 : vector<4x768xf32>
    %108 = vector.extract_strided_slice %2 {offsets = [0, 17], sizes = [4, 1], strides = [1, 1]} : vector<4x36xf32> to vector<4x1xf32>
    %109 = vector.extract_strided_slice %0 {offsets = [1, 0], sizes = [1, 768], strides = [1, 1]} : vector<4x768xf32> to vector<1x768xf32>
    %110 = vector.broadcast %108 : vector<4x1xf32> to vector<4x768xf32>
    %111 = vector.broadcast %109 : vector<1x768xf32> to vector<4x768xf32>
    %112 = arith.mulf %110, %111 : vector<4x768xf32>
    %113 = arith.addf %107, %112 : vector<4x768xf32>
    %114 = vector.extract_strided_slice %2 {offsets = [0, 18], sizes = [4, 1], strides = [1, 1]} : vector<4x36xf32> to vector<4x1xf32>
    %115 = vector.extract_strided_slice %0 {offsets = [2, 0], sizes = [1, 768], strides = [1, 1]} : vector<4x768xf32> to vector<1x768xf32>
    %116 = vector.broadcast %114 : vector<4x1xf32> to vector<4x768xf32>
    %117 = vector.broadcast %115 : vector<1x768xf32> to vector<4x768xf32>
    %118 = arith.mulf %116, %117 : vector<4x768xf32>
    %119 = arith.addf %113, %118 : vector<4x768xf32>
    %120 = vector.extract_strided_slice %2 {offsets = [0, 19], sizes = [4, 1], strides = [1, 1]} : vector<4x36xf32> to vector<4x1xf32>
    %121 = vector.extract_strided_slice %0 {offsets = [3, 0], sizes = [1, 768], strides = [1, 1]} : vector<4x768xf32> to vector<1x768xf32>
    %122 = vector.broadcast %120 : vector<4x1xf32> to vector<4x768xf32>
    %123 = vector.broadcast %121 : vector<1x768xf32> to vector<4x768xf32>
    %124 = arith.mulf %122, %123 : vector<4x768xf32>
    %125 = arith.addf %119, %124 : vector<4x768xf32>
    %c767_i32 = arith.constant 767 : i32
    %126 = tpu.dynamic_rotate %0 by %c767_i32 dim 1 : vector<4x768xf32>, i32 -> vector<4x768xf32>
    %127 = vector.extract_strided_slice %2 {offsets = [0, 20], sizes = [4, 1], strides = [1, 1]} : vector<4x36xf32> to vector<4x1xf32>
    %128 = vector.extract_strided_slice %126 {offsets = [0, 0], sizes = [1, 768], strides = [1, 1]} : vector<4x768xf32> to vector<1x768xf32>
    %129 = vector.broadcast %127 : vector<4x1xf32> to vector<4x768xf32>
    %130 = vector.broadcast %128 : vector<1x768xf32> to vector<4x768xf32>
    %131 = arith.mulf %129, %130 : vector<4x768xf32>
    %132 = arith.addf %125, %131 : vector<4x768xf32>
    %133 = vector.extract_strided_slice %2 {offsets = [0, 21], sizes = [4, 1], strides = [1, 1]} : vector<4x36xf32> to vector<4x1xf32>
    %134 = vector.extract_strided_slice %126 {offsets = [1, 0], sizes = [1, 768], strides = [1, 1]} : vector<4x768xf32> to vector<1x768xf32>
    %135 = vector.broadcast %133 : vector<4x1xf32> to vector<4x768xf32>
    %136 = vector.broadcast %134 : vector<1x768xf32> to vector<4x768xf32>
    %137 = arith.mulf %135, %136 : vector<4x768xf32>
    %138 = arith.addf %132, %137 : vector<4x768xf32>
    %139 = vector.extract_strided_slice %2 {offsets = [0, 22], sizes = [4, 1], strides = [1, 1]} : vector<4x36xf32> to vector<4x1xf32>
    %140 = vector.extract_strided_slice %126 {offsets = [2, 0], sizes = [1, 768], strides = [1, 1]} : vector<4x768xf32> to vector<1x768xf32>
    %141 = vector.broadcast %139 : vector<4x1xf32> to vector<4x768xf32>
    %142 = vector.broadcast %140 : vector<1x768xf32> to vector<4x768xf32>
    %143 = arith.mulf %141, %142 : vector<4x768xf32>
    %144 = arith.addf %138, %143 : vector<4x768xf32>
    %145 = vector.extract_strided_slice %2 {offsets = [0, 23], sizes = [4, 1], strides = [1, 1]} : vector<4x36xf32> to vector<4x1xf32>
    %146 = vector.extract_strided_slice %126 {offsets = [3, 0], sizes = [1, 768], strides = [1, 1]} : vector<4x768xf32> to vector<1x768xf32>
    %147 = vector.broadcast %145 : vector<4x1xf32> to vector<4x768xf32>
    %148 = vector.broadcast %146 : vector<1x768xf32> to vector<4x768xf32>
    %149 = arith.mulf %147, %148 : vector<4x768xf32>
    %150 = arith.addf %144, %149 : vector<4x768xf32>
    %c751_i32 = arith.constant 751 : i32
    %151 = tpu.dynamic_rotate %0 by %c751_i32 dim 1 : vector<4x768xf32>, i32 -> vector<4x768xf32>
    %152 = vector.extract_strided_slice %2 {offsets = [0, 24], sizes = [4, 1], strides = [1, 1]} : vector<4x36xf32> to vector<4x1xf32>
    %153 = vector.extract_strided_slice %151 {offsets = [0, 0], sizes = [1, 768], strides = [1, 1]} : vector<4x768xf32> to vector<1x768xf32>
    %154 = vector.broadcast %152 : vector<4x1xf32> to vector<4x768xf32>
    %155 = vector.broadcast %153 : vector<1x768xf32> to vector<4x768xf32>
    %156 = arith.mulf %154, %155 : vector<4x768xf32>
    %157 = arith.addf %150, %156 : vector<4x768xf32>
    %158 = vector.extract_strided_slice %2 {offsets = [0, 25], sizes = [4, 1], strides = [1, 1]} : vector<4x36xf32> to vector<4x1xf32>
    %159 = vector.extract_strided_slice %151 {offsets = [1, 0], sizes = [1, 768], strides = [1, 1]} : vector<4x768xf32> to vector<1x768xf32>
    %160 = vector.broadcast %158 : vector<4x1xf32> to vector<4x768xf32>
    %161 = vector.broadcast %159 : vector<1x768xf32> to vector<4x768xf32>
    %162 = arith.mulf %160, %161 : vector<4x768xf32>
    %163 = arith.addf %157, %162 : vector<4x768xf32>
    %164 = vector.extract_strided_slice %2 {offsets = [0, 26], sizes = [4, 1], strides = [1, 1]} : vector<4x36xf32> to vector<4x1xf32>
    %165 = vector.extract_strided_slice %151 {offsets = [2, 0], sizes = [1, 768], strides = [1, 1]} : vector<4x768xf32> to vector<1x768xf32>
    %166 = vector.broadcast %164 : vector<4x1xf32> to vector<4x768xf32>
    %167 = vector.broadcast %165 : vector<1x768xf32> to vector<4x768xf32>
    %168 = arith.mulf %166, %167 : vector<4x768xf32>
    %169 = arith.addf %163, %168 : vector<4x768xf32>
    %170 = vector.extract_strided_slice %2 {offsets = [0, 27], sizes = [4, 1], strides = [1, 1]} : vector<4x36xf32> to vector<4x1xf32>
    %171 = vector.extract_strided_slice %151 {offsets = [3, 0], sizes = [1, 768], strides = [1, 1]} : vector<4x768xf32> to vector<1x768xf32>
    %172 = vector.broadcast %170 : vector<4x1xf32> to vector<4x768xf32>
    %173 = vector.broadcast %171 : vector<1x768xf32> to vector<4x768xf32>
    %174 = arith.mulf %172, %173 : vector<4x768xf32>
    %175 = arith.addf %169, %174 : vector<4x768xf32>
    %c750_i32 = arith.constant 750 : i32
    %176 = tpu.dynamic_rotate %0 by %c750_i32 dim 1 : vector<4x768xf32>, i32 -> vector<4x768xf32>
    %177 = vector.extract_strided_slice %2 {offsets = [0, 28], sizes = [4, 1], strides = [1, 1]} : vector<4x36xf32> to vector<4x1xf32>
    %178 = vector.extract_strided_slice %176 {offsets = [0, 0], sizes = [1, 768], strides = [1, 1]} : vector<4x768xf32> to vector<1x768xf32>
    %179 = vector.broadcast %177 : vector<4x1xf32> to vector<4x768xf32>
    %180 = vector.broadcast %178 : vector<1x768xf32> to vector<4x768xf32>
    %181 = arith.mulf %179, %180 : vector<4x768xf32>
    %182 = arith.addf %175, %181 : vector<4x768xf32>
    %183 = vector.extract_strided_slice %2 {offsets = [0, 29], sizes = [4, 1], strides = [1, 1]} : vector<4x36xf32> to vector<4x1xf32>
    %184 = vector.extract_strided_slice %176 {offsets = [1, 0], sizes = [1, 768], strides = [1, 1]} : vector<4x768xf32> to vector<1x768xf32>
    %185 = vector.broadcast %183 : vector<4x1xf32> to vector<4x768xf32>
    %186 = vector.broadcast %184 : vector<1x768xf32> to vector<4x768xf32>
    %187 = arith.mulf %185, %186 : vector<4x768xf32>
    %188 = arith.addf %182, %187 : vector<4x768xf32>
    %189 = vector.extract_strided_slice %2 {offsets = [0, 30], sizes = [4, 1], strides = [1, 1]} : vector<4x36xf32> to vector<4x1xf32>
    %190 = vector.extract_strided_slice %176 {offsets = [2, 0], sizes = [1, 768], strides = [1, 1]} : vector<4x768xf32> to vector<1x768xf32>
    %191 = vector.broadcast %189 : vector<4x1xf32> to vector<4x768xf32>
    %192 = vector.broadcast %190 : vector<1x768xf32> to vector<4x768xf32>
    %193 = arith.mulf %191, %192 : vector<4x768xf32>
    %194 = arith.addf %188, %193 : vector<4x768xf32>
    %195 = vector.extract_strided_slice %2 {offsets = [0, 31], sizes = [4, 1], strides = [1, 1]} : vector<4x36xf32> to vector<4x1xf32>
    %196 = vector.extract_strided_slice %176 {offsets = [3, 0], sizes = [1, 768], strides = [1, 1]} : vector<4x768xf32> to vector<1x768xf32>
    %197 = vector.broadcast %195 : vector<4x1xf32> to vector<4x768xf32>
    %198 = vector.broadcast %196 : vector<1x768xf32> to vector<4x768xf32>
    %199 = arith.mulf %197, %198 : vector<4x768xf32>
    %200 = arith.addf %194, %199 : vector<4x768xf32>
    %c749_i32 = arith.constant 749 : i32
    %201 = tpu.dynamic_rotate %0 by %c749_i32 dim 1 : vector<4x768xf32>, i32 -> vector<4x768xf32>
    %202 = vector.extract_strided_slice %2 {offsets = [0, 32], sizes = [4, 1], strides = [1, 1]} : vector<4x36xf32> to vector<4x1xf32>
    %203 = vector.extract_strided_slice %201 {offsets = [0, 0], sizes = [1, 768], strides = [1, 1]} : vector<4x768xf32> to vector<1x768xf32>
    %204 = vector.broadcast %202 : vector<4x1xf32> to vector<4x768xf32>
    %205 = vector.broadcast %203 : vector<1x768xf32> to vector<4x768xf32>
    %206 = arith.mulf %204, %205 : vector<4x768xf32>
    %207 = arith.addf %200, %206 : vector<4x768xf32>
    %208 = vector.extract_strided_slice %2 {offsets = [0, 33], sizes = [4, 1], strides = [1, 1]} : vector<4x36xf32> to vector<4x1xf32>
    %209 = vector.extract_strided_slice %201 {offsets = [1, 0], sizes = [1, 768], strides = [1, 1]} : vector<4x768xf32> to vector<1x768xf32>
    %210 = vector.broadcast %208 : vector<4x1xf32> to vector<4x768xf32>
    %211 = vector.broadcast %209 : vector<1x768xf32> to vector<4x768xf32>
    %212 = arith.mulf %210, %211 : vector<4x768xf32>
    %213 = arith.addf %207, %212 : vector<4x768xf32>
    %214 = vector.extract_strided_slice %2 {offsets = [0, 34], sizes = [4, 1], strides = [1, 1]} : vector<4x36xf32> to vector<4x1xf32>
    %215 = vector.extract_strided_slice %201 {offsets = [2, 0], sizes = [1, 768], strides = [1, 1]} : vector<4x768xf32> to vector<1x768xf32>
    %216 = vector.broadcast %214 : vector<4x1xf32> to vector<4x768xf32>
    %217 = vector.broadcast %215 : vector<1x768xf32> to vector<4x768xf32>
    %218 = arith.mulf %216, %217 : vector<4x768xf32>
    %219 = arith.addf %213, %218 : vector<4x768xf32>
    %220 = vector.extract_strided_slice %2 {offsets = [0, 35], sizes = [4, 1], strides = [1, 1]} : vector<4x36xf32> to vector<4x1xf32>
    %221 = vector.extract_strided_slice %201 {offsets = [3, 0], sizes = [1, 768], strides = [1, 1]} : vector<4x768xf32> to vector<1x768xf32>
    %222 = vector.broadcast %220 : vector<4x1xf32> to vector<4x768xf32>
    %223 = vector.broadcast %221 : vector<1x768xf32> to vector<4x768xf32>
    %224 = arith.mulf %222, %223 : vector<4x768xf32>
    %225 = arith.addf %219, %224 : vector<4x768xf32>
    %226 = vector.broadcast %1 : vector<1x768xf32> to vector<4x768xf32>
    %227 = arith.mulf %225, %226 : vector<4x768xf32>
    %cst = arith.constant dense<0.000000e+00> : vector<4xf32>
    %228 = vector.multi_reduction <add>, %227, %cst [1] : vector<4x768xf32> to vector<4xf32>
    %229 = vector.shape_cast %228 : vector<4xf32> to vector<4x1xf32>
    %230 = arith.mulf %227, %227 : vector<4x768xf32>
    %cst_5 = arith.constant dense<0.000000e+00> : vector<4xf32>
    %231 = vector.multi_reduction <add>, %230, %cst_5 [1] : vector<4x768xf32> to vector<4xf32>
    %232 = vector.shape_cast %231 : vector<4xf32> to vector<4x1xf32>
    %cst_6 = arith.constant 0.001953125 : f32
    %233 = vector.broadcast %cst_6 : f32 to vector<4x1xf32>
    %234 = arith.mulf %229, %233 : vector<4x1xf32>
    %cst_7 = arith.constant 0.001953125 : f32
    %235 = vector.broadcast %cst_7 : f32 to vector<4x1xf32>
    %236 = arith.mulf %232, %235 : vector<4x1xf32>
    %237 = arith.mulf %234, %234 : vector<4x1xf32>
    %238 = arith.subf %236, %237 : vector<4x1xf32>
    %cst_8 = arith.constant 9.99999974E-6 : f32
    %239 = vector.broadcast %cst_8 : f32 to vector<4x1xf32>
    %240 = arith.addf %238, %239 : vector<4x1xf32>
    %241 = math.rsqrt %240 : vector<4x1xf32>
    %242 = vector.broadcast %234 : vector<4x1xf32> to vector<4x768xf32>
    %243 = arith.subf %225, %242 : vector<4x768xf32>
    %244 = vector.broadcast %241 : vector<4x1xf32> to vector<4x768xf32>
    %245 = arith.mulf %243, %244 : vector<4x768xf32>
    %c0_9 = arith.constant 0 : index
    %c0_10 = arith.constant 0 : index
    %246 = vector.load %arg4[%c0_9, %c0_10] : memref<4x1xf32, #tpu.memory_space<vmem>>, vector<4x1xf32>
    %247 = vector.broadcast %246 : vector<4x1xf32> to vector<4x768xf32>
    %248 = arith.mulf %245, %247 : vector<4x768xf32>
    %c0_11 = arith.constant 0 : index
    %c0_12 = arith.constant 0 : index
    %249 = vector.load %arg5[%c0_11, %c0_12] : memref<4x1xf32, #tpu.memory_space<vmem>>, vector<4x1xf32>
    %250 = vector.broadcast %249 : vector<4x1xf32> to vector<4x768xf32>
    %251 = arith.addf %248, %250 : vector<4x768xf32>
    %252 = vector.broadcast %1 : vector<1x768xf32> to vector<4x768xf32>
    %253 = arith.mulf %251, %252 : vector<4x768xf32>
    %cst_13 = arith.constant 0.000000e+00 : f32
    %254 = vector.broadcast %cst_13 : f32 to vector<4x768xf32>
    %255 = arith.maximumf %253, %254 : vector<4x768xf32>
    %c0_14 = arith.constant 0 : index
    %c0_15 = arith.constant 0 : index
    %256 = vector.load %arg3[%c0_14, %c0_15] : memref<4x36xf32, #tpu.memory_space<vmem>>, vector<4x36xf32>
    %c19_i32_16 = arith.constant 19 : i32
    %257 = tpu.dynamic_rotate %255 by %c19_i32_16 dim 1 : vector<4x768xf32>, i32 -> vector<4x768xf32>
    %258 = vector.extract_strided_slice %256 {offsets = [0, 0], sizes = [4, 1], strides = [1, 1]} : vector<4x36xf32> to vector<4x1xf32>
    %259 = vector.extract_strided_slice %257 {offsets = [0, 0], sizes = [1, 768], strides = [1, 1]} : vector<4x768xf32> to vector<1x768xf32>
    %260 = vector.broadcast %258 : vector<4x1xf32> to vector<4x768xf32>
    %261 = vector.broadcast %259 : vector<1x768xf32> to vector<4x768xf32>
    %262 = arith.mulf %260, %261 : vector<4x768xf32>
    %263 = vector.extract_strided_slice %256 {offsets = [0, 1], sizes = [4, 1], strides = [1, 1]} : vector<4x36xf32> to vector<4x1xf32>
    %264 = vector.extract_strided_slice %257 {offsets = [1, 0], sizes = [1, 768], strides = [1, 1]} : vector<4x768xf32> to vector<1x768xf32>
    %265 = vector.broadcast %263 : vector<4x1xf32> to vector<4x768xf32>
    %266 = vector.broadcast %264 : vector<1x768xf32> to vector<4x768xf32>
    %267 = arith.mulf %265, %266 : vector<4x768xf32>
    %268 = arith.addf %262, %267 : vector<4x768xf32>
    %269 = vector.extract_strided_slice %256 {offsets = [0, 2], sizes = [4, 1], strides = [1, 1]} : vector<4x36xf32> to vector<4x1xf32>
    %270 = vector.extract_strided_slice %257 {offsets = [2, 0], sizes = [1, 768], strides = [1, 1]} : vector<4x768xf32> to vector<1x768xf32>
    %271 = vector.broadcast %269 : vector<4x1xf32> to vector<4x768xf32>
    %272 = vector.broadcast %270 : vector<1x768xf32> to vector<4x768xf32>
    %273 = arith.mulf %271, %272 : vector<4x768xf32>
    %274 = arith.addf %268, %273 : vector<4x768xf32>
    %275 = vector.extract_strided_slice %256 {offsets = [0, 3], sizes = [4, 1], strides = [1, 1]} : vector<4x36xf32> to vector<4x1xf32>
    %276 = vector.extract_strided_slice %257 {offsets = [3, 0], sizes = [1, 768], strides = [1, 1]} : vector<4x768xf32> to vector<1x768xf32>
    %277 = vector.broadcast %275 : vector<4x1xf32> to vector<4x768xf32>
    %278 = vector.broadcast %276 : vector<1x768xf32> to vector<4x768xf32>
    %279 = arith.mulf %277, %278 : vector<4x768xf32>
    %280 = arith.addf %274, %279 : vector<4x768xf32>
    %c18_i32_17 = arith.constant 18 : i32
    %281 = tpu.dynamic_rotate %255 by %c18_i32_17 dim 1 : vector<4x768xf32>, i32 -> vector<4x768xf32>
    %282 = vector.extract_strided_slice %256 {offsets = [0, 4], sizes = [4, 1], strides = [1, 1]} : vector<4x36xf32> to vector<4x1xf32>
    %283 = vector.extract_strided_slice %281 {offsets = [0, 0], sizes = [1, 768], strides = [1, 1]} : vector<4x768xf32> to vector<1x768xf32>
    %284 = vector.broadcast %282 : vector<4x1xf32> to vector<4x768xf32>
    %285 = vector.broadcast %283 : vector<1x768xf32> to vector<4x768xf32>
    %286 = arith.mulf %284, %285 : vector<4x768xf32>
    %287 = arith.addf %280, %286 : vector<4x768xf32>
    %288 = vector.extract_strided_slice %256 {offsets = [0, 5], sizes = [4, 1], strides = [1, 1]} : vector<4x36xf32> to vector<4x1xf32>
    %289 = vector.extract_strided_slice %281 {offsets = [1, 0], sizes = [1, 768], strides = [1, 1]} : vector<4x768xf32> to vector<1x768xf32>
    %290 = vector.broadcast %288 : vector<4x1xf32> to vector<4x768xf32>
    %291 = vector.broadcast %289 : vector<1x768xf32> to vector<4x768xf32>
    %292 = arith.mulf %290, %291 : vector<4x768xf32>
    %293 = arith.addf %287, %292 : vector<4x768xf32>
    %294 = vector.extract_strided_slice %256 {offsets = [0, 6], sizes = [4, 1], strides = [1, 1]} : vector<4x36xf32> to vector<4x1xf32>
    %295 = vector.extract_strided_slice %281 {offsets = [2, 0], sizes = [1, 768], strides = [1, 1]} : vector<4x768xf32> to vector<1x768xf32>
    %296 = vector.broadcast %294 : vector<4x1xf32> to vector<4x768xf32>
    %297 = vector.broadcast %295 : vector<1x768xf32> to vector<4x768xf32>
    %298 = arith.mulf %296, %297 : vector<4x768xf32>
    %299 = arith.addf %293, %298 : vector<4x768xf32>
    %300 = vector.extract_strided_slice %256 {offsets = [0, 7], sizes = [4, 1], strides = [1, 1]} : vector<4x36xf32> to vector<4x1xf32>
    %301 = vector.extract_strided_slice %281 {offsets = [3, 0], sizes = [1, 768], strides = [1, 1]} : vector<4x768xf32> to vector<1x768xf32>
    %302 = vector.broadcast %300 : vector<4x1xf32> to vector<4x768xf32>
    %303 = vector.broadcast %301 : vector<1x768xf32> to vector<4x768xf32>
    %304 = arith.mulf %302, %303 : vector<4x768xf32>
    %305 = arith.addf %299, %304 : vector<4x768xf32>
    %c17_i32_18 = arith.constant 17 : i32
    %306 = tpu.dynamic_rotate %255 by %c17_i32_18 dim 1 : vector<4x768xf32>, i32 -> vector<4x768xf32>
    %307 = vector.extract_strided_slice %256 {offsets = [0, 8], sizes = [4, 1], strides = [1, 1]} : vector<4x36xf32> to vector<4x1xf32>
    %308 = vector.extract_strided_slice %306 {offsets = [0, 0], sizes = [1, 768], strides = [1, 1]} : vector<4x768xf32> to vector<1x768xf32>
    %309 = vector.broadcast %307 : vector<4x1xf32> to vector<4x768xf32>
    %310 = vector.broadcast %308 : vector<1x768xf32> to vector<4x768xf32>
    %311 = arith.mulf %309, %310 : vector<4x768xf32>
    %312 = arith.addf %305, %311 : vector<4x768xf32>
    %313 = vector.extract_strided_slice %256 {offsets = [0, 9], sizes = [4, 1], strides = [1, 1]} : vector<4x36xf32> to vector<4x1xf32>
    %314 = vector.extract_strided_slice %306 {offsets = [1, 0], sizes = [1, 768], strides = [1, 1]} : vector<4x768xf32> to vector<1x768xf32>
    %315 = vector.broadcast %313 : vector<4x1xf32> to vector<4x768xf32>
    %316 = vector.broadcast %314 : vector<1x768xf32> to vector<4x768xf32>
    %317 = arith.mulf %315, %316 : vector<4x768xf32>
    %318 = arith.addf %312, %317 : vector<4x768xf32>
    %319 = vector.extract_strided_slice %256 {offsets = [0, 10], sizes = [4, 1], strides = [1, 1]} : vector<4x36xf32> to vector<4x1xf32>
    %320 = vector.extract_strided_slice %306 {offsets = [2, 0], sizes = [1, 768], strides = [1, 1]} : vector<4x768xf32> to vector<1x768xf32>
    %321 = vector.broadcast %319 : vector<4x1xf32> to vector<4x768xf32>
    %322 = vector.broadcast %320 : vector<1x768xf32> to vector<4x768xf32>
    %323 = arith.mulf %321, %322 : vector<4x768xf32>
    %324 = arith.addf %318, %323 : vector<4x768xf32>
    %325 = vector.extract_strided_slice %256 {offsets = [0, 11], sizes = [4, 1], strides = [1, 1]} : vector<4x36xf32> to vector<4x1xf32>
    %326 = vector.extract_strided_slice %306 {offsets = [3, 0], sizes = [1, 768], strides = [1, 1]} : vector<4x768xf32> to vector<1x768xf32>
    %327 = vector.broadcast %325 : vector<4x1xf32> to vector<4x768xf32>
    %328 = vector.broadcast %326 : vector<1x768xf32> to vector<4x768xf32>
    %329 = arith.mulf %327, %328 : vector<4x768xf32>
    %330 = arith.addf %324, %329 : vector<4x768xf32>
    %c1_i32_19 = arith.constant 1 : i32
    %331 = tpu.dynamic_rotate %255 by %c1_i32_19 dim 1 : vector<4x768xf32>, i32 -> vector<4x768xf32>
    %332 = vector.extract_strided_slice %256 {offsets = [0, 12], sizes = [4, 1], strides = [1, 1]} : vector<4x36xf32> to vector<4x1xf32>
    %333 = vector.extract_strided_slice %331 {offsets = [0, 0], sizes = [1, 768], strides = [1, 1]} : vector<4x768xf32> to vector<1x768xf32>
    %334 = vector.broadcast %332 : vector<4x1xf32> to vector<4x768xf32>
    %335 = vector.broadcast %333 : vector<1x768xf32> to vector<4x768xf32>
    %336 = arith.mulf %334, %335 : vector<4x768xf32>
    %337 = arith.addf %330, %336 : vector<4x768xf32>
    %338 = vector.extract_strided_slice %256 {offsets = [0, 13], sizes = [4, 1], strides = [1, 1]} : vector<4x36xf32> to vector<4x1xf32>
    %339 = vector.extract_strided_slice %331 {offsets = [1, 0], sizes = [1, 768], strides = [1, 1]} : vector<4x768xf32> to vector<1x768xf32>
    %340 = vector.broadcast %338 : vector<4x1xf32> to vector<4x768xf32>
    %341 = vector.broadcast %339 : vector<1x768xf32> to vector<4x768xf32>
    %342 = arith.mulf %340, %341 : vector<4x768xf32>
    %343 = arith.addf %337, %342 : vector<4x768xf32>
    %344 = vector.extract_strided_slice %256 {offsets = [0, 14], sizes = [4, 1], strides = [1, 1]} : vector<4x36xf32> to vector<4x1xf32>
    %345 = vector.extract_strided_slice %331 {offsets = [2, 0], sizes = [1, 768], strides = [1, 1]} : vector<4x768xf32> to vector<1x768xf32>
    %346 = vector.broadcast %344 : vector<4x1xf32> to vector<4x768xf32>
    %347 = vector.broadcast %345 : vector<1x768xf32> to vector<4x768xf32>
    %348 = arith.mulf %346, %347 : vector<4x768xf32>
    %349 = arith.addf %343, %348 : vector<4x768xf32>
    %350 = vector.extract_strided_slice %256 {offsets = [0, 15], sizes = [4, 1], strides = [1, 1]} : vector<4x36xf32> to vector<4x1xf32>
    %351 = vector.extract_strided_slice %331 {offsets = [3, 0], sizes = [1, 768], strides = [1, 1]} : vector<4x768xf32> to vector<1x768xf32>
    %352 = vector.broadcast %350 : vector<4x1xf32> to vector<4x768xf32>
    %353 = vector.broadcast %351 : vector<1x768xf32> to vector<4x768xf32>
    %354 = arith.mulf %352, %353 : vector<4x768xf32>
    %355 = arith.addf %349, %354 : vector<4x768xf32>
    %356 = vector.extract_strided_slice %256 {offsets = [0, 16], sizes = [4, 1], strides = [1, 1]} : vector<4x36xf32> to vector<4x1xf32>
    %357 = vector.extract_strided_slice %255 {offsets = [0, 0], sizes = [1, 768], strides = [1, 1]} : vector<4x768xf32> to vector<1x768xf32>
    %358 = vector.broadcast %356 : vector<4x1xf32> to vector<4x768xf32>
    %359 = vector.broadcast %357 : vector<1x768xf32> to vector<4x768xf32>
    %360 = arith.mulf %358, %359 : vector<4x768xf32>
    %361 = arith.addf %355, %360 : vector<4x768xf32>
    %362 = vector.extract_strided_slice %256 {offsets = [0, 17], sizes = [4, 1], strides = [1, 1]} : vector<4x36xf32> to vector<4x1xf32>
    %363 = vector.extract_strided_slice %255 {offsets = [1, 0], sizes = [1, 768], strides = [1, 1]} : vector<4x768xf32> to vector<1x768xf32>
    %364 = vector.broadcast %362 : vector<4x1xf32> to vector<4x768xf32>
    %365 = vector.broadcast %363 : vector<1x768xf32> to vector<4x768xf32>
    %366 = arith.mulf %364, %365 : vector<4x768xf32>
    %367 = arith.addf %361, %366 : vector<4x768xf32>
    %368 = vector.extract_strided_slice %256 {offsets = [0, 18], sizes = [4, 1], strides = [1, 1]} : vector<4x36xf32> to vector<4x1xf32>
    %369 = vector.extract_strided_slice %255 {offsets = [2, 0], sizes = [1, 768], strides = [1, 1]} : vector<4x768xf32> to vector<1x768xf32>
    %370 = vector.broadcast %368 : vector<4x1xf32> to vector<4x768xf32>
    %371 = vector.broadcast %369 : vector<1x768xf32> to vector<4x768xf32>
    %372 = arith.mulf %370, %371 : vector<4x768xf32>
    %373 = arith.addf %367, %372 : vector<4x768xf32>
    %374 = vector.extract_strided_slice %256 {offsets = [0, 19], sizes = [4, 1], strides = [1, 1]} : vector<4x36xf32> to vector<4x1xf32>
    %375 = vector.extract_strided_slice %255 {offsets = [3, 0], sizes = [1, 768], strides = [1, 1]} : vector<4x768xf32> to vector<1x768xf32>
    %376 = vector.broadcast %374 : vector<4x1xf32> to vector<4x768xf32>
    %377 = vector.broadcast %375 : vector<1x768xf32> to vector<4x768xf32>
    %378 = arith.mulf %376, %377 : vector<4x768xf32>
    %379 = arith.addf %373, %378 : vector<4x768xf32>
    %c767_i32_20 = arith.constant 767 : i32
    %380 = tpu.dynamic_rotate %255 by %c767_i32_20 dim 1 : vector<4x768xf32>, i32 -> vector<4x768xf32>
    %381 = vector.extract_strided_slice %256 {offsets = [0, 20], sizes = [4, 1], strides = [1, 1]} : vector<4x36xf32> to vector<4x1xf32>
    %382 = vector.extract_strided_slice %380 {offsets = [0, 0], sizes = [1, 768], strides = [1, 1]} : vector<4x768xf32> to vector<1x768xf32>
    %383 = vector.broadcast %381 : vector<4x1xf32> to vector<4x768xf32>
    %384 = vector.broadcast %382 : vector<1x768xf32> to vector<4x768xf32>
    %385 = arith.mulf %383, %384 : vector<4x768xf32>
    %386 = arith.addf %379, %385 : vector<4x768xf32>
    %387 = vector.extract_strided_slice %256 {offsets = [0, 21], sizes = [4, 1], strides = [1, 1]} : vector<4x36xf32> to vector<4x1xf32>
    %388 = vector.extract_strided_slice %380 {offsets = [1, 0], sizes = [1, 768], strides = [1, 1]} : vector<4x768xf32> to vector<1x768xf32>
    %389 = vector.broadcast %387 : vector<4x1xf32> to vector<4x768xf32>
    %390 = vector.broadcast %388 : vector<1x768xf32> to vector<4x768xf32>
    %391 = arith.mulf %389, %390 : vector<4x768xf32>
    %392 = arith.addf %386, %391 : vector<4x768xf32>
    %393 = vector.extract_strided_slice %256 {offsets = [0, 22], sizes = [4, 1], strides = [1, 1]} : vector<4x36xf32> to vector<4x1xf32>
    %394 = vector.extract_strided_slice %380 {offsets = [2, 0], sizes = [1, 768], strides = [1, 1]} : vector<4x768xf32> to vector<1x768xf32>
    %395 = vector.broadcast %393 : vector<4x1xf32> to vector<4x768xf32>
    %396 = vector.broadcast %394 : vector<1x768xf32> to vector<4x768xf32>
    %397 = arith.mulf %395, %396 : vector<4x768xf32>
    %398 = arith.addf %392, %397 : vector<4x768xf32>
    %399 = vector.extract_strided_slice %256 {offsets = [0, 23], sizes = [4, 1], strides = [1, 1]} : vector<4x36xf32> to vector<4x1xf32>
    %400 = vector.extract_strided_slice %380 {offsets = [3, 0], sizes = [1, 768], strides = [1, 1]} : vector<4x768xf32> to vector<1x768xf32>
    %401 = vector.broadcast %399 : vector<4x1xf32> to vector<4x768xf32>
    %402 = vector.broadcast %400 : vector<1x768xf32> to vector<4x768xf32>
    %403 = arith.mulf %401, %402 : vector<4x768xf32>
    %404 = arith.addf %398, %403 : vector<4x768xf32>
    %c751_i32_21 = arith.constant 751 : i32
    %405 = tpu.dynamic_rotate %255 by %c751_i32_21 dim 1 : vector<4x768xf32>, i32 -> vector<4x768xf32>
    %406 = vector.extract_strided_slice %256 {offsets = [0, 24], sizes = [4, 1], strides = [1, 1]} : vector<4x36xf32> to vector<4x1xf32>
    %407 = vector.extract_strided_slice %405 {offsets = [0, 0], sizes = [1, 768], strides = [1, 1]} : vector<4x768xf32> to vector<1x768xf32>
    %408 = vector.broadcast %406 : vector<4x1xf32> to vector<4x768xf32>
    %409 = vector.broadcast %407 : vector<1x768xf32> to vector<4x768xf32>
    %410 = arith.mulf %408, %409 : vector<4x768xf32>
    %411 = arith.addf %404, %410 : vector<4x768xf32>
    %412 = vector.extract_strided_slice %256 {offsets = [0, 25], sizes = [4, 1], strides = [1, 1]} : vector<4x36xf32> to vector<4x1xf32>
    %413 = vector.extract_strided_slice %405 {offsets = [1, 0], sizes = [1, 768], strides = [1, 1]} : vector<4x768xf32> to vector<1x768xf32>
    %414 = vector.broadcast %412 : vector<4x1xf32> to vector<4x768xf32>
    %415 = vector.broadcast %413 : vector<1x768xf32> to vector<4x768xf32>
    %416 = arith.mulf %414, %415 : vector<4x768xf32>
    %417 = arith.addf %411, %416 : vector<4x768xf32>
    %418 = vector.extract_strided_slice %256 {offsets = [0, 26], sizes = [4, 1], strides = [1, 1]} : vector<4x36xf32> to vector<4x1xf32>
    %419 = vector.extract_strided_slice %405 {offsets = [2, 0], sizes = [1, 768], strides = [1, 1]} : vector<4x768xf32> to vector<1x768xf32>
    %420 = vector.broadcast %418 : vector<4x1xf32> to vector<4x768xf32>
    %421 = vector.broadcast %419 : vector<1x768xf32> to vector<4x768xf32>
    %422 = arith.mulf %420, %421 : vector<4x768xf32>
    %423 = arith.addf %417, %422 : vector<4x768xf32>
    %424 = vector.extract_strided_slice %256 {offsets = [0, 27], sizes = [4, 1], strides = [1, 1]} : vector<4x36xf32> to vector<4x1xf32>
    %425 = vector.extract_strided_slice %405 {offsets = [3, 0], sizes = [1, 768], strides = [1, 1]} : vector<4x768xf32> to vector<1x768xf32>
    %426 = vector.broadcast %424 : vector<4x1xf32> to vector<4x768xf32>
    %427 = vector.broadcast %425 : vector<1x768xf32> to vector<4x768xf32>
    %428 = arith.mulf %426, %427 : vector<4x768xf32>
    %429 = arith.addf %423, %428 : vector<4x768xf32>
    %c750_i32_22 = arith.constant 750 : i32
    %430 = tpu.dynamic_rotate %255 by %c750_i32_22 dim 1 : vector<4x768xf32>, i32 -> vector<4x768xf32>
    %431 = vector.extract_strided_slice %256 {offsets = [0, 28], sizes = [4, 1], strides = [1, 1]} : vector<4x36xf32> to vector<4x1xf32>
    %432 = vector.extract_strided_slice %430 {offsets = [0, 0], sizes = [1, 768], strides = [1, 1]} : vector<4x768xf32> to vector<1x768xf32>
    %433 = vector.broadcast %431 : vector<4x1xf32> to vector<4x768xf32>
    %434 = vector.broadcast %432 : vector<1x768xf32> to vector<4x768xf32>
    %435 = arith.mulf %433, %434 : vector<4x768xf32>
    %436 = arith.addf %429, %435 : vector<4x768xf32>
    %437 = vector.extract_strided_slice %256 {offsets = [0, 29], sizes = [4, 1], strides = [1, 1]} : vector<4x36xf32> to vector<4x1xf32>
    %438 = vector.extract_strided_slice %430 {offsets = [1, 0], sizes = [1, 768], strides = [1, 1]} : vector<4x768xf32> to vector<1x768xf32>
    %439 = vector.broadcast %437 : vector<4x1xf32> to vector<4x768xf32>
    %440 = vector.broadcast %438 : vector<1x768xf32> to vector<4x768xf32>
    %441 = arith.mulf %439, %440 : vector<4x768xf32>
    %442 = arith.addf %436, %441 : vector<4x768xf32>
    %443 = vector.extract_strided_slice %256 {offsets = [0, 30], sizes = [4, 1], strides = [1, 1]} : vector<4x36xf32> to vector<4x1xf32>
    %444 = vector.extract_strided_slice %430 {offsets = [2, 0], sizes = [1, 768], strides = [1, 1]} : vector<4x768xf32> to vector<1x768xf32>
    %445 = vector.broadcast %443 : vector<4x1xf32> to vector<4x768xf32>
    %446 = vector.broadcast %444 : vector<1x768xf32> to vector<4x768xf32>
    %447 = arith.mulf %445, %446 : vector<4x768xf32>
    %448 = arith.addf %442, %447 : vector<4x768xf32>
    %449 = vector.extract_strided_slice %256 {offsets = [0, 31], sizes = [4, 1], strides = [1, 1]} : vector<4x36xf32> to vector<4x1xf32>
    %450 = vector.extract_strided_slice %430 {offsets = [3, 0], sizes = [1, 768], strides = [1, 1]} : vector<4x768xf32> to vector<1x768xf32>
    %451 = vector.broadcast %449 : vector<4x1xf32> to vector<4x768xf32>
    %452 = vector.broadcast %450 : vector<1x768xf32> to vector<4x768xf32>
    %453 = arith.mulf %451, %452 : vector<4x768xf32>
    %454 = arith.addf %448, %453 : vector<4x768xf32>
    %c749_i32_23 = arith.constant 749 : i32
    %455 = tpu.dynamic_rotate %255 by %c749_i32_23 dim 1 : vector<4x768xf32>, i32 -> vector<4x768xf32>
    %456 = vector.extract_strided_slice %256 {offsets = [0, 32], sizes = [4, 1], strides = [1, 1]} : vector<4x36xf32> to vector<4x1xf32>
    %457 = vector.extract_strided_slice %455 {offsets = [0, 0], sizes = [1, 768], strides = [1, 1]} : vector<4x768xf32> to vector<1x768xf32>
    %458 = vector.broadcast %456 : vector<4x1xf32> to vector<4x768xf32>
    %459 = vector.broadcast %457 : vector<1x768xf32> to vector<4x768xf32>
    %460 = arith.mulf %458, %459 : vector<4x768xf32>
    %461 = arith.addf %454, %460 : vector<4x768xf32>
    %462 = vector.extract_strided_slice %256 {offsets = [0, 33], sizes = [4, 1], strides = [1, 1]} : vector<4x36xf32> to vector<4x1xf32>
    %463 = vector.extract_strided_slice %455 {offsets = [1, 0], sizes = [1, 768], strides = [1, 1]} : vector<4x768xf32> to vector<1x768xf32>
    %464 = vector.broadcast %462 : vector<4x1xf32> to vector<4x768xf32>
    %465 = vector.broadcast %463 : vector<1x768xf32> to vector<4x768xf32>
    %466 = arith.mulf %464, %465 : vector<4x768xf32>
    %467 = arith.addf %461, %466 : vector<4x768xf32>
    %468 = vector.extract_strided_slice %256 {offsets = [0, 34], sizes = [4, 1], strides = [1, 1]} : vector<4x36xf32> to vector<4x1xf32>
    %469 = vector.extract_strided_slice %455 {offsets = [2, 0], sizes = [1, 768], strides = [1, 1]} : vector<4x768xf32> to vector<1x768xf32>
    %470 = vector.broadcast %468 : vector<4x1xf32> to vector<4x768xf32>
    %471 = vector.broadcast %469 : vector<1x768xf32> to vector<4x768xf32>
    %472 = arith.mulf %470, %471 : vector<4x768xf32>
    %473 = arith.addf %467, %472 : vector<4x768xf32>
    %474 = vector.extract_strided_slice %256 {offsets = [0, 35], sizes = [4, 1], strides = [1, 1]} : vector<4x36xf32> to vector<4x1xf32>
    %475 = vector.extract_strided_slice %455 {offsets = [3, 0], sizes = [1, 768], strides = [1, 1]} : vector<4x768xf32> to vector<1x768xf32>
    %476 = vector.broadcast %474 : vector<4x1xf32> to vector<4x768xf32>
    %477 = vector.broadcast %475 : vector<1x768xf32> to vector<4x768xf32>
    %478 = arith.mulf %476, %477 : vector<4x768xf32>
    %479 = arith.addf %473, %478 : vector<4x768xf32>
    %480 = vector.broadcast %1 : vector<1x768xf32> to vector<4x768xf32>
    %481 = arith.mulf %479, %480 : vector<4x768xf32>
    %cst_24 = arith.constant dense<0.000000e+00> : vector<4xf32>
    %482 = vector.multi_reduction <add>, %481, %cst_24 [1] : vector<4x768xf32> to vector<4xf32>
    %483 = vector.shape_cast %482 : vector<4xf32> to vector<4x1xf32>
    %484 = arith.mulf %481, %481 : vector<4x768xf32>
    %cst_25 = arith.constant dense<0.000000e+00> : vector<4xf32>
    %485 = vector.multi_reduction <add>, %484, %cst_25 [1] : vector<4x768xf32> to vector<4xf32>
    %486 = vector.shape_cast %485 : vector<4xf32> to vector<4x1xf32>
    %cst_26 = arith.constant 0.001953125 : f32
    %487 = vector.broadcast %cst_26 : f32 to vector<4x1xf32>
    %488 = arith.mulf %483, %487 : vector<4x1xf32>
    %cst_27 = arith.constant 0.001953125 : f32
    %489 = vector.broadcast %cst_27 : f32 to vector<4x1xf32>
    %490 = arith.mulf %486, %489 : vector<4x1xf32>
    %491 = arith.mulf %488, %488 : vector<4x1xf32>
    %492 = arith.subf %490, %491 : vector<4x1xf32>
    %cst_28 = arith.constant 9.99999974E-6 : f32
    %493 = vector.broadcast %cst_28 : f32 to vector<4x1xf32>
    %494 = arith.addf %492, %493 : vector<4x1xf32>
    %495 = math.rsqrt %494 : vector<4x1xf32>
    %496 = vector.broadcast %488 : vector<4x1xf32> to vector<4x768xf32>
    %497 = arith.subf %479, %496 : vector<4x768xf32>
    %498 = vector.broadcast %495 : vector<4x1xf32> to vector<4x768xf32>
    %499 = arith.mulf %497, %498 : vector<4x768xf32>
    %c0_29 = arith.constant 0 : index
    %c0_30 = arith.constant 0 : index
    %500 = vector.load %arg6[%c0_29, %c0_30] : memref<4x1xf32, #tpu.memory_space<vmem>>, vector<4x1xf32>
    %501 = vector.broadcast %500 : vector<4x1xf32> to vector<4x768xf32>
    %502 = arith.mulf %499, %501 : vector<4x768xf32>
    %c0_31 = arith.constant 0 : index
    %c0_32 = arith.constant 0 : index
    %503 = vector.load %arg7[%c0_31, %c0_32] : memref<4x1xf32, #tpu.memory_space<vmem>>, vector<4x1xf32>
    %504 = vector.broadcast %503 : vector<4x1xf32> to vector<4x768xf32>
    %505 = arith.addf %502, %504 : vector<4x768xf32>
    %506 = vector.broadcast %1 : vector<1x768xf32> to vector<4x768xf32>
    %507 = arith.mulf %505, %506 : vector<4x768xf32>
    %508 = arith.addf %507, %0 : vector<4x768xf32>
    %cst_33 = arith.constant 0.000000e+00 : f32
    %509 = vector.broadcast %cst_33 : f32 to vector<4x768xf32>
    %510 = arith.maximumf %508, %509 : vector<4x768xf32>
    %c0_34 = arith.constant 0 : index
    %c0_35 = arith.constant 0 : index
    %511 = vector.load %arg8[%c0_34, %c0_35] : memref<4x768xf32, #tpu.memory_space<vmem>>, vector<4x768xf32>
    tpu.vector_store %arg8[%c0_34, %c0_35], %510 {strides = array<i32>} : memref<4x768xf32, #tpu.memory_space<vmem>>, vector<4x768xf32>,
    return
  }
}

</mosaic_0001>

<bundles_post_ra>
// kernel: tpu_custom_call.1
= control target key start
LH: loop header
LB: loop body
LE: loop exit
PB: predicated region body
PF: predicated region fallthrough
CT: control target
= control target key end

     0   :  { %13 = vsyncpa [#allocation3], 0  ;;  %s6730_s0 = inlined_call_operand.hbm [shape: f32[4,768], index: 0, kind: input, shape index: {}]   ;;  %s6731_s1 = inlined_call_operand.vmem [shape: f32[1,768], index: 1, kind: input, shape index: {}]   ;;  %s6732_s2 = inlined_call_operand.vmem [shape: f32[4,36], index: 2, kind: input, shape index: {}]   ;;  %s6733_s3 = inlined_call_operand.vmem [shape: f32[4,36], index: 3, kind: input, shape index: {}]   ;;  %s6734_s4 = inlined_call_operand.vmem [shape: f32[4,1], index: 4, kind: input, shape index: {}]   ;;  %s6735_s5 = inlined_call_operand.vmem [shape: f32[4,1], index: 5, kind: input, shape index: {}]   ;;  %s6736_s6 = inlined_call_operand.vmem [shape: f32[4,1], index: 6, kind: input, shape index: {}]   ;;  %s6737_s7 = inlined_call_operand.vmem [shape: f32[4,1], index: 7, kind: input, shape index: {}]   ;;  %s6738_s8 = inlined_call_operand.hbm [shape: f32[4,768], index: 8, kind: output, shape index: {}]  }
   0x1   :  { %14 = vsyncpa [#allocation4], 0  ;;  %s3775_s27 = smov [#allocation2]   ;;  %s3727_s9 = scalar_lea.hbm %s6730_s0, 384 }
   0x2   :  { %s21_s28 = sshll.u32 %s3775_s27, 4  ;;  %p3728_p0 = scmp.ne.s32.totalorder %s6730_s0, %s3727_s9  ;;  %s22_s28 = int_to_ptr.vmem [resolvable:$true] %s21_s28 }
   0x3   :  { %p3731_p1 = scmp.lt.u32.totalorder %s3727_s9, %s6730_s0 }
   0x5   :  { %p3733_p2 = pnand %p3731_p1, %p3728_p0 }
   0x7   :  { %3736 = shalt.err (!%p3733_p2)
}
   0x8   :  { %s3737_s14 = scalar_lea.vmem %s22_s28, 384  ;;  %p3742_p4 = scmp.lt.s32.totalorder %s22_s28, %s22_s28 }
   0x9   :  { %p3738_p3 = scmp.ne.s32.totalorder %s22_s28, %s3737_s14  ;;  %p3743_p5 = scmp.lt.s32.totalorder %s3737_s14, %s3737_s14 }
   0xb   :  { %p3744_p6 = por %p3743_p5, %p3742_p4 }
   0xd   :  { %p3745_p7 = pnand %p3744_p6, %p3738_p3 }
   0xf   :  { %3748 = shalt.err (!%p3745_p7)
}
  0x10   :  { %24 = dma.hbm_to_vmem [thread:$0]  %s6730_s0, 384, %s22_s28, [#allocation3]  }
  0x11   :  { %3771 = dma.done.wait [#allocation3], 384  }
  0x12   :  { %3772 = vsyncadd [#allocation3], 4294966912  ;;  %v6765_v0 = vmov 3   ;;  %v6767_v1 = vmov 1   ;;  %v3880_v2 = vld [vmem:[#allocation2 + $0x8] sm:$0xff]  ;;  %v3882_v3 = vld [vmem:[#allocation2] sm:$0xff]  ;;  %v68_v41 = vlaneseq }
  0x13   :  { %3645 = vset.pattern.permute.xlu0 %v6765_v0  ;;  %3643 = vset.pattern.permute.xlu1 %v6767_v1  ;;  %s3778_s17 = smov 19   ;;  %v3890_v4 = vcombine.high %v3880_v2, %v3880_v2  ;;  %v3892_v5 = vld [vmem:[#allocation2 + $0x10] sm:$0xff]  ;;  %v3904_v7 = vcombine.high %v3882_v3, %v3882_v3  ;;  %v3913_v8 = vld [vmem:[%s6732_s2] sm:$0xf]  ;;  %v6766_v9 = vmov 2   ;;  %s3780_s19 = smov 18  }
  0x14   :  { %60 = vrot.lane.b32.xlu1 %v3880_v2, %s3778_s17  ;;  %56 = vrot.lane.b32.xlu0 %v3882_v3, %s3778_s17  ;;  %v3900_v6 = vcombine.high %v3892_v5, %v3892_v5  ;;  %v6764_v10 = vmov 4   ;;  %v6763_v11 = vmov 5   ;;  %v6761_v12 = vmov 7   ;;  %s3784_s2 = smov 17   ;;  %s3791_s20 = smov 1  }
  0x15   :  { %6813 = vst [vmem:[#allocation8_spill] sm:$0xff] %v3890_v4  ;;  %6815 = vst [vmem:[#allocation10_spill] sm:$0xff] %v3904_v7  ;;  %v6760_v13 = vmov 8   ;;  %v6762_v14 = vmov 6   ;;  %v6754_v15 = vmov 11   ;;  %v6759_v16 = vmov 9  }
  0x16   :  { %6814 = vst [vmem:[#allocation9_spill] sm:$0xff] %v3900_v6  ;;  %v6753_v17 = vmov 12   ;;  %v6751_v18 = vmov 14   ;;  %v6758_v19 = vmov 18   ;;  %v6757_v20 = vmov 10   ;;  %s3797_s21 = smov 127  }
  0x17   :  { %v6756_v21 = vmov 21   ;;  %v6752_v22 = vmov 13   ;;  %v6768_v23 = vmov 0   ;;  %v6750_v24 = vmov 15   ;;  %s3800_s22 = smov 111   ;;  %s3805_s23 = smov 110  }
  0x18   :  { %62 = vrot.lane.b32.xlu1 %v3890_v4, %s3778_s17  ;;  %64 = vrot.lane.b32.xlu0 %v3892_v5, %s3778_s17  ;;  %v6749_v25 = vmov 16   ;;  %v6748_v26 = vmov 17   ;;  %v6747_v27 = vmov 19   ;;  %v6746_v28 = vmov 20   ;;  %s3809_s24 = smov 109  }
  0x19   :  { %v6745_v29 = vmov 22   ;;  %v6744_v32 = vmov 23   ;;  %v6743_v35 = vmov 24   ;;  %v6741_v38 = vmov 25  }
  0x1a   :  { %v6740_v43 = vmov 26   ;;  %v4061_v45 = vshrl.u32 %v68_v41, 7  ;;  %v4067_v47 = vand.u32 127, %v68_v41  ;;  %v6739_v49 = vmov 27  }
  0x1b   :  { %v6742_v60 = vmov 28   ;;  %vm1802_vm8 = vcmask 1043456  }
  0x1c   :  { %66 = vrot.lane.b32.xlu1 %v3900_v6, %s3778_s17  ;;  %58 = vrot.lane.b32.xlu0 %v3904_v7, %s3778_s17  ;;  %v4073_v50 = vsub.s32 2, %v4061_v45  ;;  %v919_v52 = vsub.s32 6, %v4061_v45  ;;  %vm70_vm0 = vcmp.lt.s32.totalorder %v4067_v47, 19  ;;  %v4083_v53 = vsub.s32 0, %v4061_v45 }
  0x1d   :  { %v4088_v55 = vsub.s32 1, %v4061_v45  ;;  %v4091_v56 = vsub.s32 3, %v4061_v45  ;;  %v4096_v58 = vsub.s32 4, %v4061_v45  ;;  %vm244_vm1 = vcmp.lt.s32.totalorder %v4067_v47, 18 }
  0x1e   :  { %v916_v57 = vrot.slane %v3882_v3, %v4073_v50  ;;  %v924_v59 = vrot.slane %v3880_v2, %v4073_v50  ;;  %v920_v61 = vrot.slane %v3882_v3, %v919_v52  ;;  %v932_v62 = vrot.slane %v3892_v5, %v4073_v50 }
  0x1f   :  { %6816 = vst [vmem:[#allocation11_spill] sm:$0xff] %v4096_v58  ;;  %v989_v1 = vsub.s32 7, %v4061_v45  ;;  %vm423_vm2 = vcmp.lt.s32.totalorder %v4067_v47, 17  ;;  %vm602_vm3 = vcmp.lt.s32.totalorder %v4067_v47, 1  ;;  %vm1061_vm4 = vcmp.lt.s32.totalorder %v4067_v47, 127 }
  0x20   :  { %113 = vperm.xlu1 %3643, %v3913_v8   ;;  %193 = vperm.xlu0 %3645, %v3913_v8   ;;  %vm1240_vm5 = vcmp.lt.s32.totalorder %v4067_v47, 111  ;;  %vm1419_vm6 = vcmp.lt.s32.totalorder %v4067_v47, 110  ;;  %vm1598_vm7 = vcmp.lt.s32.totalorder %v4067_v47, 109 }
  0x21   :  { %v998_v0 = vrot.slane %v3880_v2, %v989_v1 }
  0x24   :  { %3644 = vset.pattern.permute.xlu1 %v6766_v9  ;;  %236 = vrot.lane.b32.xlu0 %v3880_v2, %s3780_s19  ;;  %v6770_v9 = vmov 30  }
  0x25   :  { %153 = vperm.xlu1 %3644, %v3913_v8   ;;  %3646 = vset.pattern.permute.xlu0 %v6764_v10 }
  0x28   :  { %240 = vrot.lane.b32.xlu0 %v3892_v5, %s3780_s19 }
  0x29   :  { %232 = vrot.lane.b32.xlu1 %v3882_v3, %s3780_s19 }
  0x2a   :  { %3647 = vset.pattern.permute.xlu1 %v6763_v11 }
  0x2c   :  { %252 = vperm.xlu0 %3646, %v3913_v8  }
  0x2d   :  { %234 = vrot.lane.b32.xlu1 %v3904_v7, %s3780_s19 }
  0x30   :  { %3649 = vset.pattern.permute.xlu0 %v6761_v12 }
  0x31   :  { %238 = vrot.lane.b32.xlu1 %v3890_v4, %s3780_s19  ;;  %372 = vperm.xlu0 %3649, %v3913_v8  }
  0x35   :  { %242 = vrot.lane.b32.xlu1 %v3900_v6, %s3780_s19  ;;  %415 = vrot.lane.b32.xlu0 %v3880_v2, %s3784_s2 }
  0x36   :  { %3650 = vset.pattern.permute.xlu0 %v6760_v13 }
  0x39   :  { %292 = vperm.xlu1 %3647, %v3913_v8   ;;  %419 = vrot.lane.b32.xlu0 %v3892_v5, %s3784_s2 }
  0x3d   :  { %3648 = vset.pattern.permute.xlu1 %v6762_v14  ;;  %431 = vperm.xlu0 %3650, %v3913_v8  }
  0x3e   :  { %332 = vperm.xlu1 %3648, %v3913_v8  }
  0x41   :  { %3653 = vset.pattern.permute.xlu0 %v6754_v15  ;;  %v862_v15 = vrot.slane %v3892_v5, %v4088_v55 }
  0x42   :  { %411 = vrot.lane.b32.xlu1 %v3882_v3, %s3784_s2  ;;  %551 = vperm.xlu0 %3653, %v3913_v8  }
  0x43   :  { %3651 = vset.pattern.permute.xlu1 %v6759_v16 }
  0x46   :  { %413 = vrot.lane.b32.xlu1 %v3904_v7, %s3784_s2  ;;  %3654 = vset.pattern.permute.xlu0 %v6753_v17 }
  0x47   :  { %610 = vperm.xlu0 %3654, %v3913_v8  }
  0x4a   :  { %417 = vrot.lane.b32.xlu1 %v3890_v4, %s3784_s2 }
  0x4b   :  { %3656 = vset.pattern.permute.xlu0 %v6751_v18 }
  0x4c   :  { %690 = vperm.xlu0 %3656, %v3913_v8  }
  0x4e   :  { %421 = vrot.lane.b32.xlu1 %v3900_v6, %s3784_s2 }
  0x50   :  { %596 = vrot.lane.b32.xlu0 %v3890_v4, %s3791_s20 }
  0x51   :  { %3660 = vset.pattern.permute.xlu0 %v6758_v19 }
  0x52   :  { %471 = vperm.xlu1 %3651, %v3913_v8  }
  0x54   :  { %598 = vrot.lane.b32.xlu0 %v3892_v5, %s3791_s20 }
  0x56   :  { %3652 = vset.pattern.permute.xlu1 %v6757_v20 }
  0x57   :  { %511 = vperm.xlu1 %3652, %v3913_v8  }
  0x58   :  { %910 = vperm.xlu0 %3660, %v3913_v8  }
  0x5b   :  { %590 = vrot.lane.b32.xlu1 %v3882_v3, %s3791_s20 }
  0x5c   :  { %3663 = vset.pattern.permute.xlu0 %v6756_v21  ;;  %3655 = vset.pattern.permute.xlu1 %v6752_v22 }
  0x5d   :  { %1109 = vperm.xlu0 %3663, %v3913_v8  }
  0x5f   :  { %592 = vrot.lane.b32.xlu1 %v3904_v7, %s3791_s20 }
  0x61   :  { %3664 = vset.pattern.permute.xlu0 %v6768_v23 }
  0x62   :  { %79 = vperm.xlu0 %3664, %v3913_v8  }
  0x63   :  { %650 = vperm.xlu1 %3655, %v3913_v8  }
  0x66   :  { %1053 = vrot.lane.b32.xlu0 %v3880_v2, %s3797_s21 }
  0x67   :  { %600 = vrot.lane.b32.xlu1 %v3900_v6, %s3791_s20 }
  0x68   :  { %3657 = vset.pattern.permute.xlu1 %v6750_v24  ;;  %v6755_v24 = vmov 29  }
  0x6a   :  { %1055 = vrot.lane.b32.xlu0 %v3890_v4, %s3797_s21 }
  0x6b   :  { %594 = vrot.lane.b32.xlu1 %v3880_v2, %s3791_s20 }
  0x6e   :  { %1057 = vrot.lane.b32.xlu0 %v3892_v5, %s3797_s21 }
  0x6f   :  { %730 = vperm.xlu1 %3657, %v3913_v8  }
  0x72   :  { %1059 = vrot.lane.b32.xlu0 %v3900_v6, %s3797_s21 }
  0x73   :  { %3658 = vset.pattern.permute.xlu1 %v6749_v25  ;;  %v796_v25 = vrot.slane %v3892_v5, %v4096_v58 }
  0x74   :  { %770 = vperm.xlu1 %3658, %v3913_v8  }
  0x76   :  { %1228 = vrot.lane.b32.xlu0 %v3882_v3, %s3800_s22 }
  0x78   :  { %3659 = vset.pattern.permute.xlu1 %v6748_v26  ;;  %v4134_v26 = vrot.slane %v932_v62, %v4073_v50  ;;  %v854_v62 = vrot.slane %v3880_v2, %v4088_v55 }
  0x79   :  { %840 = vperm.xlu1 %3659, %v3913_v8  }
  0x7a   :  { %1232 = vrot.lane.b32.xlu0 %v3880_v2, %s3800_s22  ;;  %6821 = vst [vmem:[#allocation16_spill] sm:$0xff] %v4134_v26  ;;  %v4203_v11 = vrot.slane %v854_v62, %v4088_v55 }
  0x7c   :  { %6832 = vst [vmem:[#allocation27_spill] sm:$0xff] %v4203_v11  ;;  %v4315_v11 = vrot.slane %v998_v0, %v4091_v56 }
  0x7d   :  { %3661 = vset.pattern.permute.xlu1 %v6747_v27  ;;  %v788_v27 = vrot.slane %v3880_v2, %v4096_v58 }
  0x7e   :  { %980 = vperm.xlu1 %3661, %v3913_v8   ;;  %1234 = vrot.lane.b32.xlu0 %v3890_v4, %s3800_s22  ;;  %6837 = vst [vmem:[#allocation32_spill] sm:$0xff] %v4315_v11 }
  0x82   :  { %3662 = vset.pattern.permute.xlu1 %v6746_v28  ;;  %1236 = vrot.lane.b32.xlu0 %v3892_v5, %s3800_s22  ;;  %v784_v28 = vrot.slane %v3880_v2, %v4083_v53 }
  0x83   :  { %1069 = vperm.xlu1 %3662, %v3913_v8  }
  0x84   :  { %v4173_v13 = vrot.slane %v784_v28, %v4083_v53 }
  0x86   :  { %1238 = vrot.lane.b32.xlu0 %v3900_v6, %s3800_s22  ;;  %v4020_v30 = vpop.permute.xlu1 %60  ;;  %v4022_v31 = vpop.permute.xlu0 %56  ;;  %6826 = vst [vmem:[#allocation21_spill] sm:$0xff] %v4173_v13 }
  0x87   :  { %1049 = vrot.lane.b32.xlu1 %v3882_v3, %s3797_s21 }
  0x88   :  { %3665 = vset.pattern.permute.xlu1 %v6745_v29  ;;  %v4122_v29 = vrot.slane %v924_v59, %v4073_v50  ;;  %v846_v59 = vrot.slane %v3882_v3, %v4088_v55 }
  0x8a   :  { %1407 = vrot.lane.b32.xlu0 %v3882_v3, %s3805_s23  ;;  %v4029_v33 = vpop.permute.xlu1 %62  ;;  %v4031_v34 = vpop.permute.xlu0 %64  ;;  %6819 = vst [vmem:[#allocation14_spill] sm:$0xff] %v4122_v29  ;;  %v4193_v28 = vrot.slane %v846_v59, %v4088_v55  ;;  %v994_v59 = vrot.slane %v3880_v2, %v4091_v56 }
  0x8b   :  { %1051 = vrot.lane.b32.xlu1 %v3904_v7, %s3797_s21  ;;  %v4170_v16 = vsel %vm70_vm0, %v4020_v30, %v4029_v33 }
  0x8c   :  { %6830 = vst [vmem:[#allocation25_spill] sm:$0xff] %v4193_v28  ;;  %v131_v10 = vrot.slane %v4170_v16, %v4088_v55 }
  0x8e   :  { %1411 = vrot.lane.b32.xlu0 %v3880_v2, %s3805_s23  ;;  %v4039_v36 = vpop.permute.xlu1 %66  ;;  %v4041_v37 = vpop.permute.xlu0 %58 }
  0x8f   :  { %1149 = vperm.xlu1 %3665, %v3913_v8   ;;  %v4234_v62 = vsel %vm70_vm0, %v4039_v36, %v4022_v31 }
  0x92   :  { %1413 = vrot.lane.b32.xlu0 %v3890_v4, %s3805_s23 }
  0x93   :  { %3666 = vset.pattern.permute.xlu1 %v6744_v32  ;;  %v780_v32 = vrot.slane %v3882_v3, %v4096_v58  ;;  %v199_v58 = vrot.slane %v4234_v62, %v4091_v56 }
  0x94   :  { %1189 = vperm.xlu1 %3666, %v3913_v8  }
  0x95   :  { %v4164_v19 = vrot.slane %v780_v32, %v4083_v53  ;;  %v4185_v32 = vsel %vm70_vm0, %v4029_v33, %v4031_v34 }
  0x96   :  { %1415 = vrot.lane.b32.xlu0 %v3892_v5, %s3805_s23 }
  0x97   :  { %6825 = vst [vmem:[#allocation20_spill] sm:$0xff] %v4164_v19  ;;  %v6774_v19 = vmov 31  }
  0x98   :  { %3667 = vset.pattern.permute.xlu1 %v6743_v35  ;;  %v776_v35 = vrot.slane %v3882_v3, %v4083_v53 }
  0x99   :  { %1248 = vperm.xlu1 %3667, %v3913_v8  }
  0x9a   :  { %1417 = vrot.lane.b32.xlu0 %v3900_v6, %s3805_s23  ;;  %v4161_v20 = vrot.slane %v776_v35, %v4083_v53  ;;  %v4188_v35 = vrot.slane %v796_v25, %v4083_v53  ;;  %v4209_v25 = vrot.slane %v862_v15, %v4088_v55  ;;  %v135_v15 = vrot.slane %v4185_v32, %v4088_v55 }
  0x9c   :  { %6824 = vst [vmem:[#allocation19_spill] sm:$0xff] %v4161_v20  ;;  %6829 = vst [vmem:[#allocation24_spill] sm:$0xff] %v4188_v35  ;;  %v4312_v20 = vrot.slane %v994_v59, %v4091_v56 }
  0x9d   :  { %3668 = vset.pattern.permute.xlu1 %v6741_v38  ;;  %v936_v38 = vrot.slane %v3892_v5, %v919_v52  ;;  %6834 = vst [vmem:[#allocation29_spill] sm:$0xff] %v4209_v25  ;;  %v990_v25 = vrot.slane %v3882_v3, %v989_v1 }
  0x9e   :  { %1288 = vperm.xlu1 %3668, %v3913_v8   ;;  %1586 = vrot.lane.b32.xlu0 %v3882_v3, %s3809_s24  ;;  %6836 = vst [vmem:[#allocation31_spill] sm:$0xff] %v4312_v20 }
  0x9f   :  { %v4047_v39 = vpop.permute.xlu1 %113  ;;  %v4049_v40 = vpop.permute.xlu0 %193  ;;  %v4158_v21 = vrot.slane %v936_v38, %v4073_v50  ;;  %v4333_v59 = vrot.slane %v990_v25, %v4091_v56 }
  0xa0   :  { %v4354_v25 = vmul.f32 %v199_v58, %v4049_v40 }
  0xa1   :  { %6823 = vst [vmem:[#allocation18_spill] sm:$0xff] %v4158_v21  ;;  %6841 = vst [vmem:[#allocation36_spill] sm:$0xff] %v4333_v59  ;;  %v6775_v59 = vmov 32  }
  0xa2   :  { %1230 = vrot.lane.b32.xlu1 %v3904_v7, %s3800_s22  ;;  %1590 = vrot.lane.b32.xlu0 %v3880_v2, %s3809_s24  ;;  %6842 = vst [vmem:[#allocation37_spill] sm:$0xff] %v4354_v25 }
  0xa3   :  { %v4053_v42 = vpop.permute.xlu0 %236  ;;  %3669 = vset.pattern.permute.xlu1 %v6740_v43  ;;  %v4111_v43 = vsub.s32 5, %v4061_v45  ;;  %v4257_v45 = vsel %vm70_vm0, %v4022_v31, %v4041_v37 }
  0xa4   :  { %v4058_v44 = vpop.permute.xlu1 %153  ;;  %v163_v21 = vrot.slane %v4257_v45, %v4073_v50 }
  0xa5   :  { %6817 = vst [vmem:[#allocation12_spill] sm:$0xff] %v4111_v43  ;;  %v858_v17 = vrot.slane %v3880_v2, %v4111_v43  ;;  %v866_v12 = vrot.slane %v3892_v5, %v4111_v43 }
  0xa6   :  { %1328 = vperm.xlu1 %3669, %v3913_v8   ;;  %1592 = vrot.lane.b32.xlu0 %v3890_v4, %s3809_s24  ;;  %v159_v4 = vrot.slane %v4234_v62, %v4073_v50 }
  0xa7   :  { %v4063_v46 = vpop.permute.xlu0 %240  ;;  %v4206_v33 = vrot.slane %v858_v17, %v4088_v55  ;;  %v4228_v17 = vsel %vm70_vm0, %v4031_v34, %v4039_v36  ;;  %v215_v34 = vrot.slane %v4185_v32, %v4091_v56  ;;  %v4245_v23 = vrot.slane %v866_v12, %v4088_v55 }
  0xa8   :  { %v4069_v48 = vpop.permute.xlu1 %232  ;;  %v4251_v36 = vsel %vm70_vm0, %v4041_v37, %v4020_v30  ;;  %v1002_v12 = vrot.slane %v3892_v5, %v4091_v56  ;;  %v139_v31 = vrot.slane %v4228_v17, %v4088_v55  ;;  %v1006_v30 = vrot.slane %v3892_v5, %v989_v1 }
  0xa9   :  { %6833 = vst [vmem:[#allocation28_spill] sm:$0xff] %v4206_v33  ;;  %6835 = vst [vmem:[#allocation30_spill] sm:$0xff] %v4245_v23  ;;  %v986_v23 = vrot.slane %v3882_v3, %v4091_v56  ;;  %v219_v33 = vrot.slane %v4228_v17, %v4091_v56  ;;  %v167_v35 = vrot.slane %v4251_v36, %v4073_v50 }
  0xaa   :  { %3670 = vset.pattern.permute.xlu1 %v6739_v49  ;;  %1594 = vrot.lane.b32.xlu0 %v3892_v5, %s3809_s24  ;;  %v928_v49 = vrot.slane %v3880_v2, %v919_v52  ;;  %v792_v52 = vrot.slane %v3892_v5, %v4083_v53  ;;  %v127_v5 = vrot.slane %v4251_v36, %v4088_v55 }
  0xab   :  { %1368 = vperm.xlu1 %3670, %v3913_v8   ;;  %v4076_v51 = vpop.permute.xlu0 %252  ;;  %v203_v1 = vrot.slane %v4257_v45, %v4091_v56 }
  0xac   :  { %v4085_v54 = vpop.permute.xlu1 %234  ;;  %v4179_v38 = vrot.slane %v792_v52, %v4083_v53  ;;  %v4336_v0 = vmul.f32 %v127_v5, %v4047_v39 }
  0xae   :  { %6828 = vst [vmem:[#allocation23_spill] sm:$0xff] %v4179_v38  ;;  %v4318_v38 = vrot.slane %v1002_v12, %v4091_v56  ;;  %v4339_v12 = vmul.f32 %v131_v10, %v4047_v39  ;;  %v4363_v10 = vsel %vm244_vm1, %v4085_v54, %v4053_v42 }
  0xaf   :  { %3671 = vset.pattern.permute.xlu1 %v6742_v60  ;;  %v4115_v60 = vrot.slane %v916_v57, %v4073_v50  ;;  %v4131_v57 = vrot.slane %v920_v61, %v4073_v50  ;;  %v850_v61 = vrot.slane %v3882_v3, %v4111_v43  ;;  %v179_v43 = vrot.slane %v4228_v17, %v4073_v50 }
  0xb0   :  { %1427 = vperm.xlu1 %3671, %v3913_v8   ;;  %v4105_v63 = vpop.permute.xlu1 %238  ;;  %v4107_v41 = vpop.permute.xlu0 %372  ;;  %v207_v3 = vrot.slane %v4251_v36, %v4091_v56  ;;  %6838 = vst [vmem:[#allocation33_spill] sm:$0xff] %v4318_v38  ;;  %v386_v38 = vrot.slane %v4363_v10, %v4091_v56  ;;  %v346_v29 = vrot.slane %v4363_v10, %v4073_v50 }
  0xb1   :  { %6818 = vst [vmem:[#allocation13_spill] sm:$0xff] %v4115_v60  ;;  %6820 = vst [vmem:[#allocation15_spill] sm:$0xff] %v4131_v57  ;;  %v4200_v52 = vrot.slane %v850_v61, %v4088_v55  ;;  %v119_v61 = vrot.slane %v4234_v62, %v4088_v55  ;;  %v6776_v60 = vmov 33  }
  0xb2   :  { %v4368_v5 = vmul.f32 %v207_v3, %v4049_v40  ;;  %v4386_v3 = vmul.f32 %v159_v4, %v4058_v44  ;;  %v6850_v4 = vrot.slane %v4185_v32, %v4073_v50 }
  0xb3   :  { %6831 = vst [vmem:[#allocation26_spill] sm:$0xff] %v4200_v52  ;;  %v123_v52 = vrot.slane %v4257_v45, %v4088_v55 }
  0xb4   :  { %3672 = vset.pattern.permute.xlu1 %v6755_v24  ;;  %v4141_v18 = vpop.permute.xlu1 %242  ;;  %v4143_v22 = vpop.permute.xlu0 %415  ;;  %v4155_v24 = vrot.slane %v928_v49, %v4073_v50  ;;  %v4176_v49 = vrot.slane %v788_v27, %v4083_v53  ;;  %6844 = vst [vmem:[#allocation39_spill] sm:$0xff] %v4368_v5 }
  0xb5   :  { %1467 = vperm.xlu1 %3672, %v3913_v8   ;;  %v4327_v26 = vmul.f32 %v123_v52, %v4047_v39  ;;  %v4348_v52 = vsel %vm244_vm1, %v4069_v48, %v4085_v54 }
  0xb6   :  { %6822 = vst [vmem:[#allocation17_spill] sm:$0xff] %v4155_v24  ;;  %6827 = vst [vmem:[#allocation22_spill] sm:$0xff] %v4176_v49  ;;  %v4321_v49 = vrot.slane %v1006_v30, %v4091_v56  ;;  %v4330_v24 = vrot.slane %v986_v23, %v4091_v56  ;;  %v4342_v30 = vmul.f32 %v135_v15, %v4047_v39 }
  0xb7   :  { %v4351_v23 = vmul.f32 %v139_v31, %v4047_v39  ;;  %v4377_v31 = vmul.f32 %v215_v34, %v4049_v40  ;;  %v262_v34 = vrot.slane %v4348_v52, %v4083_v53  ;;  %v342_v20 = vrot.slane %v4348_v52, %v4073_v50 }
  0xb8   :  { %v4195_v27 = vpop.permute.xlu1 %292  ;;  %v4197_v14 = vpop.permute.xlu0 %419  ;;  %6839 = vst [vmem:[#allocation34_spill] sm:$0xff] %v4321_v49  ;;  %6840 = vst [vmem:[#allocation35_spill] sm:$0xff] %v4330_v24  ;;  %v4389_v24 = vmul.f32 %v163_v21, %v4058_v44  ;;  %v4408_v21 = vmul.f32 %v6850_v4, %v4058_v44  ;;  %v4419_v49 = vmul.f32 %v179_v43, %v4058_v44 }
  0xb9   :  { %1409 = vrot.lane.b32.xlu1 %v3904_v7, %s3805_s23  ;;  %6847 = vst [vmem:[#allocation41_spill] sm:$0xff] %v4377_v31  ;;  %v4429_v4 = vsel %vm244_vm1, %v4105_v63, %v4063_v46  ;;  %v306_v43 = vrot.slane %v4363_v10, %v4088_v55  ;;  %v4452_v57 = vmul.f32 %v262_v34, %v4076_v51 }
  0xba   :  { %3673 = vset.pattern.permute.xlu1 %v6770_v9  ;;  %6851 = vst [vmem:[#allocation43_spill] sm:$0xff] %v4408_v21  ;;  %6852 = vst [vmem:[#allocation44_spill] sm:$0xff] %v4419_v49  ;;  %v4473_v34 = vmul.f32 %v386_v38, %v4107_v41  ;;  %v314_v5 = vrot.slane %v4429_v4, %v4088_v55 }
  0xbb   :  { %6853 = vst [vmem:[#allocation45_spill] sm:$0xff] %v4452_v57 }
  0xbc   :  { %v4259_v9 = vpop.permute.xlu0 %431  ;;  %6856 = vst [vmem:[#allocation48_spill] sm:$0xff] %v4473_v34 }
  0xbd   :  { %1507 = vperm.xlu1 %3673, %v3913_v8   ;;  %v4274_v37 = vpop.permute.xlu1 %332 }
  0xc1   :  { %3674 = vset.pattern.permute.xlu1 %v6774_v19  ;;  %v4306_v28 = vpop.permute.xlu1 %411  ;;  %v4308_v2 = vpop.permute.xlu0 %551  ;;  %v4324_v19 = vmul.f32 %v119_v61, %v4047_v39  ;;  %v4357_v61 = vmul.f32 %v203_v1, %v4049_v40  ;;  %v6845_v39 = vrot.slane %v4170_v16, %v4091_v56  ;;  %v4380_v1 = vmul.f32 %v219_v33, %v4049_v40 }
  0xc2   :  { %1547 = vperm.xlu1 %3674, %v3913_v8  }
  0xc3   :  { %6843 = vst [vmem:[#allocation38_spill] sm:$0xff] %v4357_v61  ;;  %v4374_v58 = vmul.f32 %v6845_v39, %v4049_v40  ;;  %6848 = vst [vmem:[#allocation42_spill] sm:$0xff] %v4380_v1  ;;  %v4392_v39 = vmul.f32 %v167_v35, %v4058_v44  ;;  %v6849_v40 = vrot.slane %v4170_v16, %v4073_v50 }
  0xc4   :  { %v266_v35 = vrot.slane %v4363_v10, %v4083_v53 }
  0xc5   :  { %v4365_v15 = vpop.permute.xlu1 %413  ;;  %6846 = vst [vmem:[#allocation40_spill] sm:$0xff] %v4374_v58  ;;  %v4402_v33 = vmul.f32 %v6849_v40, %v4058_v44  ;;  %v382_v40 = vrot.slane %v4348_v52, %v4091_v56  ;;  %v4441_v44 = vsel %vm244_vm1, %v4063_v46, %v4141_v18 }
  0xc6   :  { %3675 = vset.pattern.permute.xlu1 %v6775_v59  ;;  %v4383_v54 = vpop.permute.xlu0 %610  ;;  %v4416_v59 = vsel %vm244_vm1, %v4053_v42, %v4105_v63  ;;  %v302_v42 = vrot.slane %v4348_v52, %v4088_v55  ;;  %v250_v63 = vsel %vm244_vm1, %v4141_v18, %v4069_v48  ;;  %v4460_v58 = vmul.f32 %v266_v35, %v4076_v51 }
  0xc7   :  { %1606 = vperm.xlu1 %3675, %v3913_v8   ;;  %v270_v13 = vrot.slane %v4416_v59, %v4083_v53  ;;  %v274_v18 = vrot.slane %v4429_v4, %v4083_v53  ;;  %v390_v48 = vrot.slane %v4416_v59, %v4091_v56  ;;  %v394_v52 = vrot.slane %v4429_v4, %v4091_v56 }
  0xc8   :  { %6854 = vst [vmem:[#allocation46_spill] sm:$0xff] %v4460_v58  ;;  %v4470_v10 = vmul.f32 %v382_v40, %v4107_v41  ;;  %v258_v35 = vrot.slane %v250_v63, %v4083_v53  ;;  %v310_v57 = vrot.slane %v4416_v59, %v4088_v55  ;;  %v378_v1 = vrot.slane %v250_v63, %v4091_v56 }
  0xc9   :  { %v4431_v11 = vpop.permute.xlu1 %417  ;;  %v398_v40 = vrot.slane %v4441_v44, %v4091_v56  ;;  %v4486_v38 = vmul.f32 %v270_v13, %v4076_v51  ;;  %v350_v34 = vrot.slane %v4416_v59, %v4073_v50  ;;  %v298_v31 = vrot.slane %v250_v63, %v4088_v55 }
  0xca   :  { %6855 = vst [vmem:[#allocation47_spill] sm:$0xff] %v4470_v10  ;;  %v354_v10 = vrot.slane %v4429_v4, %v4073_v50  ;;  %v4496_v25 = vmul.f32 %v274_v18, %v4076_v51  ;;  %v4499_v49 = vmul.f32 %v390_v48, %v4107_v41  ;;  %v4502_v21 = vmul.f32 %v394_v52, %v4107_v41 }
  0xcb   :  { %3676 = vset.pattern.permute.xlu1 %v6776_v60  ;;  %v4457_v46 = vpop.permute.xlu0 %690  ;;  %v278_v60 = vrot.slane %v4441_v44, %v4083_v53  ;;  %6857 = vst [vmem:[#allocation49_spill] sm:$0xff] %v4486_v38  ;;  %v318_v13 = vrot.slane %v4441_v44, %v4088_v55  ;;  %v4509_v59 = vmul.f32 %v258_v35, %v4076_v51  ;;  %v6778_v52 = vmov 34  }
  0xcc   :  { %1646 = vperm.xlu1 %3676, %v3913_v8   ;;  %6858 = vst [vmem:[#allocation50_spill] sm:$0xff] %v4499_v49  ;;  %6859 = vst [vmem:[#allocation51_spill] sm:$0xff] %v4502_v21  ;;  %v338_v18 = vrot.slane %v250_v63, %v4073_v50  ;;  %v358_v48 = vrot.slane %v4441_v44, %v4073_v50  ;;  %v4521_v21 = vmul.f32 %v378_v1, %v4107_v41 }
  0xcd   :  { %v422_v58 = vpop.permute.xlu1 %421  ;;  %v4512_v4 = vmul.f32 %v278_v60, %v4076_v51  ;;  %v4530_v51 = vsel %vm423_vm2, %v4365_v15, %v4143_v22  ;;  %v4536_v60 = vsel %vm423_vm2, %v4306_v28, %v4365_v15  ;;  %v4539_v44 = vmul.f32 %v298_v31, %v4195_v27 }
  0xce   :  { %6860 = vst [vmem:[#allocation52_spill] sm:$0xff] %v4521_v21  ;;  %v4542_v1 = vmul.f32 %v302_v42, %v4195_v27  ;;  %v4548_v63 = vmul.f32 %v310_v57, %v4195_v27  ;;  %v4556_v15 = vmul.f32 %v318_v13, %v4195_v27  ;;  %v4559_v31 = vmul.f32 %v338_v18, %v4274_v37 }
  0xcf   :  { %v4493_v61 = vpop.permute.xlu0 %596  ;;  %v4562_v42 = vmul.f32 %v342_v20, %v4274_v37  ;;  %v4567_v57 = vmul.f32 %v346_v29, %v4274_v37  ;;  %v561_v20 = vrot.slane %v4536_v60, %v4091_v56  ;;  %v565_v13 = vrot.slane %v4530_v51, %v4091_v56 }
  0xd0   :  { %1588 = vrot.lane.b32.xlu1 %v3904_v7, %s3809_s24  ;;  %v4524_v7 = vmul.f32 %v398_v40, %v4107_v41  ;;  %v4545_v41 = vmul.f32 %v306_v43, %v4195_v27  ;;  %6863 = vst [vmem:[#allocation55_spill] sm:$0xff] %v4548_v63  ;;  %v4553_v40 = vmul.f32 %v314_v5, %v4195_v27  ;;  %6864 = vst [vmem:[#allocation56_spill] sm:$0xff] %v4559_v31 }
  0xd1   :  { %v4517_v49 = vpop.permute.xlu1 %471  ;;  %3677 = vset.pattern.permute.xlu1 %v6778_v52  ;;  %6865 = vst [vmem:[#allocation57_spill] sm:$0xff] %v4562_v42  ;;  %6866 = vst [vmem:[#allocation58_spill] sm:$0xff] %v4567_v57  ;;  %v4570_v43 = vmul.f32 %v350_v34, %v4274_v37  ;;  %v441_v27 = vrot.slane %v4536_v60, %v4083_v53  ;;  %v445_v5 = vrot.slane %v4530_v51, %v4083_v53 }
  0xd2   :  { %6861 = vst [vmem:[#allocation53_spill] sm:$0xff] %v4524_v7  ;;  %6862 = vst [vmem:[#allocation54_spill] sm:$0xff] %v4545_v41  ;;  %v4584_v29 = vsel %vm423_vm2, %v4431_v11, %v4197_v14  ;;  %v4590_v34 = vsel %vm423_vm2, %v4143_v22, %v4431_v11  ;;  %v4595_v52 = vmul.f32 %v354_v10, %v4274_v37 }
  0xd3   :  { %v4550_v35 = vpop.permute.xlu0 %598  ;;  %6867 = vst [vmem:[#allocation59_spill] sm:$0xff] %v4570_v43  ;;  %v4598_v43 = vmul.f32 %v358_v48, %v4274_v37  ;;  %v481_v57 = vrot.slane %v4536_v60, %v4088_v55  ;;  %v485_v63 = vrot.slane %v4530_v51, %v4088_v55  ;;  %v4613_v10 = vsel %vm423_vm2, %v4197_v14, %v422_v58 }
  0xd4   :  { %1686 = vperm.xlu1 %3677, %v3913_v8   ;;  %6868 = vst [vmem:[#allocation60_spill] sm:$0xff] %v4595_v52  ;;  %v4618_v37 = vsel %vm423_vm2, %v422_v58, %v4306_v28  ;;  %v6779_v48 = vmov 35   ;;  %v4622_v7 = vmul.f32 %v441_v27, %v4259_v9  ;;  %v4625_v11 = vmul.f32 %v445_v5, %v4259_v9 }
  0xd5   :  { %6869 = vst [vmem:[#allocation61_spill] sm:$0xff] %v4598_v43  ;;  %v449_v22 = vrot.slane %v4590_v34, %v4083_v53  ;;  %v453_v14 = vrot.slane %v4584_v29, %v4083_v53  ;;  %v4633_v28 = vmul.f32 %v561_v20, %v4308_v2  ;;  %v569_v58 = vrot.slane %v4590_v34, %v4091_v56 }
  0xd6   :  { %v4592_v18 = vpop.permute.xlu1 %511  ;;  %6870 = vst [vmem:[#allocation62_spill] sm:$0xff] %v4622_v7  ;;  %6871 = vst [vmem:[#allocation63_spill] sm:$0xff] %v4625_v11  ;;  %v573_v27 = vrot.slane %v4584_v29, %v4091_v56  ;;  %v4642_v5 = vmul.f32 %v565_v13, %v4308_v2  ;;  %v489_v11 = vrot.slane %v4590_v34, %v4088_v55 }
  0xd7   :  { %v4604_v41 = vpop.permute.xlu0 %910  ;;  %6872 = vst [vmem:[#allocation64_spill] sm:$0xff] %v4633_v28  ;;  %v457_v20 = vrot.slane %v4613_v10, %v4083_v53  ;;  %v557_v28 = vrot.slane %v4618_v37, %v4091_v56  ;;  %v493_v7 = vrot.slane %v4584_v29, %v4088_v55  ;;  %v529_v21 = vrot.slane %v4590_v34, %v4073_v50 }
  0xd8   :  { %3678 = vset.pattern.permute.xlu1 %v6779_v48  ;;  %6873 = vst [vmem:[#allocation65_spill] sm:$0xff] %v4642_v5  ;;  %v477_v13 = vrot.slane %v4618_v37, %v4088_v55  ;;  %v577_v5 = vrot.slane %v4613_v10, %v4091_v56  ;;  %v4663_v52 = vmul.f32 %v449_v22, %v4259_v9 }
  0xd9   :  { %1726 = vperm.xlu1 %3678, %v3913_v8   ;;  %v437_v8 = vrot.slane %v4618_v37, %v4083_v53  ;;  %v4666_v31 = vmul.f32 %v453_v14, %v4259_v9  ;;  %v533_v42 = vrot.slane %v4584_v29, %v4073_v50  ;;  %v497_v34 = vrot.slane %v4613_v10, %v4088_v55 }
  0xda   :  { %v4639_v48 = vpop.permute.xlu1 %590  ;;  %6875 = vst [vmem:[#allocation67_spill] sm:$0xff] %v4663_v52  ;;  %v4675_v38 = vmul.f32 %v569_v58, %v4308_v2  ;;  %v517_v22 = vrot.slane %v4618_v37, %v4073_v50  ;;  %v537_v14 = vrot.slane %v4613_v10, %v4073_v50  ;;  %v6878_v29 = vmov 0  }
  0xdb   :  { %6876 = vst [vmem:[#allocation68_spill] sm:$0xff] %v4666_v31  ;;  %v4688_v31 = vmul.f32 %v437_v8, %v4259_v9  ;;  %v4694_v58 = vmul.f32 %v557_v28, %v4308_v2  ;;  %v4700_v37 = vsel %vm602_vm3, %v4493_v61, %v4550_v35  ;;  %v4703_v10 = vmul.f32 %v577_v5, %v4308_v2 }
  0xdc   :  { %v4660_v43 = vpop.permute.xlu0 %1109  ;;  %6877 = vst [vmem:[#allocation69_spill] sm:$0xff] %v4675_v38  ;;  %v4709_v8 = vmul.f32 %v481_v57, %v4517_v49  ;;  %v4714_v28 = vmul.f32 %v485_v63, %v4517_v49  ;;  %v6883_v63 = vrot.slane %v4234_v62, %v4083_v53  ;;  %v6886_v57 = vrot.slane %v4170_v16, %v4083_v53 }
  0xdd   :  { %6874 = vst [vmem:[#allocation66_spill] sm:$0xff] %v4660_v43  ;;  %1596 = vrot.lane.b32.xlu1 %v3900_v6, %s3809_s24  ;;  %v4678_v43 = vmul.f32 %v573_v27, %v4308_v2  ;;  %v4691_v6 = vmul.f32 %v457_v20, %v4259_v9  ;;  %6879 = vst [vmem:[#allocation70_spill] sm:$0xff] %v4694_v58  ;;  %v4706_v27 = vmul.f32 %v477_v13, %v4517_v49 }
  0xde   :  { %v4684_v52 = vpop.permute.xlu1 %592  ;;  %3679 = vset.pattern.permute.xlu1 %v6878_v29  ;;  %6880 = vst [vmem:[#allocation71_spill] sm:$0xff] %v4703_v10  ;;  %v632_v9 = vrot.slane %v4700_v37, %v4083_v53  ;;  %6881 = vst [vmem:[#allocation72_spill] sm:$0xff] %v4714_v28  ;;  %v4717_v20 = vmul.f32 %v489_v11, %v4517_v49  ;;  %v4720_v29 = vmul.f32 %v493_v7, %v4517_v49 }
  0xdf   :  { %v4723_v2 = vmul.f32 %v497_v34, %v4517_v49  ;;  %v712_v13 = vrot.slane %v4700_v37, %v4073_v50  ;;  %v6884_v11 = vrot.slane %v4257_v45, %v4083_v53  ;;  %v6885_v49 = vrot.slane %v4251_v36, %v4083_v53 }
  0xe0   :  { %6882 = vst [vmem:[#allocation73_spill] sm:$0xff] %v4717_v20  ;;  %v6887_v10 = vrot.slane %v4185_v32, %v4083_v53  ;;  %v6888_v62 = vrot.slane %v4228_v17, %v4083_v53  ;;  %v4750_v45 = vmul.f32 %v632_v9, %v4383_v54 }
  0xe1   :  { %v80_v5 = vpop.permute.xlu0 %79  ;;  %v4763_v9 = vmul.f32 %v712_v13, %v4457_v46 }
  0xe2   :  { %v106_v38 = vmul.f32 %v6883_v63, %v80_v5  ;;  %v107_v20 = vmul.f32 %v6884_v11, %v80_v5  ;;  %v4735_v7 = vpop.permute.xlu1 %650  ;;  %v108_v34 = vmul.f32 %v6885_v49, %v80_v5  ;;  %v109_v28 = vmul.f32 %v6886_v57, %v80_v5 }
  0xe3   :  { %v110_v58 = vmul.f32 %v6887_v10, %v80_v5  ;;  %v111_v63 = vmul.f32 %v6888_v62, %v80_v5  ;;  %v752_v11 = vrot.slane %v4700_v37, %v4091_v56  ;;  %v4766_v5 = vmul.f32 %v517_v22, %v4592_v18 }
  0xe4   :  { %v146_v36 = vadd.f32 %v4324_v19, %v106_v38  ;;  %v147_v49 = vadd.f32 %v4327_v26, %v107_v20  ;;  %v148_v16 = vadd.f32 %v4336_v0, %v108_v34  ;;  %v149_v57 = vadd.f32 %v4339_v12, %v109_v28 }
  0xe5   :  { %v150_v32 = vadd.f32 %v4342_v30, %v110_v58  ;;  %v151_v10 = vadd.f32 %v4351_v23, %v111_v63  ;;  %v4760_v17 = vpop.permute.xlu0 %1053  ;;  %v6889_v30 = vld [vmem:[#allocation43_spill] sm:$0xff]  ;;  %v6890_v23 = vld [vmem:[#allocation44_spill] sm:$0xff]  ;;  %v6891_v20 = vrot.slane %v4536_v60, %v4073_v50  ;;  %v4793_v63 = vsel %vm602_vm3, %v4639_v48, %v4684_v52  ;;  %v6895_v60 = vld [vmem:[#allocation41_spill] sm:$0xff] }
  0xe6   :  { %v186_v19 = vadd.f32 %v4386_v3, %v146_v36  ;;  %v187_v26 = vadd.f32 %v4389_v24, %v147_v49  ;;  %v601_v38 = vpop.permute.xlu1 %600  ;;  %v188_v0 = vadd.f32 %v4392_v39, %v148_v16  ;;  %v189_v12 = vadd.f32 %v4402_v33, %v149_v57  ;;  %v6893_v24 = vld [vmem:[#allocation37_spill] sm:$0xff]  ;;  %v6894_v39 = vld [vmem:[#allocation38_spill] sm:$0xff] }
  0xe7   :  { %v190_v58 = vadd.f32 %v6889_v30, %v150_v32  ;;  %v191_v28 = vadd.f32 %v6890_v23, %v151_v10  ;;  %v539_v13 = vmul.f32 %v6891_v20, %v4592_v18  ;;  %v6892_v3 = vrot.slane %v4530_v51, %v4073_v50  ;;  %v6896_v49 = vld [vmem:[#allocation42_spill] sm:$0xff]  ;;  %v6897_v51 = vld [vmem:[#allocation39_spill] sm:$0xff]  ;;  %v6898_v32 = vld [vmem:[#allocation40_spill] sm:$0xff] }
  0xe8   :  { %v226_v34 = vadd.f32 %v6893_v24, %v186_v19  ;;  %v227_v62 = vadd.f32 %v6894_v39, %v187_v26  ;;  %v4787_v33 = vmul.f32 %v529_v21, %v4592_v18  ;;  %v228_v57 = vadd.f32 %v6897_v51, %v188_v0  ;;  %v6899_v26 = vld [vmem:[#allocation45_spill] sm:$0xff]  ;;  %v6905_v51 = vld [vmem:[#allocation60_spill] sm:$0xff] }
  0xe9   :  { %v4782_v22 = vmul.f32 %v6892_v3, %v4592_v18  ;;  %v230_v36 = vadd.f32 %v6895_v60, %v190_v58  ;;  %v231_v16 = vadd.f32 %v6896_v49, %v191_v28  ;;  %v229_v10 = vadd.f32 %v6898_v32, %v189_v12  ;;  %v4805_v58 = vpop.permute.xlu0 %1055  ;;  %v6900_v28 = vld [vmem:[#allocation13_spill] sm:$0xff]  ;;  %v6904_v49 = vld [vmem:[#allocation56_spill] sm:$0xff] }
  0xea   :  { %v285_v19 = vadd.f32 %v4509_v59, %v226_v34  ;;  %v286_v30 = vadd.f32 %v6899_v26, %v227_v62  ;;  %v595_v21 = vpop.permute.xlu1 %594  ;;  %v542_v23 = vmul.f32 %v533_v42, %v4592_v18  ;;  %v543_v20 = vmul.f32 %v537_v14, %v4592_v18  ;;  %v6901_v14 = vld [vmem:[#allocation46_spill] sm:$0xff]  ;;  %v6902_v62 = vld [vmem:[#allocation49_spill] sm:$0xff]  ;;  %v6907_v26 = vld [vmem:[#allocation47_spill] sm:$0xff] }
  0xeb   :  { %v289_v3 = vadd.f32 %v4496_v25, %v230_v36  ;;  %v290_v24 = vadd.f32 %v4512_v4, %v231_v16  ;;  %v4809_v0 = vmul.f32 %v6900_v28, %v4604_v41  ;;  %v620_v59 = vrot.slane %v4793_v63, %v4083_v53  ;;  %v6903_v36 = vld [vmem:[#allocation57_spill] sm:$0xff]  ;;  %v6909_v28 = vld [vmem:[#allocation51_spill] sm:$0xff] }
  0xec   :  { %v326_v12 = vadd.f32 %v4542_v1, %v286_v30  ;;  %v325_v34 = vadd.f32 %v4539_v44, %v285_v19  ;;  %v660_v42 = vrot.slane %v4793_v63, %v4088_v55  ;;  %v4822_v18 = vsel %vm602_vm3, %v601_v38, %v4639_v48  ;;  %v6906_v48 = vld [vmem:[#allocation61_spill] sm:$0xff]  ;;  %v6908_v30 = vld [vmem:[#allocation52_spill] sm:$0xff] }
  0xed   :  { %v329_v25 = vadd.f32 %v4553_v40, %v289_v3  ;;  %v330_v4 = vadd.f32 %v4556_v15, %v290_v24  ;;  %v287_v39 = vadd.f32 %v6901_v14, %v228_v57  ;;  %v288_v60 = vadd.f32 %v6902_v62, %v229_v10  ;;  %v6910_v14 = vld [vmem:[#allocation53_spill] sm:$0xff]  ;;  %v6911_v62 = vld [vmem:[#allocation62_spill] sm:$0xff] }
  0xee   :  { %v366_v1 = vadd.f32 %v6903_v36, %v326_v12  ;;  %v365_v44 = vadd.f32 %v6904_v49, %v325_v34  ;;  %v4828_v16 = vpop.permute.xlu1 %730  ;;  %v700_v40 = vrot.slane %v4793_v63, %v4073_v50  ;;  %v740_v15 = vrot.slane %v4793_v63, %v4091_v56  ;;  %v6912_v49 = vld [vmem:[#allocation54_spill] sm:$0xff] }
  0xef   :  { %v369_v32 = vadd.f32 %v6905_v51, %v329_v25  ;;  %v370_v19 = vadd.f32 %v6906_v48, %v330_v4  ;;  %v638_v57 = vmul.f32 %v620_v59, %v4383_v54  ;;  %v4842_v24 = vsel %vm602_vm3, %v4550_v35, %v601_v38  ;;  %v4851_v59 = vpop.permute.xlu0 %1057  ;;  %v6913_v35 = vld [vmem:[#allocation55_spill] sm:$0xff]  ;;  %v6914_v51 = vld [vmem:[#allocation68_spill] sm:$0xff] }
  0xf0   :  { %v406_v10 = vadd.f32 %v6907_v26, %v366_v1  ;;  %v405_v3 = vadd.f32 %v6908_v30, %v365_v44  ;;  %v4846_v34 = vmul.f32 %v660_v42, %v4735_v7  ;;  %v616_v4 = vrot.slane %v4822_v18, %v4083_v53 }
  0xf1   :  { %v409_v12 = vadd.f32 %v6909_v28, %v369_v32  ;;  %v410_v25 = vadd.f32 %v6910_v14, %v370_v19  ;;  %v327_v44 = vadd.f32 %v6912_v49, %v287_v39  ;;  %v328_v38 = vadd.f32 %v6913_v35, %v288_v60 }
  0xf2   :  { %v465_v36 = vadd.f32 %v6911_v62, %v406_v10  ;;  %v464_v1 = vadd.f32 %v4688_v31, %v405_v3  ;;  %v6915_v42 = vrot.slane %v4700_v37, %v4088_v55  ;;  %v636_v26 = vrot.slane %v4842_v24, %v4083_v53  ;;  %v6916_v10 = vld [vmem:[#allocation58_spill] sm:$0xff]  ;;  %v6917_v3 = vld [vmem:[#allocation59_spill] sm:$0xff] }
  0xf3   :  { %v468_v32 = vadd.f32 %v6914_v51, %v409_v12  ;;  %v469_v19 = vadd.f32 %v4691_v6, %v410_v25  ;;  %v4865_v30 = vpop.permute.xlu1 %770  ;;  %v367_v60 = vadd.f32 %v6916_v10, %v327_v44  ;;  %v368_v28 = vadd.f32 %v6917_v3, %v328_v38  ;;  %v6921_v38 = vld [vmem:[#allocation67_spill] sm:$0xff]  ;;  %v6925_v10 = vld [vmem:[#allocation72_spill] sm:$0xff]  ;;  %v6926_v3 = vld [vmem:[#allocation73_spill] sm:$0xff] }
  0xf4   :  { %v681_v48 = vmul.f32 %v6915_v42, %v4735_v7  ;;  %v505_v31 = vadd.f32 %v4709_v8, %v465_v36  ;;  %v504_v39 = vadd.f32 %v4706_v27, %v464_v1  ;;  %v637_v62 = vmul.f32 %v616_v4, %v4383_v54  ;;  %v6918_v36 = vld [vmem:[#allocation48_spill] sm:$0xff]  ;;  %v6919_v1 = vld [vmem:[#allocation50_spill] sm:$0xff]  ;;  %v4888_v4 = vpop.permute.xlu0 %1059 }
  0xf5   :  { %v508_v12 = vadd.f32 %v4720_v29, %v468_v32  ;;  %v509_v14 = vadd.f32 %v4723_v2, %v469_v19  ;;  %v4877_v6 = vsel %vm602_vm3, %v4684_v52, %v595_v21  ;;  %v407_v27 = vadd.f32 %v6918_v36, %v367_v60  ;;  %v6922_v32 = vld [vmem:[#allocation64_spill] sm:$0xff] }
  0xf6   :  { %v545_v25 = vadd.f32 %v539_v13, %v505_v31  ;;  %v544_v8 = vadd.f32 %v4766_v5, %v504_v39  ;;  %v408_v49 = vadd.f32 %v6919_v1, %v368_v28  ;;  %v642_v29 = vmul.f32 %v636_v26, %v4383_v54  ;;  %v6920_v13 = vld [vmem:[#allocation63_spill] sm:$0xff] }
  0xf7   :  { %v548_v44 = vadd.f32 %v542_v23, %v508_v12  ;;  %v549_v35 = vadd.f32 %v543_v20, %v509_v14  ;;  %v4886_v2 = vsel %vm602_vm3, %v595_v21, %v4493_v61  ;;  %v656_v52 = vrot.slane %v4822_v18, %v4088_v55  ;;  %v6923_v61 = vld [vmem:[#allocation70_spill] sm:$0xff]  ;;  %v6924_v26 = vld [vmem:[#allocation71_spill] sm:$0xff] }
  0xf8   :  { %v466_v5 = vadd.f32 %v6920_v13, %v407_v27  ;;  %v467_v51 = vadd.f32 %v6921_v38, %v408_v49  ;;  %v624_v23 = vrot.slane %v4877_v6, %v4083_v53  ;;  %v4896_v20 = vpop.permute.xlu1 %840  ;;  %v585_v42 = vadd.f32 %v6922_v32, %v545_v25  ;;  %v4916_v36 = vpop.permute.xlu0 %1228  ;;  %v6927_v32 = vld [vmem:[#allocation65_spill] sm:$0xff] }
  0xf9   :  { %v588_v19 = vadd.f32 %v4678_v43, %v548_v44  ;;  %v584_v21 = vadd.f32 %v6923_v61, %v544_v8  ;;  %v589_v31 = vadd.f32 %v6924_v26, %v549_v35  ;;  %v676_v39 = vrot.slane %v4842_v24, %v4088_v55  ;;  %v6928_v26 = vld [vmem:[#allocation69_spill] sm:$0xff] }
  0xfa   :  { %v506_v60 = vadd.f32 %v6925_v10, %v466_v5  ;;  %v507_v28 = vadd.f32 %v6926_v3, %v467_v51  ;;  %v628_v12 = vrot.slane %v4886_v2, %v4083_v53  ;;  %v696_v14 = vrot.slane %v4822_v18, %v4073_v50 }
  0xfb   :  { %v716_v43 = vrot.slane %v4842_v24, %v4073_v50  ;;  %v664_v25 = vrot.slane %v4877_v6, %v4088_v55  ;;  %v668_v8 = vrot.slane %v4886_v2, %v4088_v55  ;;  %v647_v27 = vadd.f32 %v4750_v45, %v588_v19 }
  0xfc   :  { %v546_v1 = vadd.f32 %v4782_v22, %v506_v60  ;;  %v547_v49 = vadd.f32 %v4787_v33, %v507_v28  ;;  %v639_v44 = vmul.f32 %v624_v23, %v4383_v54  ;;  %v644_v35 = vadd.f32 %v638_v57, %v585_v42  ;;  %v4940_v3 = vpop.permute.xlu0 %1232 }
  0xfd   :  { %v643_v13 = vadd.f32 %v637_v62, %v584_v21  ;;  %v648_v5 = vadd.f32 %v642_v29, %v589_v31  ;;  %v704_v38 = vrot.slane %v4877_v6, %v4073_v50  ;;  %v4924_v51 = vpop.permute.xlu1 %980  ;;  %v640_v45 = vmul.f32 %v628_v12, %v4383_v54 }
  0xfe   :  { %v586_v61 = vadd.f32 %v6927_v32, %v546_v1  ;;  %v587_v10 = vadd.f32 %v6928_v26, %v547_v49  ;;  %v708_v22 = vrot.slane %v4886_v2, %v4073_v50  ;;  %v677_v33 = vmul.f32 %v656_v52, %v4735_v7  ;;  %v6931_v26 = vld [vmem:[#allocation14_spill] sm:$0xff] }
  0xff   :  { %v682_v57 = vmul.f32 %v676_v39, %v4735_v7  ;;  %v679_v62 = vmul.f32 %v664_v25, %v4735_v7  ;;  %v680_v29 = vmul.f32 %v668_v8, %v4735_v7  ;;  %v687_v23 = vadd.f32 %v681_v48, %v647_v27 }
 0x100   :  { %v645_v42 = vadd.f32 %v639_v44, %v586_v61  ;;  %v646_v19 = vadd.f32 %v640_v45, %v587_v10  ;;  %v744_v21 = vrot.slane %v4877_v6, %v4091_v56  ;;  %v684_v54 = vadd.f32 %v4846_v34, %v644_v35 }
 0x101   :  { %v683_v31 = vadd.f32 %v677_v33, %v643_v13  ;;  %v688_v60 = vadd.f32 %v682_v57, %v648_v5  ;;  %v719_v52 = vmul.f32 %v704_v38, %v4457_v46  ;;  %v720_v7 = vmul.f32 %v708_v22, %v4457_v46  ;;  %v6930_v38 = vld [vmem:[#allocation15_spill] sm:$0xff]  ;;  %v6932_v57 = vld [vmem:[#allocation17_spill] sm:$0xff] }
 0x102   :  { %v685_v39 = vadd.f32 %v679_v62, %v645_v42  ;;  %v686_v28 = vadd.f32 %v680_v29, %v646_v19  ;;  %v748_v48 = vrot.slane %v4886_v2, %v4091_v56  ;;  %v4945_v12 = vpop.permute.xlu1 %1069  ;;  %v718_v34 = vmul.f32 %v700_v40, %v4457_v46  ;;  %v6933_v19 = vld [vmem:[#allocation16_spill] sm:$0xff] }
 0x103   :  { %v717_v6 = vmul.f32 %v696_v14, %v4457_v46  ;;  %v722_v25 = vmul.f32 %v716_v43, %v4457_v46  ;;  %v736_v8 = vrot.slane %v4822_v18, %v4091_v56  ;;  %v727_v49 = vadd.f32 %v4763_v9, %v687_v23  ;;  %v6929_v14 = vld [vmem:[#allocation21_spill] sm:$0xff] }
 0x104   :  { %v725_v27 = vadd.f32 %v719_v52, %v685_v39  ;;  %v726_v1 = vadd.f32 %v720_v7, %v686_v28  ;;  %v759_v2 = vmul.f32 %v744_v21, %v4828_v16  ;;  %v756_v13 = vrot.slane %v4842_v24, %v4091_v56  ;;  %v6935_v21 = vld [vmem:[#allocation23_spill] sm:$0xff]  ;;  %v6938_v7 = vld [vmem:[#allocation20_spill] sm:$0xff] }
 0x105   :  { %v723_v44 = vadd.f32 %v717_v6, %v683_v31  ;;  %v728_v35 = vadd.f32 %v722_v25, %v688_v60  ;;  %v724_v5 = vadd.f32 %v718_v34, %v684_v54  ;;  %v760_v40 = vmul.f32 %v748_v48, %v4828_v16  ;;  %v6936_v31 = vld [vmem:[#allocation27_spill] sm:$0xff]  ;;  %v6939_v34 = vld [vmem:[#allocation24_spill] sm:$0xff] }
 0x106   :  { %v761_v46 = vmul.f32 %v752_v11, %v4828_v16  ;;  %v765_v18 = vadd.f32 %v759_v2, %v725_v27  ;;  %v829_v43 = vmul.f32 %v6929_v14, %v4865_v30  ;;  %v4966_v9 = vpop.permute.xlu1 %1049  ;;  %v4970_v32 = vmul.f32 %v6930_v38, %v4604_v41  ;;  %v4978_v11 = vpop.permute.xlu0 %1234  ;;  %v6937_v39 = vld [vmem:[#allocation19_spill] sm:$0xff]  ;;  %v6942_v14 = vld [vmem:[#allocation28_spill] sm:$0xff] }
 0x107   :  { %v757_v24 = vmul.f32 %v736_v8, %v4828_v16  ;;  %v758_v61 = vmul.f32 %v740_v15, %v4828_v16  ;;  %v762_v37 = vmul.f32 %v756_v13, %v4828_v16  ;;  %v969_v10 = vmul.f32 %v6931_v26, %v4604_v41  ;;  %v6934_v15 = vld [vmem:[#allocation22_spill] sm:$0xff] }
 0x108   :  { %v766_v45 = vadd.f32 %v760_v40, %v726_v1  ;;  %v767_v22 = vadd.f32 %v761_v46, %v727_v49  ;;  %v835_v33 = vadd.f32 %v829_v43, %v765_v18  ;;  %v970_v62 = vmul.f32 %v6932_v57, %v4604_v41  ;;  %v6940_v8 = vld [vmem:[#allocation18_spill] sm:$0xff]  ;;  %v6941_v46 = vld [vmem:[#allocation25_spill] sm:$0xff] }
 0x109   :  { %v763_v29 = vadd.f32 %v757_v24, %v723_v44  ;;  %v764_v23 = vadd.f32 %v758_v61, %v724_v5  ;;  %v768_v42 = vadd.f32 %v762_v37, %v728_v35  ;;  %v971_v63 = vmul.f32 %v6933_v19, %v4604_v41  ;;  %v6943_v43 = vld [vmem:[#allocation29_spill] sm:$0xff]  ;;  %v6944_v26 = vld [vmem:[#allocation30_spill] sm:$0xff] }
 0x10a   :  { %v830_v16 = vmul.f32 %v6934_v15, %v4865_v30  ;;  %v831_v54 = vmul.f32 %v6935_v21, %v4865_v30  ;;  %v899_v60 = vmul.f32 %v6936_v31, %v4896_v20  ;;  %v1052_v52 = vpop.permute.xlu1 %1051  ;;  %v827_v28 = vmul.f32 %v6937_v39, %v4865_v30  ;;  %v5008_v40 = vpop.permute.xlu0 %1236  ;;  %v6946_v15 = vld [vmem:[#allocation26_spill] sm:$0xff]  ;;  %v6947_v21 = vld [vmem:[#allocation31_spill] sm:$0xff]  ;;  %v6948_v31 = vld [vmem:[#allocation32_spill] sm:$0xff] }
 0x10b   :  { %v828_v48 = vmul.f32 %v6938_v7, %v4865_v30  ;;  %v832_v6 = vmul.f32 %v6939_v34, %v4865_v30  ;;  %v5002_v25 = vsel %vm1061_vm4, %v4760_v17, %v4805_v58  ;;  %v972_v27 = vmul.f32 %v6940_v8, %v4604_v41 }
 0x10c   :  { %v836_v1 = vadd.f32 %v830_v16, %v766_v45  ;;  %v837_v49 = vadd.f32 %v831_v54, %v767_v22  ;;  %v905_v2 = vadd.f32 %v899_v60, %v835_v33  ;;  %v833_v44 = vadd.f32 %v827_v28, %v763_v29 }
 0x10d   :  { %v834_v35 = vadd.f32 %v828_v48, %v764_v23  ;;  %v838_v13 = vadd.f32 %v832_v6, %v768_v42  ;;  %v1123_v5 = vrot.slane %v5002_v25, %v4088_v55  ;;  %v1083_v30 = vrot.slane %v5002_v25, %v4083_v53  ;;  %v6945_v42 = vld [vmem:[#allocation66_spill] sm:$0xff]  ;;  %v6949_v48 = vld [vmem:[#allocation33_spill] sm:$0xff] }
 0x10e   :  { %v897_v18 = vmul.f32 %v6941_v46, %v4896_v20  ;;  %v900_v41 = vmul.f32 %v6942_v14, %v4896_v20  ;;  %v901_v38 = vmul.f32 %v6943_v43, %v4896_v20  ;;  %v5018_v24 = vpop.permute.xlu1 %1149  ;;  %v1163_v61 = vrot.slane %v5002_v25, %v4073_v50  ;;  %v5068_v8 = vpop.permute.xlu0 %1238 }
 0x10f   :  { %v1203_v37 = vrot.slane %v5002_v25, %v4091_v56  ;;  %v902_v45 = vmul.f32 %v6944_v26, %v4896_v20  ;;  %v5030_v22 = vsel %vm1061_vm4, %v4805_v58, %v4851_v59  ;;  %v975_v23 = vadd.f32 %v969_v10, %v905_v2 }
 0x110   :  { %v906_v33 = vadd.f32 %v900_v41, %v836_v1  ;;  %v907_v57 = vadd.f32 %v901_v38, %v837_v49  ;;  %v1127_v29 = vrot.slane %v5030_v22, %v4088_v55  ;;  %v5035_v19 = vmul.f32 %v1123_v5, %v6945_v42 }
 0x111   :  { %v898_v16 = vmul.f32 %v6946_v15, %v4896_v20  ;;  %v1039_v54 = vmul.f32 %v6947_v21, %v4924_v51  ;;  %v1040_v60 = vmul.f32 %v6948_v31, %v4924_v51  ;;  %v1087_v58 = vrot.slane %v5030_v22, %v4083_v53 }
 0x112   :  { %v5049_v10 = vsel %vm1061_vm4, %v4851_v59, %v4888_v4  ;;  %v908_v39 = vadd.f32 %v902_v45, %v838_v13  ;;  %v5055_v20 = vsel %vm1061_vm4, %v4888_v4, %v4966_v9  ;;  %v1167_v28 = vrot.slane %v5030_v22, %v4073_v50  ;;  %v5096_v26 = vpop.permute.xlu0 %1407 }
 0x113   :  { %v1207_v7 = vrot.slane %v5030_v22, %v4091_v56  ;;  %v1041_v34 = vmul.f32 %v6949_v48, %v4924_v51  ;;  %v1095_v59 = vrot.slane %v5055_v20, %v4083_v53  ;;  %v5066_v6 = vpop.permute.xlu1 %1189  ;;  %v5071_v4 = vmul.f32 %v1127_v29, %v6945_v42 }
 0x114   :  { %v976_v1 = vadd.f32 %v970_v62, %v906_v33  ;;  %v977_v49 = vadd.f32 %v971_v63, %v907_v57  ;;  %v1045_v2 = vadd.f32 %v1039_v54, %v975_v23  ;;  %v1091_v13 = vrot.slane %v5049_v10, %v4083_v53  ;;  %v6950_v63 = vld [vmem:[#allocation34_spill] sm:$0xff]  ;;  %v6952_v54 = vld [vmem:[#allocation36_spill] sm:$0xff] }
 0x115   :  { %v978_v5 = vadd.f32 %v972_v27, %v908_v39  ;;  %v903_v46 = vadd.f32 %v897_v18, %v833_v44  ;;  %v904_v14 = vadd.f32 %v898_v16, %v834_v35  ;;  %v1131_v41 = vrot.slane %v5049_v10, %v4088_v55  ;;  %v6951_v16 = vld [vmem:[#allocation35_spill] sm:$0xff] }
 0x116   :  { %v1171_v43 = vrot.slane %v5049_v10, %v4073_v50  ;;  %v5082_v38 = vsel %vm1061_vm4, %v1052_v52, %v4760_v17  ;;  %v5087_v62 = vsel %vm1061_vm4, %v4966_v9, %v1052_v52  ;;  %v1042_v27 = vmul.f32 %v6950_v63, %v4924_v51 }
 0x117   :  { %v1101_v44 = vmul.f32 %v1095_v59, %v4945_v12  ;;  %v1075_v35 = vrot.slane %v5087_v62, %v4083_v53  ;;  %v1079_v18 = vrot.slane %v5082_v38, %v4083_v53  ;;  %v1046_v17 = vadd.f32 %v1040_v60, %v976_v1 }
 0x118   :  { %v1047_v45 = vadd.f32 %v1041_v34, %v977_v49  ;;  %v973_v33 = vadd.f32 %v4809_v0, %v903_v46  ;;  %v974_v9 = vadd.f32 %v4970_v32, %v904_v14  ;;  %v5100_v52 = vpop.permute.xlu1 %1248  ;;  %v1211_v57 = vrot.slane %v5049_v10, %v4091_v56 }
 0x119   :  { %v1098_v29 = vmul.f32 %v1083_v30, %v4945_v12  ;;  %v1048_v23 = vadd.f32 %v1042_v27, %v978_v5  ;;  %v1135_v15 = vrot.slane %v5055_v20, %v4088_v55  ;;  %v1037_v21 = vmul.f32 %v6951_v16, %v4924_v51 }
 0x11a   :  { %v1038_v31 = vmul.f32 %v6952_v54, %v4924_v51  ;;  %v1096_v0 = vmul.f32 %v1075_v35, %v4945_v12  ;;  %v1097_v32 = vmul.f32 %v1079_v18, %v4945_v12  ;;  %v1099_v60 = vmul.f32 %v1087_v58, %v4945_v12  ;;  %v5123_v58 = vpop.permute.xlu0 %1411 }
 0x11b   :  { %v1100_v10 = vmul.f32 %v1091_v13, %v4945_v12  ;;  %v1107_v39 = vadd.f32 %v1101_v44, %v1048_v23  ;;  %v1115_v30 = vrot.slane %v5087_v62, %v4088_v55  ;;  %v1140_v48 = vmul.f32 %v1131_v41, %v6945_v42 }
 0x11c   :  { %v1043_v34 = vadd.f32 %v1037_v21, %v973_v33  ;;  %v1044_v59 = vadd.f32 %v1038_v31, %v974_v9  ;;  %v1119_v1 = vrot.slane %v5082_v38, %v4088_v55  ;;  %v1104_v51 = vadd.f32 %v1098_v29, %v1045_v2 }
 0x11d   :  { %v1105_v49 = vadd.f32 %v1099_v60, %v1046_v17  ;;  %v1106_v5 = vadd.f32 %v1100_v10, %v1047_v45  ;;  %v1141_v46 = vmul.f32 %v1135_v15, %v6945_v42  ;;  %v5121_v14 = vpop.permute.xlu1 %1288  ;;  %v1175_v12 = vrot.slane %v5055_v20, %v4073_v50 }
 0x11e   :  { %v1102_v13 = vadd.f32 %v1096_v0, %v1043_v34  ;;  %v1103_v63 = vadd.f32 %v1097_v32, %v1044_v59  ;;  %v5131_v41 = vsel %vm1240_vm5, %v4940_v3, %v4978_v11  ;;  %v1215_v27 = vrot.slane %v5055_v20, %v4091_v56  ;;  %v5170_v32 = vpop.permute.xlu0 %1413 }
 0x11f   :  { %v1147_v2 = vadd.f32 %v1141_v46, %v1107_v39  ;;  %v1136_v44 = vmul.f32 %v1115_v30, %v6945_v42  ;;  %v1155_v35 = vrot.slane %v5087_v62, %v4073_v50  ;;  %v1137_v18 = vmul.f32 %v1119_v1, %v6945_v42 }
 0x120   :  { %v1159_v17 = vrot.slane %v5082_v38, %v4073_v50  ;;  %v1195_v45 = vrot.slane %v5087_v62, %v4091_v56  ;;  %v1199_v33 = vrot.slane %v5082_v38, %v4091_v56  ;;  %v1262_v9 = vrot.slane %v5131_v41, %v4083_v53 }
 0x121   :  { %v1302_v20 = vrot.slane %v5131_v41, %v4088_v55  ;;  %v1342_v29 = vrot.slane %v5131_v41, %v4073_v50  ;;  %v1382_v42 = vrot.slane %v5131_v41, %v4091_v56  ;;  %v1231_v23 = vpop.permute.xlu1 %1230  ;;  %v1142_v15 = vadd.f32 %v1136_v44, %v1102_v13 }
 0x122   :  { %v1143_v16 = vadd.f32 %v1137_v18, %v1103_v63  ;;  %v1178_v38 = vmul.f32 %v1163_v61, %v5018_v24  ;;  %v5161_v62 = vsel %vm1240_vm5, %v4978_v11, %v5008_v40  ;;  %v1144_v21 = vadd.f32 %v5035_v19, %v1104_v51  ;;  %v5214_v46 = vpop.permute.xlu0 %1415 }
 0x123   :  { %v1145_v54 = vadd.f32 %v5071_v4, %v1105_v49  ;;  %v1179_v31 = vmul.f32 %v1167_v28, %v5018_v24  ;;  %v1180_v0 = vmul.f32 %v1171_v43, %v5018_v24  ;;  %v1146_v61 = vadd.f32 %v1140_v48, %v1106_v5 }
 0x124   :  { %v1176_v60 = vmul.f32 %v1155_v35, %v5018_v24  ;;  %v1177_v10 = vmul.f32 %v1159_v17, %v5018_v24  ;;  %v1181_v11 = vmul.f32 %v1175_v12, %v5018_v24  ;;  %v1266_v19 = vrot.slane %v5161_v62, %v4083_v53 }
 0x125   :  { %v1218_v4 = vmul.f32 %v1203_v37, %v5066_v6  ;;  %v1219_v28 = vmul.f32 %v1207_v7, %v5066_v6  ;;  %v5189_v43 = vsel %vm1240_vm5, %v5008_v40, %v5068_v8  ;;  %v5191_v24 = vpop.permute.xlu1 %1328  ;;  %v1184_v39 = vadd.f32 %v1178_v38, %v1144_v21 }
 0x126   :  { %v1220_v30 = vmul.f32 %v1211_v57, %v5066_v6  ;;  %v1221_v48 = vmul.f32 %v1215_v27, %v5066_v6  ;;  %v5199_v25 = vsel %vm1240_vm5, %v5068_v8, %v4916_v36  ;;  %v1185_v37 = vadd.f32 %v1179_v31, %v1145_v54 }
 0x127   :  { %v1186_v22 = vadd.f32 %v1180_v0, %v1146_v61  ;;  %v1306_v7 = vrot.slane %v5161_v62, %v4088_v55  ;;  %v1346_v40 = vrot.slane %v5161_v62, %v4073_v50  ;;  %v1187_v34 = vadd.f32 %v1181_v11, %v1147_v2 }
 0x128   :  { %v1386_v57 = vrot.slane %v5161_v62, %v4091_v56  ;;  %v1270_v59 = vrot.slane %v5189_v43, %v4083_v53  ;;  %v1277_v8 = vmul.f32 %v1262_v9, %v5100_v52  ;;  %v1224_v1 = vadd.f32 %v1218_v4, %v1184_v39 }
 0x129   :  { %v1225_v51 = vadd.f32 %v1219_v28, %v1185_v37  ;;  %v1274_v49 = vrot.slane %v5199_v25, %v4083_v53  ;;  %v1278_v5 = vmul.f32 %v1266_v19, %v5100_v52  ;;  %v1226_v12 = vadd.f32 %v1220_v30, %v1186_v22 }
 0x12a   :  { %v1227_v13 = vadd.f32 %v1221_v48, %v1187_v34  ;;  %v1310_v63 = vrot.slane %v5189_v43, %v4088_v55  ;;  %v1314_v2 = vrot.slane %v5199_v25, %v4088_v55  ;;  %v5220_v27 = vpop.permute.xlu1 %1368  ;;  %v1350_v44 = vrot.slane %v5189_v43, %v4073_v50 }
 0x12b   :  { %v1354_v35 = vrot.slane %v5199_v25, %v4073_v50  ;;  %v1390_v18 = vrot.slane %v5189_v43, %v4091_v56  ;;  %v5231_v17 = vsel %vm1240_vm5, %v1231_v23, %v4940_v3  ;;  %v1394_v9 = vrot.slane %v5199_v25, %v4091_v56 }
 0x12c   :  { %v1279_v38 = vmul.f32 %v1270_v59, %v5100_v52  ;;  %v5239_v21 = vsel %vm1240_vm5, %v4916_v36, %v1231_v23  ;;  %v1258_v54 = vrot.slane %v5231_v17, %v4083_v53  ;;  %v1280_v31 = vmul.f32 %v1274_v49, %v5100_v52 }
 0x12d   :  { %v1183_v0 = vadd.f32 %v1177_v10, %v1143_v16  ;;  %v1217_v61 = vmul.f32 %v1199_v33, %v5066_v6  ;;  %v1254_v3 = vrot.slane %v5239_v21, %v4083_v53  ;;  %v1317_v11 = vmul.f32 %v1302_v20, %v5121_v14  ;;  %v1418_v16 = vpop.permute.xlu0 %1417 }
 0x12e   :  { %v1318_v19 = vmul.f32 %v1306_v7, %v5121_v14  ;;  %v1216_v4 = vmul.f32 %v1195_v45, %v5066_v6  ;;  %v1182_v28 = vadd.f32 %v1176_v60, %v1142_v15  ;;  %v1283_v36 = vadd.f32 %v1277_v8, %v1224_v1 }
 0x12f   :  { %v1319_v23 = vmul.f32 %v1310_v63, %v5121_v14  ;;  %v1320_v43 = vmul.f32 %v1314_v2, %v5121_v14  ;;  %v1276_v39 = vmul.f32 %v1258_v54, %v5100_v52  ;;  %v5253_v10 = vpop.permute.xlu1 %1427  ;;  %v1284_v33 = vadd.f32 %v1278_v5, %v1225_v51 }
 0x130   :  { %v1285_v30 = vadd.f32 %v1279_v38, %v1226_v12  ;;  %v1275_v48 = vmul.f32 %v1254_v3, %v5100_v52  ;;  %v1298_v20 = vrot.slane %v5231_v17, %v4088_v55  ;;  %v1286_v25 = vadd.f32 %v1280_v31, %v1227_v13 }
 0x131   :  { %v1223_v6 = vadd.f32 %v1217_v61, %v1183_v0  ;;  %v1294_v45 = vrot.slane %v5239_v21, %v4088_v55  ;;  %v1334_v15 = vrot.slane %v5239_v21, %v4073_v50  ;;  %v1323_v60 = vadd.f32 %v1317_v11, %v1283_v36  ;;  %v5270_v1 = vpop.permute.xlu0 %1586 }
 0x132   :  { %v1324_v37 = vadd.f32 %v1318_v19, %v1284_v33  ;;  %v1222_v22 = vadd.f32 %v1216_v4, %v1182_v28  ;;  %v5266_v7 = vsel %vm1419_vm6, %v5123_v58, %v5170_v32  ;;  %v1325_v52 = vadd.f32 %v1319_v23, %v1285_v30 }
 0x133   :  { %v1326_v34 = vadd.f32 %v1320_v43, %v1286_v25  ;;  %v1282_v59 = vadd.f32 %v1276_v39, %v1223_v6  ;;  %v1338_v8 = vrot.slane %v5231_v17, %v4073_v50  ;;  %v1316_v49 = vmul.f32 %v1298_v20, %v5121_v14 }
 0x134   :  { %v1281_v51 = vadd.f32 %v1275_v48, %v1222_v22  ;;  %v1374_v5 = vrot.slane %v5239_v21, %v4091_v56  ;;  %v1378_v12 = vrot.slane %v5231_v17, %v4091_v56  ;;  %v5277_v13 = vpop.permute.xlu1 %1467  ;;  %v1315_v63 = vmul.f32 %v1294_v45, %v5121_v14 }
 0x135   :  { %v1441_v2 = vrot.slane %v5266_v7, %v4083_v53  ;;  %v1355_v38 = vmul.f32 %v1334_v15, %v5191_v24  ;;  %v1357_v54 = vmul.f32 %v1342_v29, %v5191_v24  ;;  %v1481_v21 = vrot.slane %v5266_v7, %v4088_v55  ;;  %v5321_v36 = vpop.permute.xlu0 %1590 }
 0x136   :  { %v1358_v17 = vmul.f32 %v1346_v40, %v5191_v24  ;;  %v1359_v14 = vmul.f32 %v1350_v44, %v5191_v24  ;;  %v1360_v31 = vmul.f32 %v1354_v35, %v5191_v24  ;;  %v1322_v0 = vadd.f32 %v1316_v49, %v1282_v59 }
 0x137   :  { %v1521_v61 = vrot.slane %v5266_v7, %v4073_v50  ;;  %v1561_v3 = vrot.slane %v5266_v7, %v4091_v56  ;;  %v1356_v29 = vmul.f32 %v1338_v8, %v5191_v24  ;;  %v1321_v11 = vadd.f32 %v1315_v63, %v1281_v51 }
 0x138   :  { %v5304_v19 = vsel %vm1419_vm6, %v5170_v32, %v5214_v46  ;;  %v1397_v40 = vmul.f32 %v1382_v42, %v5220_v27  ;;  %v1398_v44 = vmul.f32 %v1386_v57, %v5220_v27  ;;  %v1410_v35 = vpop.permute.xlu1 %1409  ;;  %v1363_v4 = vadd.f32 %v1357_v54, %v1323_v60 }
 0x139   :  { %v1399_v24 = vmul.f32 %v1390_v18, %v5220_v27  ;;  %v1400_v28 = vmul.f32 %v1394_v9, %v5220_v27  ;;  %v5319_v32 = vsel %vm1419_vm6, %v5214_v46, %v1418_v16  ;;  %v1364_v41 = vadd.f32 %v1358_v17, %v1324_v37  ;;  %v1593_v8 = vpop.permute.xlu0 %1592 }
 0x13a   :  { %v1365_v42 = vadd.f32 %v1359_v14, %v1325_v52  ;;  %v1366_v23 = vadd.f32 %v1360_v31, %v1326_v34  ;;  %v5326_v62 = vsel %vm1419_vm6, %v1418_v16, %v5096_v26  ;;  %v1445_v57 = vrot.slane %v5304_v19, %v4083_v53 }
 0x13b   :  { %v1485_v18 = vrot.slane %v5304_v19, %v4088_v55  ;;  %v1525_v46 = vrot.slane %v5304_v19, %v4073_v50  ;;  %v1565_v9 = vrot.slane %v5304_v19, %v4091_v56  ;;  %v1403_v43 = vadd.f32 %v1397_v40, %v1363_v4 }
 0x13c   :  { %v1404_v39 = vadd.f32 %v1398_v44, %v1364_v41  ;;  %v1449_v16 = vrot.slane %v5319_v32, %v4083_v53  ;;  %v1489_v33 = vrot.slane %v5319_v32, %v4088_v55  ;;  %v1508_v30 = vpop.permute.xlu1 %1507  ;;  %v1405_v48 = vadd.f32 %v1399_v24, %v1365_v42 }
 0x13d   :  { %v1406_v20 = vadd.f32 %v1400_v28, %v1366_v23  ;;  %v1453_v25 = vrot.slane %v5326_v62, %v4083_v53  ;;  %v1493_v6 = vrot.slane %v5326_v62, %v4088_v55  ;;  %v1361_v45 = vadd.f32 %v1355_v38, %v1321_v11  ;;  %v5387_v41 = vpop.permute.xlu0 %1594 }
 0x13e   :  { %v1395_v15 = vmul.f32 %v1374_v5, %v5220_v27  ;;  %v5349_v60 = vsel %vm1419_vm6, %v1410_v35, %v5123_v58  ;;  %v1424_v37 = vsel %vm1419_vm6, %v5096_v26, %v1410_v35  ;;  %v1529_v22 = vrot.slane %v5319_v32, %v4073_v50 }
 0x13f   :  { %v1533_v52 = vrot.slane %v5326_v62, %v4073_v50  ;;  %v1433_v34 = vrot.slane %v1424_v37, %v4083_v53  ;;  %v1437_v59 = vrot.slane %v5349_v60, %v4083_v53  ;;  %v1569_v58 = vrot.slane %v5319_v32, %v4091_v56 }
 0x140   :  { %v1456_v51 = vmul.f32 %v1441_v2, %v5253_v10  ;;  %v1362_v49 = vadd.f32 %v1356_v29, %v1322_v0  ;;  %v1396_v26 = vmul.f32 %v1378_v12, %v5220_v27  ;;  %v1573_v5 = vrot.slane %v5326_v62, %v4091_v56 }
 0x141   :  { %v1457_v63 = vmul.f32 %v1445_v57, %v5253_v10  ;;  %v1458_v38 = vmul.f32 %v1449_v16, %v5253_v10  ;;  %v1454_v54 = vmul.f32 %v1433_v34, %v5253_v10  ;;  %v5370_v17 = vpop.permute.xlu1 %1547  ;;  %v1459_v14 = vmul.f32 %v1453_v25, %v5253_v10 }
 0x142   :  { %v1401_v31 = vadd.f32 %v1395_v15, %v1361_v45  ;;  %v1455_v11 = vmul.f32 %v1437_v59, %v5253_v10  ;;  %v1473_v2 = vrot.slane %v1424_v37, %v4088_v55  ;;  %v1496_v27 = vmul.f32 %v1481_v21, %v5277_v13 }
 0x143   :  { %v1497_v12 = vmul.f32 %v1485_v18, %v5277_v13  ;;  %v1498_v0 = vmul.f32 %v1489_v33, %v5277_v13  ;;  %v1499_v29 = vmul.f32 %v1493_v6, %v5277_v13  ;;  %v1462_v40 = vadd.f32 %v1456_v51, %v1403_v43 }
 0x144   :  { %v1402_v44 = vadd.f32 %v1396_v26, %v1362_v49  ;;  %v1460_v35 = vadd.f32 %v1454_v54, %v1401_v31  ;;  %v1477_v4 = vrot.slane %v5349_v60, %v4088_v55  ;;  %v1463_v24 = vadd.f32 %v1457_v63, %v1404_v39 }
 0x145   :  { %v1464_v28 = vadd.f32 %v1458_v38, %v1405_v48  ;;  %v1513_v10 = vrot.slane %v1424_v37, %v4073_v50  ;;  %v5385_v21 = vsel %vm1598_vm7, %v5321_v36, %v1593_v8  ;;  %v1465_v42 = vadd.f32 %v1459_v14, %v1406_v20 }
 0x146   :  { %v1461_v23 = vadd.f32 %v1455_v11, %v1402_v44  ;;  %v1494_v57 = vmul.f32 %v1473_v2, %v5277_v13  ;;  %v1517_v18 = vrot.slane %v5349_v60, %v4073_v50  ;;  %v5392_v43 = vpop.permute.xlu1 %1606  ;;  %v1502_v39 = vadd.f32 %v1496_v27, %v1462_v40 }
 0x147   :  { %v1503_v16 = vadd.f32 %v1497_v12, %v1463_v24  ;;  %v1536_v33 = vmul.f32 %v1521_v61, %v1508_v30  ;;  %v1537_v48 = vmul.f32 %v1525_v46, %v1508_v30  ;;  %v1495_v25 = vmul.f32 %v1477_v4, %v5277_v13 }
 0x148   :  { %v1500_v6 = vadd.f32 %v1494_v57, %v1460_v35  ;;  %v1620_v20 = vrot.slane %v5385_v21, %v4083_v53  ;;  %v5403_v45 = vsel %vm1598_vm7, %v1593_v8, %v5387_v41  ;;  %v1553_v15 = vrot.slane %v1424_v37, %v4091_v56 }
 0x149   :  { %v1557_v34 = vrot.slane %v5349_v60, %v4091_v56  ;;  %v1534_v59 = vmul.f32 %v1513_v10, %v1508_v30  ;;  %v1576_v13 = vmul.f32 %v1561_v3, %v5370_v17  ;;  %v1501_v61 = vadd.f32 %v1495_v25, %v1461_v23  ;;  %v45_v25 = vld [vmem:[%s6731_s1] sm:$0x3f] }
 0x14a   :  { %v1535_v46 = vmul.f32 %v1517_v18, %v1508_v30  ;;  %v1538_v51 = vmul.f32 %v1529_v22, %v1508_v30  ;;  %v1577_v8 = vmul.f32 %v1565_v9, %v5370_v17  ;;  %v1539_v49 = vmul.f32 %v1533_v52, %v1508_v30 }
 0x14b   :  { %v1542_v26 = vadd.f32 %v1536_v33, %v1502_v39  ;;  %v1543_v37 = vadd.f32 %v1537_v48, %v1503_v16  ;;  %v1624_v60 = vrot.slane %v5403_v45, %v4083_v53  ;;  %v5418_v63 = vpop.permute.xlu1 %1646  ;;  %v1660_v7 = vrot.slane %v5385_v21, %v4088_v55 }
 0x14c   :  { %v1635_v3 = vmul.f32 %v1620_v20, %v5392_v43  ;;  %v1540_v38 = vadd.f32 %v1534_v59, %v1500_v6  ;;  %v1574_v22 = vmul.f32 %v1553_v15, %v5370_v17  ;;  %v1700_v19 = vrot.slane %v5385_v21, %v4073_v50 }
 0x14d   :  { %v1740_v9 = vrot.slane %v5385_v21, %v4091_v56  ;;  %v1582_v30 = vadd.f32 %v1576_v13, %v1542_v26  ;;  %v1664_v52 = vrot.slane %v5403_v45, %v4088_v55  ;;  %v1583_v54 = vadd.f32 %v1577_v8, %v1543_v37 }
 0x14e   :  { %v1704_v14 = vrot.slane %v5403_v45, %v4073_v50  ;;  %v1744_v31 = vrot.slane %v5403_v45, %v4091_v56  ;;  %v1541_v11 = vadd.f32 %v1535_v46, %v1501_v61  ;;  %v1636_v2 = vmul.f32 %v1624_v60, %v5392_v43 }
 0x14f   :  { %v1589_v27 = vpop.permute.xlu1 %1588  ;;  %v1575_v12 = vmul.f32 %v1557_v34, %v5370_v17  ;;  %v1504_v40 = vadd.f32 %v1498_v0, %v1464_v28  ;;  %v1505_v44 = vadd.f32 %v1499_v29, %v1465_v42  ;;  %v1641_v35 = vadd.f32 %v1635_v3, %v1582_v30 }
 0x150   :  { %v1580_v4 = vadd.f32 %v1574_v22, %v1540_v38  ;;  %v1602_v24 = vsel %vm1598_vm7, %v1589_v27, %v5321_v36  ;;  %v1603_v10 = vsel %vm1598_vm7, %v5270_v1, %v1589_v27  ;;  %v1675_v0 = vmul.f32 %v1660_v7, %v5418_v63 }
 0x151   :  { %v1612_v21 = vrot.slane %v1603_v10, %v4083_v53  ;;  %v1616_v23 = vrot.slane %v1602_v24, %v4083_v53  ;;  %v1652_v57 = vrot.slane %v1603_v10, %v4088_v55  ;;  %v1656_v18 = vrot.slane %v1602_v24, %v4088_v55 }
 0x152   :  { %v1692_v29 = vrot.slane %v1603_v10, %v4073_v50  ;;  %v1578_v36 = vmul.f32 %v1569_v58, %v5370_v17  ;;  %v1579_v28 = vmul.f32 %v1573_v5, %v5370_v17  ;;  %v1581_v42 = vadd.f32 %v1575_v12, %v1541_v11 }
 0x153   :  { %v1633_v39 = vmul.f32 %v1612_v21, %v5392_v43  ;;  %v1634_v16 = vmul.f32 %v1616_v23, %v5392_v43  ;;  %v1696_v33 = vrot.slane %v1602_v24, %v4073_v50  ;;  %v1687_v48 = vpop.permute.xlu1 %1686  ;;  %v1676_v32 = vmul.f32 %v1664_v52, %v5418_v63 }
 0x154   :  { %v1544_v58 = vadd.f32 %v1538_v51, %v1504_v40  ;;  %v1545_v6 = vadd.f32 %v1539_v49, %v1505_v44  ;;  %v1642_v20 = vadd.f32 %v1636_v2, %v1583_v54  ;;  %v1673_v5 = vmul.f32 %v1652_v57, %v5418_v63 }
 0x155   :  { %v1639_v45 = vadd.f32 %v1633_v39, %v1580_v4  ;;  %v1640_v62 = vadd.f32 %v1634_v16, %v1581_v42  ;;  %v1674_v17 = vmul.f32 %v1656_v18, %v5418_v63  ;;  %v1732_v15 = vrot.slane %v1603_v10, %v4091_v56 }
 0x156   :  { %v1736_v34 = vrot.slane %v1602_v24, %v4091_v56  ;;  %v1713_v59 = vmul.f32 %v1692_v29, %v1687_v48  ;;  %v5468_v13 = vrot.slane %v45_v25, %v4083_v53  ;;  %v1714_v8 = vmul.f32 %v1696_v33, %v1687_v48  ;;  %v6959_v24 = vld [vmem:[#allocation12_spill] sm:$0xff] }
 0x157   :  { %v1679_v61 = vadd.f32 %v1673_v5, %v1639_v45  ;;  %v1680_v46 = vadd.f32 %v1674_v17, %v1640_v62  ;;  %v1715_v51 = vmul.f32 %v1700_v19, %v1687_v48  ;;  %v1584_v26 = vadd.f32 %v1578_v36, %v1544_v58 }
 0x158   :  { %6953 = vst [vmem:[#allocation43_spill] sm:$0xff] %v5468_v13  ;;  %v1727_v49 = vpop.permute.xlu1 %1726  ;;  %v1681_v37 = vadd.f32 %v1675_v0, %v1641_v35  ;;  %v1716_v60 = vmul.f32 %v1704_v14, %v1687_v48  ;;  %v5471_v7 = vrot.slane %v45_v25, %v4088_v55  ;;  %v1585_v52 = vadd.f32 %v1579_v28, %v1545_v6  ;;  %v6957_v35 = vld [vmem:[#allocation11_spill] sm:$0xff] }
 0x159   :  { %v1753_v3 = vmul.f32 %v1732_v15, %v1727_v49  ;;  %v1754_v38 = vmul.f32 %v1736_v34, %v1727_v49  ;;  %v1719_v22 = vadd.f32 %v1713_v59, %v1679_v61  ;;  %v1720_v30 = vadd.f32 %v1714_v8, %v1680_v46 }
 0x15a   :  { %6954 = vst [vmem:[#allocation44_spill] sm:$0xff] %v5471_v7  ;;  %v1755_v54 = vmul.f32 %v1740_v9, %v1727_v49  ;;  %v5474_v11 = vrot.slane %v45_v25, %v4073_v50  ;;  %v5477_v2 = vrot.slane %v45_v25, %v4091_v56  ;;  %v1682_v19 = vadd.f32 %v1676_v32, %v1642_v20 }
 0x15b   :  { %v1721_v27 = vadd.f32 %v1715_v51, %v1681_v37  ;;  %v5479_v12 = vadd.f32 %v1753_v3, %v1719_v22  ;;  %v5481_v14 = vadd.f32 %v1754_v38, %v1720_v30  ;;  %v1756_v44 = vmul.f32 %v1744_v31, %v1727_v49 }
 0x15c   :  { %6955 = vst [vmem:[#allocation37_spill] sm:$0xff] %v5474_v11  ;;  %6956 = vst [vmem:[#allocation38_spill] sm:$0xff] %v5477_v2  ;;  %v1597_v40 = vpop.permute.xlu1 %1596  ;;  %v5484_v4 = vrot.slane %v45_v25, %v6957_v35  ;;  %v5487_v10 = vrot.slane %v45_v25, %v6959_v24  ;;  %v1722_v23 = vadd.f32 %v1716_v60, %v1682_v19 }
 0x15d   :  { %v1599_v9 = vsel %vm1598_vm7, %v5387_v41, %v1597_v40  ;;  %v1604_v21 = vsel %vm1598_vm7, %v1597_v40, %v5270_v1  ;;  %v5495_v57 = vadd.f32 %v1755_v54, %v1721_v27  ;;  %v1796_v41 = vmul.f32 %v5468_v13, %v5479_v12 }
 0x15e   :  { %6958 = vst [vmem:[#allocation41_spill] sm:$0xff] %v5484_v4  ;;  %6960 = vst [vmem:[#allocation42_spill] sm:$0xff] %v5487_v10  ;;  %v1628_v31 = vrot.slane %v1599_v9, %v4083_v53  ;;  %v1632_v18 = vrot.slane %v1604_v21, %v4083_v53  ;;  %v1668_v0 = vrot.slane %v1599_v9, %v4088_v55 }
 0x15f   :  { %v1672_v29 = vrot.slane %v1604_v21, %v4088_v55  ;;  %v1708_v36 = vrot.slane %v1599_v9, %v4073_v50  ;;  %v1712_v28 = vrot.slane %v1604_v21, %v4073_v50  ;;  %v1797_v1 = vmul.f32 %v5471_v7, %v5481_v14 }
 0x160   :  { %v1637_v42 = vmul.f32 %v1628_v31, %v5392_v43  ;;  %v1638_v39 = vmul.f32 %v1632_v18, %v5392_v43  ;;  %v1748_v16 = vrot.slane %v1599_v9, %v4091_v56  ;;  %v5510_v33 = vadd.f32 %v1756_v44, %v1722_v23 }
 0x161   :  { %v1677_v25 = vmul.f32 %v1668_v0, %v5418_v63  ;;  %v1678_v32 = vmul.f32 %v1672_v29, %v5418_v63  ;;  %v1717_v58 = vmul.f32 %v1708_v36, %v1687_v48  ;;  %v1752_v6 = vrot.slane %v1604_v21, %v4091_v56 }
 0x162   :  { %v1643_v20 = vadd.f32 %v1637_v42, %v1584_v26  ;;  %v1644_v45 = vadd.f32 %v1638_v39, %v1585_v52  ;;  %v1718_v62 = vmul.f32 %v1712_v28, %v1687_v48  ;;  %v1798_v5 = vmul.f32 %v5474_v11, %v5495_v57  ;;  %v1865_v39 = vld [vmem:[%s6735_s5] sm:$0xf] }
 0x163   :  { %v1803_v17 = vsel %vm1802_vm8, %v1796_v41, 0.0  ;;  %v1804_v43 = vsel %vm1802_vm8, %v1797_v1, 0.0  ;;  %v1816_v15 = vmul.f32 %v1796_v41, %v1796_v41  ;;  %v1817_v34 = vmul.f32 %v1797_v1, %v1797_v1 }
 0x164   :  { %v1683_v59 = vadd.f32 %v1677_v25, %v1643_v20  ;;  %v1684_v61 = vadd.f32 %v1678_v32, %v1644_v45  ;;  %v1799_v63 = vmul.f32 %v5477_v2, %v5510_v33  ;;  %v1805_v46 = vadd.f32 %v1804_v43, %v1803_v17  ;;  %v5548_v25 = vld [vmem:[%s6733_s3] sm:$0xf] }
 0x165   :  { %v1757_v8 = vmul.f32 %v1748_v16, %v1727_v49  ;;  %v1758_v51 = vmul.f32 %v1752_v6, %v1727_v49  ;;  %v1818_v26 = vmul.f32 %v1798_v5, %v1798_v5  ;;  %v1822_v48 = vsel %vm1802_vm8, %v1816_v15, 0.0  ;;  %v1853_v16 = vld [vmem:[%s6734_s4] sm:$0xf] }
 0x166   :  { %v1723_v37 = vadd.f32 %v1717_v58, %v1683_v59  ;;  %v1724_v60 = vadd.f32 %v1718_v62, %v1684_v61  ;;  %v1806_v3 = vsel %vm1802_vm8, %v1798_v5, 0.0  ;;  %v1823_v38 = vsel %vm1802_vm8, %v1817_v34, 0.0 }
 0x167   :  { %v1807_v22 = vadd.f32 %v1806_v3, %v1805_v46  ;;  %v1824_v30 = vadd.f32 %v1823_v38, %v1822_v48  ;;  %v1819_v19 = vmul.f32 %v1799_v63, %v1799_v63  ;;  %v1825_v27 = vsel %vm1802_vm8, %v1818_v26, 0.0 }
 0x168   :  { %v5524_v52 = vadd.f32 %v1757_v8, %v1723_v37  ;;  %v5526_v54 = vadd.f32 %v1758_v51, %v1724_v60  ;;  %v1808_v35 = vsel %vm1802_vm8, %v1799_v63, 0.0  ;;  %v6961_v32 = vmov 1  }
 0x169   :  { %v1826_v40 = vadd.f32 %v1825_v27, %v1824_v30  ;;  %v1809_v24 = vadd.f32 %v1808_v35, %v1807_v22  ;;  %v1827_v31 = vsel %vm1802_vm8, %v1819_v19, 0.0  ;;  %v6962_v58 = vmov 2  }
 0x16a   :  { %v1800_v49 = vmul.f32 %v5484_v4, %v5524_v52  ;;  %v1801_v44 = vmul.f32 %v5487_v10, %v5526_v54  ;;  %v6963_v6 = vmov 3   ;;  %v6964_v20 = vmov 4  }
 0x16b   :  { %v1828_v0 = vadd.f32 %v1827_v31, %v1826_v40  ;;  %v6965_v45 = vmov 5   ;;  %v6966_v62 = vmov 6   ;;  %v6967_v5 = vmov 7  }
 0x16c   :  { %v1810_v9 = vsel %vm1802_vm8, %v1800_v49, 0.0  ;;  %v1820_v21 = vmul.f32 %v1800_v49, %v1800_v49  ;;  %v1821_v23 = vmul.f32 %v1801_v44, %v1801_v44  ;;  %v1812_v29 = vsel %vm1802_vm8, %v1801_v44, 0.0 }
 0x16d   :  { %v1811_v18 = vadd.f32 %v1810_v9, %v1809_v24  ;;  %v6968_v17 = vmov 8   ;;  %v6969_v43 = vmov 9   ;;  %v6970_v15 = vmov 18  }
 0x16e   :  { %v1829_v36 = vsel %vm1802_vm8, %v1820_v21, 0.0  ;;  %v1831_v1 = vsel %vm1802_vm8, %v1821_v23, 0.0  ;;  %v6971_v34 = vmov 10   ;;  %v6972_v59 = vmov 21  }
 0x16f   :  { %v1813_v28 = vadd.f32 %v1812_v29, %v1811_v18  ;;  %v1830_v41 = vadd.f32 %v1829_v36, %v1828_v0  ;;  %v6973_v61 = vmov 11   ;;  %v6974_v63 = vmov 0  }
 0x170   :  { %v6975_v46 = vmov 12   ;;  %v6976_v8 = vmov 13   ;;  %v6977_v51 = vmov 14   ;;  %v6978_v26 = vmov 15  }
 0x171   :  { %1814 = vadd.xlane.f32.xlu0 %v1813_v28  ;;  %v1832_v42 = vadd.f32 %v1831_v1, %v1830_v41  ;;  %v6979_v48 = vmov 16   ;;  %v6980_v37 = vmov 17   ;;  %v6981_v60 = vmov 19  }
 0x172   :  { %v6982_v3 = vmov 20   ;;  %v6983_v38 = vmov 22   ;;  %v6984_v22 = vmov 23   ;;  %v6985_v30 = vmov 24  }
 0x173   :  { %1833 = vadd.xlane.f32.xlu1 %v1832_v42  ;;  %v6986_v19 = vmov 25   ;;  %v6987_v27 = vmov 26   ;;  %v6988_v40 = vmov 27   ;;  %v6989_v49 = vmov 28  }
 0x174   :  { %v6990_v44 = vmov 29  }
 0x184   :  { %1868 = vperm.xlu1 %3679, %v1865_v39  }
 0x187   :  { %1856 = vperm.xlu0 %3664, %v1853_v16  }
 0x188   :  { %3680 = vset.pattern.permute.xlu1 %v6961_v32 }
 0x189   :  { %1944 = vperm.xlu1 %3680, %v5548_v25  }
 0x18b   :  { %3681 = vset.pattern.permute.xlu0 %v6962_v58 }
 0x18c   :  { %1984 = vperm.xlu0 %3681, %v5548_v25  }
 0x18d   :  { %3682 = vset.pattern.permute.xlu1 %v6963_v6 }
 0x18e   :  { %2024 = vperm.xlu1 %3682, %v5548_v25  }
 0x190   :  { %3683 = vset.pattern.permute.xlu0 %v6964_v20 }
 0x191   :  { %2082 = vperm.xlu0 %3683, %v5548_v25  }
 0x192   :  { %3684 = vset.pattern.permute.xlu1 %v6965_v45 }
 0x193   :  { %2122 = vperm.xlu1 %3684, %v5548_v25  }
 0x195   :  { %3685 = vset.pattern.permute.xlu0 %v6966_v62 }
 0x196   :  { %2162 = vperm.xlu0 %3685, %v5548_v25  }
 0x197   :  { %3686 = vset.pattern.permute.xlu1 %v6967_v5 }
 0x198   :  { %2202 = vperm.xlu1 %3686, %v5548_v25  }
 0x19a   :  { %3687 = vset.pattern.permute.xlu0 %v6968_v17 }
 0x19b   :  { %2260 = vperm.xlu0 %3687, %v5548_v25  }
 0x19c   :  { %3688 = vset.pattern.permute.xlu1 %v6969_v43 }
 0x19d   :  { %2300 = vperm.xlu1 %3688, %v5548_v25  }
 0x19f   :  { %3697 = vset.pattern.permute.xlu0 %v6970_v15 }
 0x1a0   :  { %2678 = vperm.xlu0 %3697, %v5548_v25  }
 0x1a1   :  { %3689 = vset.pattern.permute.xlu1 %v6971_v34 }
 0x1a2   :  { %2340 = vperm.xlu1 %3689, %v5548_v25  }
 0x1a4   :  { %3700 = vset.pattern.permute.xlu0 %v6972_v59 }
 0x1a5   :  { %2816 = vperm.xlu0 %3700, %v5548_v25  }
 0x1a6   :  { %3690 = vset.pattern.permute.xlu1 %v6973_v61 }
 0x1a7   :  { %2380 = vperm.xlu1 %3690, %v5548_v25  }
 0x1a9   :  { %3701 = vset.pattern.permute.xlu0 %v6974_v63 }
 0x1aa   :  { %1910 = vperm.xlu0 %3701, %v5548_v25  }
 0x1ab   :  { %3691 = vset.pattern.permute.xlu1 %v6975_v46 }
 0x1ac   :  { %2438 = vperm.xlu1 %3691, %v5548_v25  }
 0x1b0   :  { %3692 = vset.pattern.permute.xlu1 %v6976_v8 }
 0x1b1   :  { %2478 = vperm.xlu1 %3692, %v5548_v25  }
 0x1b5   :  { %3693 = vset.pattern.permute.xlu1 %v6977_v51 }
 0x1b6   :  { %2518 = vperm.xlu1 %3693, %v5548_v25  }
 0x1ba   :  { %3694 = vset.pattern.permute.xlu1 %v6978_v26 }
 0x1bb   :  { %2558 = vperm.xlu1 %3694, %v5548_v25  }
 0x1bf   :  { %3695 = vset.pattern.permute.xlu1 %v6979_v48 }
 0x1c0   :  { %2598 = vperm.xlu1 %3695, %v5548_v25  }
 0x1c4   :  { %3696 = vset.pattern.permute.xlu1 %v6980_v37 }
 0x1c5   :  { %2638 = vperm.xlu1 %3696, %v5548_v25  }
 0x1c9   :  { %3698 = vset.pattern.permute.xlu1 %v6981_v60 }
 0x1ca   :  { %2718 = vperm.xlu1 %3698, %v5548_v25  }
 0x1ce   :  { %3699 = vset.pattern.permute.xlu1 %v6982_v3 }
 0x1cf   :  { %2776 = vperm.xlu1 %3699, %v5548_v25  }
 0x1d3   :  { %3702 = vset.pattern.permute.xlu1 %v6983_v38 }
 0x1d4   :  { %2856 = vperm.xlu1 %3702, %v5548_v25  }
 0x1d8   :  { %3703 = vset.pattern.permute.xlu1 %v6984_v22 }
 0x1d9   :  { %2896 = vperm.xlu1 %3703, %v5548_v25  }
 0x1dd   :  { %3704 = vset.pattern.permute.xlu1 %v6985_v30 }
 0x1de   :  { %2954 = vperm.xlu1 %3704, %v5548_v25  }
 0x1e2   :  { %3705 = vset.pattern.permute.xlu1 %v6986_v19 }
 0x1e3   :  { %2994 = vperm.xlu1 %3705, %v5548_v25  }
 0x1e7   :  { %3706 = vset.pattern.permute.xlu1 %v6987_v27 }
 0x1e8   :  { %3034 = vperm.xlu1 %3706, %v5548_v25  }
 0x1ec   :  { %3707 = vset.pattern.permute.xlu1 %v6988_v40 }
 0x1ed   :  { %3074 = vperm.xlu1 %3707, %v5548_v25  }
 0x1f1   :  { %3708 = vset.pattern.permute.xlu1 %v6989_v49 }
 0x1f2   :  { %3132 = vperm.xlu1 %3708, %v5548_v25  }
 0x1f6   :  { %3709 = vset.pattern.permute.xlu1 %v6990_v44 }
 0x1fe   :  { %v1815_v35 = vpop.xlane.xlu0 %1814 }
 0x1ff   :  { %v1835_v24 = vmul.f32 0.001953125, %v1815_v35 }
 0x200   :  { %v1834_v9 = vpop.xlane.xlu1 %1833 }
 0x201   :  { %v1836_v21 = vmul.f32 0.001953125, %v1834_v9  ;;  %v1837_v23 = vmul.f32 %v1835_v24, %v1835_v24  ;;  %v1841_v36 = vsub.f32 %v5479_v12, %v1835_v24  ;;  %v1842_v28 = vsub.f32 %v5481_v14, %v1835_v24 }
 0x202   :  { %v1843_v1 = vsub.f32 %v5495_v57, %v1835_v24  ;;  %v1846_v42 = vsub.f32 %v5526_v54, %v1835_v24  ;;  %v1844_v5 = vsub.f32 %v5510_v33, %v1835_v24  ;;  %v1845_v59 = vsub.f32 %v5524_v52, %v1835_v24 }
 0x203   :  { %v1838_v31 = vsub.f32 %v1836_v21, %v1837_v23 }
 0x204   :  { %v1869_v0 = vpop.permute.xlu1 %1868 }
 0x205   :  { %v1839_v18 = vadd.f32 1e-05, %v1838_v31 }
 0x206   :  { %v1857_v20 = vpop.permute.xlu0 %1856 }
 0x207   :  { %3720 = vrsqrt.f32 %v1839_v18 }
 0x208   :  { %v5609_v29 = vpop.permute.xlu1 %1944 }
 0x20d   :  { %v5615_v32 = vpop.permute.xlu1 %2024 }
 0x211   :  { %v3721_v41 = vpop.eup %3720 }
 0x212   :  { %v1847_v39 = vmul.f32 %v3721_v41, %v1841_v36  ;;  %v1848_v16 = vmul.f32 %v3721_v41, %v1842_v28  ;;  %v1849_v58 = vmul.f32 %v3721_v41, %v1843_v1  ;;  %v1852_v6 = vmul.f32 %v3721_v41, %v1846_v42  ;;  %v5620_v34 = vpop.permute.xlu1 %2122  ;;  %v5740_v42 = vpop.permute.xlu0 %1984 }
 0x213   :  { %v1850_v14 = vmul.f32 %v3721_v41, %v1844_v5  ;;  %v1851_v51 = vmul.f32 %v3721_v41, %v1845_v59  ;;  %v6995_v41 = vmov 30  }
 0x214   :  { %v1859_v45 = vmul.f32 %v1857_v20, %v1847_v39  ;;  %v1860_v62 = vmul.f32 %v1857_v20, %v1848_v16  ;;  %v1864_v17 = vmul.f32 %v1857_v20, %v1852_v6  ;;  %v1861_v15 = vmul.f32 %v1857_v20, %v1849_v58 }
 0x215   :  { %v1862_v33 = vmul.f32 %v1857_v20, %v1850_v14  ;;  %v1863_v60 = vmul.f32 %v1857_v20, %v1851_v51  ;;  %v6997_v39 = vmov 31   ;;  %v6999_v6 = vmov 32  }
 0x216   :  { %v1871_v12 = vadd.f32 %v1869_v0, %v1859_v45  ;;  %v1872_v43 = vadd.f32 %v1869_v0, %v1860_v62  ;;  %v1876_v61 = vadd.f32 %v1869_v0, %v1864_v17  ;;  %v1873_v26 = vadd.f32 %v1869_v0, %v1861_v15  ;;  %v5748_v58 = vpop.permute.xlu0 %2082 }
 0x217   :  { %v5632_v37 = vpop.permute.xlu1 %2202  ;;  %v1874_v52 = vadd.f32 %v1869_v0, %v1862_v33  ;;  %v1875_v22 = vadd.f32 %v1869_v0, %v1863_v60  ;;  %v7001_v62 = vmov 33   ;;  %v7005_v15 = vmov 35  }
 0x218   :  { %v1877_v57 = vmul.f32 %v1871_v12, %v5468_v13  ;;  %v1878_v54 = vmul.f32 %v1872_v43, %v5471_v7  ;;  %v1882_v48 = vmul.f32 %v1876_v61, %v5487_v10  ;;  %v1879_v3 = vmul.f32 %v1873_v26, %v5474_v11 }
 0x219   :  { %v1880_v30 = vmul.f32 %v1874_v52, %v5477_v2  ;;  %v1881_v40 = vmul.f32 %v1875_v22, %v5484_v4  ;;  %v7003_v12 = vmov 34  }
 0x21a   :  { %v5623_v46 = vmax.f32 %v1877_v57, 0.0  ;;  %v5625_v8 = vmax.f32 %v1878_v54, 0.0  ;;  %v5639_v38 = vmax.f32 %v1882_v48, 0.0  ;;  %v5642_v19 = vmax.f32 %v1879_v3, 0.0  ;;  %v5758_v45 = vpop.permute.xlu0 %2162 }
 0x21b   :  { %v5651_v49 = vmax.f32 %v1880_v30, 0.0  ;;  %v5659_v35 = vmax.f32 %v1881_v40, 0.0 }
 0x21c   :  { %2065 = vrot.lane.b32.xlu0 %v5625_v8, %s3780_s19  ;;  %1890 = vrot.lane.b32.xlu1 %v5623_v46, %s3778_s17  ;;  %v5644_v27 = vpop.permute.xlu1 %2300  ;;  %v2688_v51 = vrot.slane %v5625_v8, %v4073_v50  ;;  %v2692_v33 = vrot.slane %v5642_v19, %v4073_v50  ;;  %v2704_v48 = vrot.slane %v5639_v38, %v4073_v50 }
 0x21d   :  { %6991 = vst [vmem:[#allocation39_spill] sm:$0xff] %v5644_v27  ;;  %v2696_v26 = vrot.slane %v5651_v49, %v4073_v50  ;;  %v2604_v60 = vrot.slane %v5623_v46, %v4083_v53  ;;  %v2608_v52 = vrot.slane %v5625_v8, %v4083_v53  ;;  %v2612_v3 = vrot.slane %v5642_v19, %v4083_v53 }
 0x21e   :  { %v5766_v17 = vpop.permute.xlu0 %2260  ;;  %v2616_v22 = vrot.slane %v5651_v49, %v4083_v53  ;;  %v2620_v30 = vrot.slane %v5659_v35, %v4083_v53  ;;  %v2624_v40 = vrot.slane %v5639_v38, %v4083_v53  ;;  %v2656_v7 = vrot.slane %v5651_v49, %v4088_v55 }
 0x21f   :  { %v2660_v13 = vrot.slane %v5659_v35, %v4088_v55 }
 0x220   :  { %2241 = vrot.lane.b32.xlu0 %v5623_v46, %s3784_s2  ;;  %1892 = vrot.lane.b32.xlu1 %v5625_v8, %s3778_s17 }
 0x221   :  { %v5657_v44 = vpop.permute.xlu1 %2340 }
 0x222   :  { %6992 = vst [vmem:[#allocation40_spill] sm:$0xff] %v5657_v44  ;;  %v2679_v14 = vpop.permute.xlu0 %2678 }
 0x223   :  { %v5835_v10 = vmul.f32 %v2688_v51, %v2679_v14  ;;  %v5837_v4 = vmul.f32 %v2692_v33, %v2679_v14  ;;  %v5839_v2 = vmul.f32 %v2696_v26, %v2679_v14  ;;  %v5843_v11 = vmul.f32 %v2704_v48, %v2679_v14 }
 0x224   :  { %2251 = vrot.lane.b32.xlu0 %v5639_v38, %s3784_s2  ;;  %1894 = vrot.lane.b32.xlu1 %v5642_v19, %s3778_s17  ;;  %v2724_v51 = vrot.slane %v5623_v46, %v4091_v56  ;;  %v2728_v33 = vrot.slane %v5625_v8, %v4091_v56  ;;  %v2732_v26 = vrot.slane %v5642_v19, %v4091_v56 }
 0x225   :  { %7010 = vst [vmem:[#allocation53_spill] sm:$0xff] %v5835_v10  ;;  %7011 = vst [vmem:[#allocation62_spill] sm:$0xff] %v5837_v4 }
 0x226   :  { %v5665_v24 = vpop.permute.xlu1 %2380  ;;  %v5784_v54 = vpop.permute.xlu0 %2816  ;;  %7012 = vst [vmem:[#allocation54_spill] sm:$0xff] %v5839_v2  ;;  %7014 = vst [vmem:[#allocation68_spill] sm:$0xff] %v5843_v11 }
 0x227   :  { %6993 = vst [vmem:[#allocation45_spill] sm:$0xff] %v5665_v24  ;;  %7007 = vst [vmem:[#allocation47_spill] sm:$0xff] %v5784_v54 }
 0x228   :  { %2245 = vrot.lane.b32.xlu0 %v5642_v19, %s3784_s2  ;;  %1896 = vrot.lane.b32.xlu1 %v5651_v49, %s3778_s17 }
 0x22a   :  { %v5795_v61 = vpop.permute.xlu0 %1910 }
 0x22b   :  { %v5675_v9 = vpop.permute.xlu1 %2438 }
 0x22c   :  { %2247 = vrot.lane.b32.xlu0 %v5651_v49, %s3784_s2  ;;  %1898 = vrot.lane.b32.xlu1 %v5659_v35, %s3778_s17 }
 0x230   :  { %2249 = vrot.lane.b32.xlu0 %v5659_v35, %s3784_s2  ;;  %1900 = vrot.lane.b32.xlu1 %v5639_v38, %s3778_s17  ;;  %v5681_v21 = vpop.permute.xlu1 %2478 }
 0x234   :  { %2419 = vrot.lane.b32.xlu0 %v5623_v46, %s3791_s20  ;;  %2063 = vrot.lane.b32.xlu1 %v5623_v46, %s3780_s19 }
 0x235   :  { %v5691_v23 = vpop.permute.xlu1 %2518 }
 0x238   :  { %2429 = vrot.lane.b32.xlu0 %v5639_v38, %s3791_s20  ;;  %2067 = vrot.lane.b32.xlu1 %v5642_v19, %s3780_s19 }
 0x23a   :  { %v5697_v31 = vpop.permute.xlu1 %2558 }
 0x23c   :  { %2423 = vrot.lane.b32.xlu0 %v5642_v19, %s3791_s20  ;;  %2073 = vrot.lane.b32.xlu1 %v5639_v38, %s3780_s19 }
 0x23f   :  { %v5707_v18 = vpop.permute.xlu1 %2598 }
 0x240   :  { %2425 = vrot.lane.b32.xlu0 %v5651_v49, %s3791_s20  ;;  %2069 = vrot.lane.b32.xlu1 %v5651_v49, %s3780_s19  ;;  %v5863_v48 = vmul.f32 %v2608_v52, %v5707_v18 }
 0x242   :  { %7016 = vst [vmem:[#allocation59_spill] sm:$0xff] %v5863_v48 }
 0x244   :  { %2427 = vrot.lane.b32.xlu0 %v5659_v35, %s3791_s20  ;;  %2071 = vrot.lane.b32.xlu1 %v5659_v35, %s3780_s19  ;;  %v5713_v0 = vpop.permute.xlu1 %2638 }
 0x248   :  { %2761 = vrot.lane.b32.xlu0 %v5642_v19, %s3797_s21  ;;  %2243 = vrot.lane.b32.xlu1 %v5625_v8, %s3784_s2 }
 0x249   :  { %v5723_v36 = vpop.permute.xlu1 %2718 }
 0x24c   :  { %2763 = vrot.lane.b32.xlu0 %v5651_v49, %s3797_s21  ;;  %2421 = vrot.lane.b32.xlu1 %v5625_v8, %s3791_s20 }
 0x24e   :  { %v5728_v28 = vpop.permute.xlu1 %2776 }
 0x24f   :  { %6994 = vst [vmem:[#allocation13_spill] sm:$0xff] %v5728_v28 }
 0x250   :  { %2765 = vrot.lane.b32.xlu0 %v5659_v35, %s3797_s21  ;;  %2757 = vrot.lane.b32.xlu1 %v5623_v46, %s3797_s21 }
 0x253   :  { %v5737_v1 = vpop.permute.xlu1 %2856 }
 0x254   :  { %2767 = vrot.lane.b32.xlu0 %v5639_v38, %s3797_s21  ;;  %2759 = vrot.lane.b32.xlu1 %v5625_v8, %s3797_s21  ;;  %6996 = vst [vmem:[#allocation46_spill] sm:$0xff] %v5737_v1 }
 0x258   :  { %2935 = vrot.lane.b32.xlu0 %v5623_v46, %s3800_s22  ;;  %2937 = vrot.lane.b32.xlu1 %v5625_v8, %s3800_s22  ;;  %v5746_v16 = vpop.permute.xlu1 %2896 }
 0x259   :  { %6998 = vst [vmem:[#allocation49_spill] sm:$0xff] %v5746_v16 }
 0x25c   :  { %2939 = vrot.lane.b32.xlu0 %v5642_v19, %s3800_s22  ;;  %3172 = vperm.xlu1 %3709, %v5548_v25  }
 0x25d   :  { %v5756_v20 = vpop.permute.xlu1 %2954 }
 0x25e   :  { %7000 = vst [vmem:[#allocation57_spill] sm:$0xff] %v5756_v20 }
 0x260   :  { %2941 = vrot.lane.b32.xlu0 %v5651_v49, %s3800_s22  ;;  %3115 = vrot.lane.b32.xlu1 %v5625_v8, %s3805_s23 }
 0x261   :  { %3710 = vset.pattern.permute.xlu1 %v6995_v41 }
 0x262   :  { %v5764_v5 = vpop.permute.xlu1 %2994 }
 0x263   :  { %7002 = vst [vmem:[#allocation56_spill] sm:$0xff] %v5764_v5 }
 0x264   :  { %2943 = vrot.lane.b32.xlu0 %v5659_v35, %s3800_s22  ;;  %3212 = vperm.xlu1 %3710, %v5548_v25  }
 0x267   :  { %v5776_v43 = vpop.permute.xlu1 %3034 }
 0x268   :  { %2945 = vrot.lane.b32.xlu0 %v5639_v38, %s3800_s22  ;;  %3711 = vset.pattern.permute.xlu1 %v6997_v39  ;;  %7004 = vst [vmem:[#allocation60_spill] sm:$0xff] %v5776_v43  ;;  %v2644_v39 = vrot.slane %v5623_v46, %v4088_v55 }
 0x269   :  { %3252 = vperm.xlu1 %3711, %v5548_v25  }
 0x26c   :  { %3113 = vrot.lane.b32.xlu0 %v5623_v46, %s3805_s23  ;;  %v5782_v57 = vpop.permute.xlu1 %3074 }
 0x26d   :  { %3712 = vset.pattern.permute.xlu1 %v6999_v6  ;;  %7006 = vst [vmem:[#allocation61_spill] sm:$0xff] %v5782_v57  ;;  %v2648_v6 = vrot.slane %v5625_v8, %v4088_v55  ;;  %v2740_v57 = vrot.slane %v5659_v35, %v4091_v56 }
 0x26e   :  { %3310 = vperm.xlu1 %3712, %v5548_v25  }
 0x270   :  { %3117 = vrot.lane.b32.xlu0 %v5642_v19, %s3805_s23 }
 0x271   :  { %v5793_v59 = vpop.permute.xlu1 %3132 }
 0x272   :  { %3713 = vset.pattern.permute.xlu1 %v7001_v62  ;;  %7008 = vst [vmem:[#allocation52_spill] sm:$0xff] %v5793_v59  ;;  %v2652_v62 = vrot.slane %v5642_v19, %v4088_v55  ;;  %v2664_v59 = vrot.slane %v5639_v38, %v4088_v55 }
 0x273   :  { %3350 = vperm.xlu1 %3713, %v5548_v25  }
 0x274   :  { %3119 = vrot.lane.b32.xlu0 %v5651_v49, %s3805_s23  ;;  %v5890_v5 = vmul.f32 %v2652_v62, %v5713_v0  ;;  %v5910_v62 = vmul.f32 %v2728_v33, %v5723_v36 }
 0x276   :  { %7023 = vst [vmem:[#allocation71_spill] sm:$0xff] %v5890_v5  ;;  %7028 = vst [vmem:[#allocation21_spill] sm:$0xff] %v5910_v62 }
 0x277   :  { %3293 = vrot.lane.b32.xlu1 %v5625_v8, %s3809_s24  ;;  %v5872_v8 = vmul.f32 %v2612_v3, %v5707_v18 }
 0x278   :  { %3121 = vrot.lane.b32.xlu0 %v5659_v35, %s3805_s23  ;;  %3714 = vset.pattern.permute.xlu1 %v7003_v12 }
 0x279   :  { %7017 = vst [vmem:[#allocation48_spill] sm:$0xff] %v5872_v8 }
 0x27b   :  { %3390 = vperm.xlu1 %3714, %v5548_v25  }
 0x27c   :  { %3123 = vrot.lane.b32.xlu0 %v5639_v38, %s3805_s23 }
 0x27f   :  { %3715 = vset.pattern.permute.xlu1 %v7005_v15 }
 0x280   :  { %3291 = vrot.lane.b32.xlu0 %v5623_v46, %s3809_s24  ;;  %3430 = vperm.xlu1 %3715, %v5548_v25   ;;  %v2684_v25 = vrot.slane %v5623_v46, %v4073_v50  ;;  %v2744_v46 = vrot.slane %v5639_v38, %v4091_v56 }
 0x282   :  { %v5823_v41 = vmul.f32 %v2684_v25, %v2679_v14 }
 0x284   :  { %3295 = vrot.lane.b32.xlu0 %v5642_v19, %s3809_s24  ;;  %3301 = vrot.lane.b32.xlu1 %v5639_v38, %s3809_s24  ;;  %7009 = vst [vmem:[#allocation51_spill] sm:$0xff] %v5823_v41  ;;  %v5875_v19 = vmul.f32 %v2616_v22, %v5707_v18  ;;  %v5887_v38 = vmul.f32 %v2648_v6, %v5713_v0 }
 0x285   :  { %3716 = vset.pattern.permute.xlu1 %v6974_v63  ;;  %v2700_v63 = vrot.slane %v5659_v35, %v4073_v50  ;;  %v5896_v22 = vmul.f32 %v2656_v7, %v5713_v0  ;;  %v5907_v6 = vmul.f32 %v2724_v51, %v5723_v36  ;;  %v5924_v51 = vmul.f32 %v2740_v57, %v5723_v36 }
 0x286   :  { %7018 = vst [vmem:[#allocation50_spill] sm:$0xff] %v5875_v19  ;;  %7022 = vst [vmem:[#allocation70_spill] sm:$0xff] %v5887_v38 }
 0x287   :  { %v5841_v25 = vmul.f32 %v2700_v63, %v2679_v14  ;;  %v2736_v14 = vrot.slane %v5651_v49, %v4091_v56  ;;  %v5860_v63 = vmul.f32 %v2604_v60, %v5707_v18  ;;  %v5881_v60 = vmul.f32 %v2624_v40, %v5707_v18  ;;  %7024 = vst [vmem:[#allocation72_spill] sm:$0xff] %v5896_v22 }
 0x288   :  { %3297 = vrot.lane.b32.xlu0 %v5651_v49, %s3809_s24  ;;  %v5878_v49 = vmul.f32 %v2620_v30, %v5707_v18  ;;  %v5899_v18 = vmul.f32 %v2660_v13, %v5713_v0  ;;  %7027 = vst [vmem:[#allocation69_spill] sm:$0xff] %v5907_v6  ;;  %v5916_v13 = vmul.f32 %v2732_v26, %v5723_v36  ;;  %7031 = vst [vmem:[#allocation17_spill] sm:$0xff] %v5924_v51 }
 0x289   :  { %7013 = vst [vmem:[#allocation55_spill] sm:$0xff] %v5841_v25  ;;  %7015 = vst [vmem:[#allocation58_spill] sm:$0xff] %v5860_v63  ;;  %v5919_v11 = vmul.f32 %v2736_v14, %v5723_v36 }
 0x28a   :  { %7019 = vst [vmem:[#allocation63_spill] sm:$0xff] %v5878_v49  ;;  %7020 = vst [vmem:[#allocation67_spill] sm:$0xff] %v5881_v60 }
 0x28b   :  { %7025 = vst [vmem:[#allocation73_spill] sm:$0xff] %v5899_v18  ;;  %7029 = vst [vmem:[#allocation15_spill] sm:$0xff] %v5916_v13 }
 0x28c   :  { %3299 = vrot.lane.b32.xlu0 %v5659_v35, %s3809_s24  ;;  %v5884_v35 = vmul.f32 %v2644_v39, %v5713_v0  ;;  %v5904_v39 = vmul.f32 %v2664_v59, %v5713_v0  ;;  %7030 = vst [vmem:[#allocation14_spill] sm:$0xff] %v5919_v11 }
 0x28e   :  { %v5831_v12 = vpop.permute.xlu1 %1890  ;;  %v5833_v15 = vpop.permute.xlu0 %2065  ;;  %7021 = vst [vmem:[#allocation64_spill] sm:$0xff] %v5884_v35  ;;  %7026 = vst [vmem:[#allocation65_spill] sm:$0xff] %v5904_v39  ;;  %v5943_v35 = vmul.f32 %v2744_v46, %v5723_v36 }
 0x290   :  { %7032 = vst [vmem:[#allocation16_spill] sm:$0xff] %v5943_v35 }
 0x292   :  { %v5869_v43 = vpop.permute.xlu0 %2241  ;;  %v1893_v52 = vpop.permute.xlu1 %1892 }
 0x293   :  { %v1906_v3 = vsel %vm70_vm0, %v5831_v12, %v1893_v52 }
 0x294   :  { %v1920_v30 = vrot.slane %v1906_v3, %v4083_v53  ;;  %v1954_v40 = vrot.slane %v1906_v3, %v4088_v55  ;;  %v1994_v20 = vrot.slane %v1906_v3, %v4073_v50  ;;  %v2034_v33 = vrot.slane %v1906_v3, %v4091_v56 }
 0x296   :  { %v5913_v7 = vpop.permute.xlu0 %2251  ;;  %v1938_v25 = vmul.f32 %v1920_v30, %v5795_v61  ;;  %v1972_v0 = vmul.f32 %v1954_v40, %v5609_v29  ;;  %v1895_v59 = vpop.permute.xlu1 %1894  ;;  %v2012_v57 = vmul.f32 %v1994_v20, %v5740_v42  ;;  %v2052_v20 = vmul.f32 %v2034_v33, %v5615_v32 }
 0x297   :  { %v1905_v6 = vsel %vm70_vm0, %v1893_v52, %v1895_v59  ;;  %v2258_v26 = vsel %vm423_vm2, %v5913_v7, %v5869_v43 }
 0x298   :  { %v1978_v14 = vadd.f32 %v1972_v0, %v1938_v25  ;;  %v1924_v41 = vrot.slane %v1905_v6, %v4083_v53  ;;  %v1958_v30 = vrot.slane %v1905_v6, %v4088_v55  ;;  %v1998_v40 = vrot.slane %v1905_v6, %v4073_v50 }
 0x299   :  { %v2038_v51 = vrot.slane %v1905_v6, %v4091_v56  ;;  %v2266_v3 = vrot.slane %v2258_v26, %v4083_v53  ;;  %v2306_v52 = vrot.slane %v2258_v26, %v4088_v55  ;;  %v2346_v13 = vrot.slane %v2258_v26, %v4073_v50 }
 0x29a   :  { %v5940_v62 = vpop.permute.xlu0 %2245  ;;  %v1939_v25 = vmul.f32 %v1924_v41, %v5795_v61  ;;  %v1973_v0 = vmul.f32 %v1958_v30, %v5609_v29  ;;  %v1897_v10 = vpop.permute.xlu1 %1896  ;;  %v2018_v63 = vadd.f32 %v2012_v57, %v1978_v14  ;;  %v2013_v6 = vmul.f32 %v1998_v40, %v5740_v42 }
 0x29b   :  { %v2053_v4 = vmul.f32 %v2038_v51, %v5615_v32  ;;  %v5952_v38 = vmul.f32 %v2266_v3, %v5766_v17  ;;  %v2386_v36 = vrot.slane %v2258_v26, %v4091_v56  ;;  %v1904_v41 = vsel %vm70_vm0, %v1895_v59, %v1897_v10 }
 0x29c   :  { %v1979_v5 = vadd.f32 %v1973_v0, %v1939_v25  ;;  %v5958_v46 = vmul.f32 %v2306_v52, %v5644_v27  ;;  %v1928_v14 = vrot.slane %v1904_v41, %v4083_v53  ;;  %v1962_v33 = vrot.slane %v1904_v41, %v4088_v55 }
 0x29d   :  { %v2002_v30 = vrot.slane %v1904_v41, %v4073_v50  ;;  %v5964_v57 = vmul.f32 %v2346_v13, %v5657_v44  ;;  %v2042_v3 = vrot.slane %v1904_v41, %v4091_v56  ;;  %v5972_v52 = vadd.f32 %v2052_v20, %v2018_v63 }
 0x29e   :  { %v2248_v40 = vpop.permute.xlu0 %2247  ;;  %v2019_v51 = vadd.f32 %v2013_v6, %v1979_v5  ;;  %v1899_v26 = vpop.permute.xlu1 %1898  ;;  %v5975_v25 = vmul.f32 %v2386_v36, %v5665_v24  ;;  %v1940_v0 = vmul.f32 %v1928_v14, %v5795_v61  ;;  %v1974_v5 = vmul.f32 %v1962_v33, %v5609_v29 }
 0x29f   :  { %v5970_v59 = vsel %vm423_vm2, %v5940_v62, %v2248_v40  ;;  %v2014_v13 = vmul.f32 %v2002_v30, %v5740_v42  ;;  %v1903_v6 = vsel %vm70_vm0, %v1897_v10, %v1899_v26  ;;  %v2054_v30 = vmul.f32 %v2042_v3, %v5615_v32 }
 0x2a0   :  { %v2278_v41 = vrot.slane %v5970_v59, %v4083_v53  ;;  %v2318_v35 = vrot.slane %v5970_v59, %v4088_v55  ;;  %v1980_v63 = vadd.f32 %v1974_v5, %v1940_v0  ;;  %v1932_v20 = vrot.slane %v1903_v6, %v4083_v53 }
 0x2a1   :  { %v1966_v36 = vrot.slane %v1903_v6, %v4088_v55  ;;  %v2006_v14 = vrot.slane %v1903_v6, %v4073_v50  ;;  %v5989_v33 = vadd.f32 %v2053_v4, %v2019_v51  ;;  %v2046_v10 = vrot.slane %v1903_v6, %v4091_v56 }
 0x2a2   :  { %v2250_v16 = vpop.permute.xlu0 %2249  ;;  %v2358_v8 = vrot.slane %v5970_v59, %v4073_v50  ;;  %v1901_v48 = vpop.permute.xlu1 %1900  ;;  %v2020_v1 = vadd.f32 %v2014_v13, %v1980_v63  ;;  %v1941_v0 = vmul.f32 %v1932_v20, %v5795_v61  ;;  %v5998_v11 = vmul.f32 %v2278_v41, %v5766_v17 }
 0x2a3   :  { %v1975_v5 = vmul.f32 %v1966_v36, %v5609_v29  ;;  %v2015_v54 = vmul.f32 %v2006_v14, %v5740_v42  ;;  %v2055_v4 = vmul.f32 %v2046_v10, %v5615_v32  ;;  %v6003_v51 = vmul.f32 %v2318_v35, %v5644_v27 }
 0x2a4   :  { %v1902_v3 = vsel %vm70_vm0, %v1899_v26, %v1901_v48  ;;  %v6008_v13 = vmul.f32 %v2358_v8, %v5657_v44  ;;  %v1907_v63 = vsel %vm70_vm0, %v1901_v48, %v5831_v12  ;;  %v2398_v36 = vrot.slane %v5970_v59, %v4091_v56 }
 0x2a5   :  { %v1981_v6 = vadd.f32 %v1975_v5, %v1941_v0  ;;  %v1936_v41 = vrot.slane %v1902_v3, %v4083_v53  ;;  %v1916_v35 = vrot.slane %v1907_v63, %v4083_v53  ;;  %v1950_v14 = vrot.slane %v1907_v63, %v4088_v55 }
 0x2a6   :  { %v6014_v20 = vpop.permute.xlu0 %2419  ;;  %v1970_v26 = vrot.slane %v1902_v3, %v4088_v55  ;;  %v2064_v10 = vpop.permute.xlu1 %2063  ;;  %v6021_v8 = vadd.f32 %v2054_v30, %v2020_v1  ;;  %v1990_v12 = vrot.slane %v1907_v63, %v4073_v50  ;;  %v2010_v48 = vrot.slane %v1902_v3, %v4073_v50 }
 0x2a7   :  { %7033 = vst [vmem:[#allocation22_spill] sm:$0xff] %v6014_v20  ;;  %v1942_v0 = vmul.f32 %v1936_v41, %v5795_v61  ;;  %v1937_v5 = vmul.f32 %v1916_v35, %v5795_v61  ;;  %v1971_v28 = vmul.f32 %v1950_v14, %v5609_v29  ;;  %v2030_v2 = vrot.slane %v1907_v63, %v4091_v56 }
 0x2a8   :  { %v1976_v59 = vmul.f32 %v1970_v26, %v5609_v29  ;;  %v2021_v18 = vadd.f32 %v2015_v54, %v1981_v6  ;;  %v2011_v39 = vmul.f32 %v1990_v12, %v5740_v42  ;;  %v2016_v1 = vmul.f32 %v2010_v48, %v5740_v42 }
 0x2a9   :  { %v2050_v30 = vrot.slane %v1902_v3, %v4091_v56  ;;  %v1977_v49 = vadd.f32 %v1971_v28, %v1937_v5  ;;  %v2051_v22 = vmul.f32 %v2030_v2, %v5615_v32  ;;  %v2253_v61 = vsel %vm423_vm2, %v2250_v16, %v5913_v7 }
 0x2aa   :  { %v6033_v41 = vpop.permute.xlu0 %2429  ;;  %v1982_v60 = vadd.f32 %v1976_v59, %v1942_v0  ;;  %v6039_v29 = vpop.permute.xlu1 %2067  ;;  %v2254_v6 = vsel %vm423_vm2, %v2248_v40, %v2250_v16  ;;  %v2286_v42 = vrot.slane %v2253_v61, %v4083_v53  ;;  %v2326_v3 = vrot.slane %v2253_v61, %v4088_v55 }
 0x2ab   :  { %v2056_v54 = vmul.f32 %v2050_v30, %v5615_v32  ;;  %v2017_v63 = vadd.f32 %v2011_v39, %v1977_v49  ;;  %v2282_v35 = vrot.slane %v2254_v6, %v4083_v53  ;;  %v2322_v2 = vrot.slane %v2254_v6, %v4088_v55 }
 0x2ac   :  { %v2022_v28 = vadd.f32 %v2016_v1, %v1982_v60  ;;  %v6048_v14 = vadd.f32 %v2055_v4, %v2021_v18  ;;  %v6051_v7 = vmul.f32 %v2398_v36, %v5665_v24  ;;  %v2362_v32 = vrot.slane %v2254_v6, %v4073_v50 }
 0x2ad   :  { %v2366_v26 = vrot.slane %v2253_v61, %v4073_v50  ;;  %v2057_v40 = vadd.f32 %v2051_v22, %v2017_v63  ;;  %v6060_v49 = vmul.f32 %v2286_v42, %v5766_v17  ;;  %v6063_v60 = vmul.f32 %v2326_v3, %v5644_v27 }
 0x2ae   :  { %v6055_v16 = vpop.permute.xlu0 %2423  ;;  %v6057_v0 = vadd.f32 %v2056_v54, %v2022_v28  ;;  %v6065_v18 = vpop.permute.xlu1 %2073  ;;  %v6068_v39 = vmul.f32 %v2282_v35, %v5766_v17  ;;  %v6071_v4 = vmul.f32 %v2322_v2, %v5644_v27  ;;  %v6074_v36 = vmul.f32 %v2362_v32, %v5657_v44 }
 0x2af   :  { %7034 = vst [vmem:[#allocation23_spill] sm:$0xff] %v6055_v16  ;;  %v2402_v22 = vrot.slane %v2254_v6, %v4091_v56  ;;  %v6078_v12 = vmul.f32 %v2366_v26, %v5657_v44  ;;  %v2406_v48 = vrot.slane %v2253_v61, %v4091_v56  ;;  %v2079_v5 = vsel %vm244_vm1, %v2064_v10, %v5833_v15 }
 0x2b0   :  { %v2078_v59 = vsel %vm244_vm1, %v5833_v15, %v6039_v29  ;;  %v2092_v1 = vrot.slane %v2079_v5, %v4083_v53  ;;  %v2132_v30 = vrot.slane %v2079_v5, %v4088_v55  ;;  %v6094_v54 = vsel %vm602_vm3, %v6033_v41, %v6014_v20 }
 0x2b1   :  { %7035 = vst [vmem:[#allocation27_spill] sm:$0xff] %v6094_v54  ;;  %v2080_v61 = vsel %vm244_vm1, %v6065_v18, %v2064_v10  ;;  %v2172_v6 = vrot.slane %v2079_v5, %v4073_v50  ;;  %v2212_v42 = vrot.slane %v2079_v5, %v4091_v56  ;;  %v2096_v15 = vrot.slane %v2078_v59, %v4083_v53 }
 0x2b2   :  { %v2136_v3 = vrot.slane %v2078_v59, %v4088_v55  ;;  %v6104_v63 = vmul.f32 %v2402_v22, %v5665_v24  ;;  %v2110_v28 = vmul.f32 %v2092_v1, %v5748_v58  ;;  %v2176_v35 = vrot.slane %v2078_v59, %v4073_v50  ;;  %v6109_v32 = vpop.permute.xlu0 %2425 }
 0x2b3   :  { %v2216_v2 = vrot.slane %v2078_v59, %v4091_v56  ;;  %v6112_v10 = vmul.f32 %v2406_v48, %v5665_v24  ;;  %v2150_v26 = vmul.f32 %v2132_v30, %v5620_v34  ;;  %v2190_v5 = vmul.f32 %v2172_v6, %v5758_v45 }
 0x2b4   :  { %7036 = vst [vmem:[#allocation19_spill] sm:$0xff] %v6104_v63  ;;  %v2111_v20 = vmul.f32 %v2096_v15, %v5748_v58  ;;  %v2116_v22 = vadd.f32 %v2110_v28, %v5972_v52  ;;  %v2230_v19 = vmul.f32 %v2212_v42, %v5632_v37  ;;  %v2151_v1 = vmul.f32 %v2136_v3, %v5620_v34  ;;  %v2070_v28 = vpop.permute.xlu1 %2069 }
 0x2b5   :  { %v2444_v59 = vrot.slane %v6094_v54, %v4083_v53  ;;  %v2191_v48 = vmul.f32 %v2176_v35, %v5758_v45  ;;  %v2484_v30 = vrot.slane %v6094_v54, %v4088_v55  ;;  %v2524_v6 = vrot.slane %v6094_v54, %v4073_v50 }
 0x2b6   :  { %v2117_v44 = vadd.f32 %v2111_v20, %v5989_v33  ;;  %v2156_v15 = vadd.f32 %v2150_v26, %v2116_v22  ;;  %v2231_v52 = vmul.f32 %v2216_v2, %v5632_v37  ;;  %v2088_v42 = vrot.slane %v2080_v61, %v4083_v53  ;;  %v6144_v63 = vpop.permute.xlu0 %2427 }
 0x2b7   :  { %v2128_v3 = vrot.slane %v2080_v61, %v4088_v55  ;;  %v6132_v27 = vmul.f32 %v2444_v59, %v5675_v9  ;;  %v6135_v33 = vmul.f32 %v2484_v30, %v5681_v21  ;;  %v6140_v26 = vmul.f32 %v2524_v6, %v5691_v23 }
 0x2b8   :  { %v2157_v24 = vadd.f32 %v2151_v1, %v2117_v44  ;;  %v2196_v35 = vadd.f32 %v2190_v5, %v2156_v15  ;;  %v2109_v2 = vmul.f32 %v2088_v42, %v5748_v58  ;;  %v2168_v22 = vrot.slane %v2080_v61, %v4073_v50 }
 0x2b9   :  { %7037 = vst [vmem:[#allocation20_spill] sm:$0xff] %v6135_v33  ;;  %7038 = vst [vmem:[#allocation24_spill] sm:$0xff] %v6140_v26  ;;  %v2208_v1 = vrot.slane %v2080_v61, %v4091_v56  ;;  %v2077_v59 = vsel %vm244_vm1, %v6039_v29, %v2070_v28  ;;  %v6154_v5 = vsel %vm602_vm3, %v6055_v16, %v6109_v32 }
 0x2ba   :  { %v2197_v44 = vadd.f32 %v2191_v48, %v2157_v24  ;;  %v6156_v30 = vadd.f32 %v2230_v19, %v2196_v35  ;;  %v2115_v6 = vadd.f32 %v2109_v2, %v2057_v40  ;;  %v2149_v15 = vmul.f32 %v2128_v3, %v5620_v34  ;;  %v2072_v40 = vpop.permute.xlu1 %2071 }
 0x2bb   :  { %v2100_v42 = vrot.slane %v2077_v59, %v4083_v53  ;;  %v2189_v61 = vmul.f32 %v2168_v22, %v5758_v45  ;;  %v2140_v48 = vrot.slane %v2077_v59, %v4088_v55  ;;  %v2180_v29 = vrot.slane %v2077_v59, %v4073_v50 }
 0x2bc   :  { %v6160_v24 = vadd.f32 %v2231_v52, %v2197_v44  ;;  %v2155_v20 = vadd.f32 %v2149_v15, %v2115_v6  ;;  %v2220_v54 = vrot.slane %v2077_v59, %v4091_v56  ;;  %v2456_v19 = vrot.slane %v6154_v5, %v4083_v53  ;;  %v6178_v15 = vpop.permute.xlu0 %2761 }
 0x2bd   :  { %v2112_v26 = vmul.f32 %v2100_v42, %v5748_v58  ;;  %v2229_v3 = vmul.f32 %v2208_v1, %v5632_v37  ;;  %v2152_v52 = vmul.f32 %v2140_v48, %v5620_v34  ;;  %v2496_v35 = vrot.slane %v6154_v5, %v4088_v55  ;;  %7039 = vst [vmem:[#allocation18_spill] sm:$0xff] %v6178_v15 }
 0x2be   :  { %v2536_v2 = vrot.slane %v6154_v5, %v4073_v50  ;;  %v2195_v22 = vadd.f32 %v2189_v61, %v2155_v20  ;;  %v2192_v6 = vmul.f32 %v2180_v29, %v5758_v45  ;;  %v2232_v59 = vmul.f32 %v2220_v54, %v5632_v37 }
 0x2bf   :  { %v2118_v44 = vadd.f32 %v2112_v26, %v6021_v8  ;;  %v6181_v42 = vmul.f32 %v2456_v19, %v5675_v9  ;;  %v6184_v1 = vmul.f32 %v2496_v35, %v5681_v21  ;;  %v2075_v20 = vsel %vm244_vm1, %v2072_v40, %v6065_v18 }
 0x2c0   :  { %v6187_v48 = vmul.f32 %v2536_v2, %v5691_v23  ;;  %v2235_v8 = vadd.f32 %v2229_v3, %v2195_v22  ;;  %v2076_v54 = vsel %vm244_vm1, %v2070_v28, %v2072_v40  ;;  %v2108_v61 = vrot.slane %v2075_v20, %v4083_v53 }
 0x2c1   :  { %v2158_v26 = vadd.f32 %v2152_v52, %v2118_v44  ;;  %v2576_v29 = vrot.slane %v6154_v5, %v4091_v56  ;;  %v2104_v19 = vrot.slane %v2076_v54, %v4083_v53  ;;  %v2144_v35 = vrot.slane %v2076_v54, %v4088_v55 }
 0x2c2   :  { %v2148_v2 = vrot.slane %v2075_v20, %v4088_v55  ;;  %v2293_v15 = vadd.f32 %v5952_v38, %v2235_v8  ;;  %v2114_v18 = vmul.f32 %v2108_v61, %v5748_v58  ;;  %v2184_v3 = vrot.slane %v2076_v54, %v4073_v50 }
 0x2c3   :  { %v2198_v33 = vadd.f32 %v2192_v6, %v2158_v26  ;;  %v2113_v28 = vmul.f32 %v2104_v19, %v5748_v58  ;;  %v2153_v40 = vmul.f32 %v2144_v35, %v5620_v34  ;;  %v2188_v5 = vrot.slane %v2075_v20, %v4073_v50  ;;  %v6210_v6 = vpop.permute.xlu0 %2763 }
 0x2c4   :  { %v2154_v52 = vmul.f32 %v2148_v2, %v5620_v34  ;;  %v2333_v22 = vadd.f32 %v5958_v46, %v2293_v15  ;;  %v2120_v16 = vadd.f32 %v2114_v18, %v6057_v0  ;;  %v2193_v38 = vmul.f32 %v2184_v3, %v5758_v45 }
 0x2c5   :  { %v2238_v44 = vadd.f32 %v2232_v59, %v2198_v33  ;;  %v2119_v8 = vadd.f32 %v2113_v28, %v6048_v14  ;;  %v2194_v26 = vmul.f32 %v2188_v5, %v5758_v45  ;;  %v2224_v58 = vrot.slane %v2076_v54, %v4091_v56 }
 0x2c6   :  { %v2228_v61 = vrot.slane %v2075_v20, %v4091_v56  ;;  %v2373_v34 = vadd.f32 %v5964_v57, %v2333_v22  ;;  %v2160_v46 = vadd.f32 %v2154_v52, %v2120_v16  ;;  %v2431_v0 = vsel %vm602_vm3, %v6144_v63, %v6033_v41 }
 0x2c7   :  { %v2296_v19 = vadd.f32 %v5998_v11, %v2238_v44  ;;  %v2159_v33 = vadd.f32 %v2153_v40, %v2119_v8  ;;  %v2233_v59 = vmul.f32 %v2224_v58, %v5632_v37  ;;  %v2432_v45 = vsel %vm602_vm3, %v6109_v32, %v6144_v63  ;;  %v6239_v32 = vpop.permute.xlu0 %2765  ;;  %v2244_v40 = vpop.permute.xlu1 %2243 }
 0x2c8   :  { %v2234_v14 = vmul.f32 %v2228_v61, %v5632_v37  ;;  %v2413_v57 = vadd.f32 %v5975_v25, %v2373_v34  ;;  %v2200_v16 = vadd.f32 %v2194_v26, %v2160_v46  ;;  %v2460_v15 = vrot.slane %v2432_v45, %v4083_v53 }
 0x2c9   :  { %v2336_v11 = vadd.f32 %v6003_v51, %v2296_v19  ;;  %v2199_v20 = vadd.f32 %v2193_v38, %v2159_v33  ;;  %v2464_v41 = vrot.slane %v2431_v0, %v4083_v53  ;;  %v2500_v54 = vrot.slane %v2432_v45, %v4088_v55 }
 0x2ca   :  { %v2504_v35 = vrot.slane %v2431_v0, %v4088_v55  ;;  %v6235_v37 = vadd.f32 %v6132_v27, %v2413_v57  ;;  %v2588_v63 = vmul.f32 %v2576_v29, %v5697_v31  ;;  %v2240_v25 = vadd.f32 %v2234_v14, %v2200_v16  ;;  %v7041_v16 = vld [vmem:[#allocation39_spill] sm:$0xff] }
 0x2cb   :  { %v2376_v2 = vadd.f32 %v6008_v13, %v2336_v11  ;;  %v2239_v51 = vadd.f32 %v2233_v59, %v2199_v20  ;;  %v2469_v18 = vmul.f32 %v2460_v15, %v5675_v9  ;;  %v2470_v3 = vmul.f32 %v2464_v41, %v5675_v9 }
 0x2cc   :  { %v2509_v28 = vmul.f32 %v2500_v54, %v5681_v21  ;;  %v2298_v27 = vadd.f32 %v6060_v49, %v2240_v25  ;;  %v2510_v5 = vmul.f32 %v2504_v35, %v5681_v21  ;;  %v2540_v13 = vrot.slane %v2432_v45, %v4073_v50 }
 0x2cd   :  { %v2416_v52 = vadd.f32 %v6051_v7, %v2376_v2  ;;  %v2297_v29 = vadd.f32 %v6068_v39, %v2239_v51  ;;  %v2544_v22 = vrot.slane %v2431_v0, %v4073_v50  ;;  %v2580_v44 = vrot.slane %v2432_v45, %v4091_v56  ;;  %v7040_v45 = vld [vmem:[#allocation19_spill] sm:$0xff]  ;;  %v7042_v2 = vld [vmem:[#allocation40_spill] sm:$0xff] }
 0x2ce   :  { %v2584_v38 = vrot.slane %v2431_v0, %v4091_v56  ;;  %v2338_v26 = vadd.f32 %v6063_v60, %v2298_v27  ;;  %v2549_v7 = vmul.f32 %v2540_v13, %v5691_v23  ;;  %v2256_v49 = vsel %vm423_vm2, %v2244_v40, %v5940_v62  ;;  %v6268_v0 = vpop.permute.xlu0 %2767 }
 0x2cf   :  { %v2474_v8 = vadd.f32 %v6181_v42, %v2416_v52  ;;  %v2337_v58 = vadd.f32 %v6071_v4, %v2297_v29  ;;  %v2550_v39 = vmul.f32 %v2544_v22, %v5691_v23  ;;  %v2589_v61 = vmul.f32 %v2580_v44, %v5697_v31  ;;  %v7043_v52 = vld [vmem:[#allocation50_spill] sm:$0xff] }
 0x2d0   :  { %v2590_v34 = vmul.f32 %v2584_v38, %v5697_v31  ;;  %v2378_v42 = vadd.f32 %v6078_v12, %v2338_v26  ;;  %v2257_v60 = vsel %vm423_vm2, %v5869_v43, %v2244_v40  ;;  %v2274_v46 = vrot.slane %v2256_v49, %v4083_v53  ;;  %v2422_v40 = vpop.permute.xlu1 %2421 }
 0x2d1   :  { %v2514_v19 = vadd.f32 %v6184_v1, %v2474_v8  ;;  %v2377_v62 = vadd.f32 %v6074_v36, %v2337_v58  ;;  %v2270_v4 = vrot.slane %v2257_v60, %v4083_v53  ;;  %v2310_v33 = vrot.slane %v2257_v60, %v4088_v55  ;;  %v7046_v58 = vld [vmem:[#allocation23_spill] sm:$0xff] }
 0x2d2   :  { %v2314_v59 = vrot.slane %v2256_v49, %v4088_v55  ;;  %v2418_v12 = vadd.f32 %v6112_v10, %v2378_v42  ;;  %v2289_v14 = vmul.f32 %v2274_v46, %v5766_v17  ;;  %v2350_v43 = vrot.slane %v2257_v60, %v4073_v50  ;;  %v7047_v46 = vld [vmem:[#allocation22_spill] sm:$0xff] }
 0x2d3   :  { %v2554_v1 = vadd.f32 %v6187_v48, %v2514_v19  ;;  %v2417_v57 = vadd.f32 %v7040_v45, %v2377_v62  ;;  %v2288_v11 = vmul.f32 %v2270_v4, %v5766_v17  ;;  %v2328_v36 = vmul.f32 %v2310_v33, %v7041_v16 }
 0x2d4   :  { %v2329_v15 = vmul.f32 %v2314_v59, %v7041_v16  ;;  %v2476_v41 = vadd.f32 %v2470_v3, %v2418_v12  ;;  %v2295_v54 = vadd.f32 %v2289_v14, %v6160_v24  ;;  %v2354_v48 = vrot.slane %v2256_v49, %v4073_v50 }
 0x2d5   :  { %v2594_v20 = vadd.f32 %v2588_v63, %v2554_v1  ;;  %v2475_v35 = vadd.f32 %v2469_v18, %v2417_v57  ;;  %v2294_v10 = vadd.f32 %v2288_v11, %v6156_v30  ;;  %v2368_v25 = vmul.f32 %v2350_v43, %v7042_v2  ;;  %v6289_v63 = vpop.permute.xlu0 %2935  ;;  %v7044_v18 = vld [vmem:[#allocation45_spill] sm:$0xff]  ;;  %v7045_v30 = vld [vmem:[#allocation72_spill] sm:$0xff]  ;;  %v7049_v11 = vld [vmem:[#allocation63_spill] sm:$0xff] }
 0x2d6   :  { %v2390_v51 = vrot.slane %v2257_v60, %v4091_v56  ;;  %v2516_v27 = vadd.f32 %v2510_v5, %v2476_v41  ;;  %v2335_v13 = vadd.f32 %v2329_v15, %v2295_v54  ;;  %v2369_v29 = vmul.f32 %v2354_v48, %v7042_v2  ;;  %v7050_v41 = vld [vmem:[#allocation65_spill] sm:$0xff] }
 0x2d7   :  { %v2634_v17 = vadd.f32 %v7043_v52, %v2594_v20  ;;  %v2515_v3 = vadd.f32 %v2509_v28, %v2475_v35  ;;  %v2334_v24 = vadd.f32 %v2328_v36, %v2294_v10  ;;  %v2394_v22 = vrot.slane %v2256_v49, %v4091_v56  ;;  %v6315_v20 = vpop.permute.xlu1 %2757  ;;  %v7051_v10 = vld [vmem:[#allocation20_spill] sm:$0xff] }
 0x2d8   :  { %v2408_v44 = vmul.f32 %v2390_v51, %v7044_v18  ;;  %v2556_v8 = vadd.f32 %v2550_v39, %v2516_v27  ;;  %v2375_v26 = vadd.f32 %v2369_v29, %v2335_v13  ;;  %v2434_v19 = vsel %vm602_vm3, %v2422_v40, %v7046_v58  ;;  %v7053_v13 = vld [vmem:[#allocation18_spill] sm:$0xff]  ;;  %v7055_v58 = vld [vmem:[#allocation27_spill] sm:$0xff] }
 0x2d9   :  { %v2674_v38 = vadd.f32 %v7045_v30, %v2634_v17  ;;  %v2555_v5 = vadd.f32 %v2549_v7, %v2515_v3  ;;  %v2374_v42 = vadd.f32 %v2368_v25, %v2334_v24  ;;  %v2409_v60 = vmul.f32 %v2394_v22, %v7044_v18  ;;  %v7048_v7 = vld [vmem:[#allocation67_spill] sm:$0xff]  ;;  %v7052_v25 = vld [vmem:[#allocation73_spill] sm:$0xff] }
 0x2da   :  { %v2435_v28 = vsel %vm602_vm3, %v7047_v46, %v2422_v40  ;;  %v2596_v62 = vadd.f32 %v2590_v34, %v2556_v8  ;;  %v2452_v4 = vrot.slane %v2434_v19, %v4083_v53  ;;  %v2492_v12 = vrot.slane %v2434_v19, %v4088_v55  ;;  %v6309_v34 = vpop.permute.xlu0 %2939  ;;  %v7054_v8 = vld [vmem:[#allocation54_spill] sm:$0xff] }
 0x2db   :  { %v2448_v49 = vrot.slane %v2435_v28, %v4083_v53  ;;  %v2488_v39 = vrot.slane %v2435_v28, %v4088_v55  ;;  %v2595_v33 = vadd.f32 %v2589_v61, %v2555_v5  ;;  %v2414_v59 = vadd.f32 %v2408_v44, %v2374_v42  ;;  %v7057_v42 = vld [vmem:[#allocation13_spill] sm:$0xff] }
 0x2dc   :  { %v2415_v1 = vadd.f32 %v2409_v60, %v2375_v26  ;;  %v2636_v14 = vadd.f32 %v7048_v7, %v2596_v62  ;;  %v2467_v45 = vmul.f32 %v2452_v4, %v5675_v9  ;;  %v2507_v36 = vmul.f32 %v2492_v12, %v5681_v21  ;;  %v2760_v62 = vpop.permute.xlu1 %2759 }
 0x2dd   :  { %v2466_v43 = vmul.f32 %v2448_v49, %v5675_v9  ;;  %v2506_v57 = vmul.f32 %v2488_v39, %v5681_v21  ;;  %v2635_v16 = vadd.f32 %v7049_v11, %v2595_v33  ;;  %v2528_v61 = vrot.slane %v2435_v28, %v4073_v50  ;;  %v7059_v33 = vld [vmem:[#allocation14_spill] sm:$0xff] }
 0x2de   :  { %v2532_v15 = vrot.slane %v2434_v19, %v4073_v50  ;;  %v6318_v54 = vadd.f32 %v7050_v41, %v2636_v14  ;;  %v2473_v35 = vadd.f32 %v2467_v45, %v2415_v1  ;;  %v2568_v9 = vrot.slane %v2435_v28, %v4091_v56  ;;  %v7060_v1 = vld [vmem:[#allocation46_spill] sm:$0xff] }
 0x2df   :  { %v2472_v48 = vadd.f32 %v2466_v43, %v2414_v59  ;;  %v2511_v2 = vadd.f32 %v7051_v10, %v6235_v37  ;;  %v6324_v51 = vadd.f32 %v7052_v25, %v2635_v16  ;;  %v2546_v21 = vmul.f32 %v2528_v61, %v5691_v23  ;;  %v7061_v43 = vld [vmem:[#allocation59_spill] sm:$0xff]  ;;  %v7064_v61 = vld [vmem:[#allocation49_spill] sm:$0xff] }
 0x2e0   :  { %v2572_v40 = vrot.slane %v2434_v19, %v4091_v56  ;;  %v2513_v17 = vadd.f32 %v2507_v36, %v2473_v35  ;;  %v2547_v27 = vmul.f32 %v2532_v15, %v5691_v23  ;;  %v2771_v29 = vsel %vm1061_vm4, %v7053_v13, %v6210_v6  ;;  %v6339_v23 = vpop.permute.xlu0 %2941  ;;  %v7066_v25 = vld [vmem:[#allocation71_spill] sm:$0xff] }
 0x2e1   :  { %v2512_v52 = vadd.f32 %v2506_v57, %v2472_v48  ;;  %v2586_v3 = vmul.f32 %v2568_v9, %v5697_v31  ;;  %v2790_v37 = vrot.slane %v2771_v29, %v4083_v53  ;;  %v2830_v24 = vrot.slane %v2771_v29, %v4088_v55  ;;  %v7062_v57 = vld [vmem:[#allocation48_spill] sm:$0xff]  ;;  %v7065_v9 = vld [vmem:[#allocation70_spill] sm:$0xff] }
 0x2e2   :  { %v2870_v22 = vrot.slane %v2771_v29, %v4073_v50  ;;  %v2553_v44 = vadd.f32 %v2547_v27, %v2513_v17  ;;  %v2587_v30 = vmul.f32 %v2572_v40, %v5697_v31  ;;  %v2714_v26 = vadd.f32 %v7054_v8, %v2674_v38  ;;  %v7058_v38 = vld [vmem:[#allocation47_spill] sm:$0xff] }
 0x2e3   :  { %v2552_v18 = vadd.f32 %v2546_v21, %v2512_v52  ;;  %v7056_v19 = vrot.slane %v7055_v58, %v4091_v56  ;;  %v2805_v60 = vmul.f32 %v2790_v37, %v7057_v42  ;;  %v2910_v46 = vrot.slane %v2771_v29, %v4091_v56 }
 0x2e4   :  { %v2770_v28 = vsel %vm1061_vm4, %v6210_v6, %v6239_v32  ;;  %v2593_v4 = vadd.f32 %v2587_v30, %v2553_v44  ;;  %v2845_v39 = vmul.f32 %v2830_v24, %v7058_v38  ;;  %v2754_v59 = vadd.f32 %v7059_v33, %v2714_v26  ;;  %v7063_v6 = vld [vmem:[#allocation24_spill] sm:$0xff]  ;;  %v6374_v52 = vpop.permute.xlu0 %2943  ;;  %v7068_v24 = vld [vmem:[#allocation58_spill] sm:$0xff] }
 0x2e5   :  { %v2585_v5 = vmul.f32 %v7056_v19, %v5697_v31  ;;  %v2592_v49 = vadd.f32 %v2586_v3, %v2552_v18  ;;  %v2885_v12 = vmul.f32 %v2870_v22, %v7060_v1  ;;  %v2794_v31 = vrot.slane %v2770_v28, %v4083_v53  ;;  %v7067_v3 = vld [vmem:[#allocation62_spill] sm:$0xff]  ;;  %v7069_v18 = vld [vmem:[#allocation53_spill] sm:$0xff] }
 0x2e6   :  { %v2834_v7 = vrot.slane %v2770_v28, %v4088_v55  ;;  %v2874_v14 = vrot.slane %v2770_v28, %v4073_v50  ;;  %v2633_v11 = vadd.f32 %v7062_v57, %v2593_v4  ;;  %v2551_v16 = vadd.f32 %v7063_v6, %v2511_v2 }
 0x2e7   :  { %v2632_v45 = vadd.f32 %v7061_v43, %v2592_v49  ;;  %v2772_v36 = vsel %vm1061_vm4, %v2760_v62, %v7053_v13  ;;  %v6364_v15 = vmul.f32 %v2910_v46, %v7064_v61  ;;  %v2806_v41 = vmul.f32 %v2794_v31, %v7057_v42  ;;  %v7072_v49 = vld [vmem:[#allocation21_spill] sm:$0xff] }
 0x2e8   :  { %v2846_v48 = vmul.f32 %v2834_v7, %v7058_v38  ;;  %v2914_v35 = vrot.slane %v2770_v28, %v4091_v56  ;;  %v2673_v21 = vadd.f32 %v7066_v25, %v2633_v11  ;;  %v2591_v40 = vadd.f32 %v2585_v5, %v2551_v16  ;;  %v7070_v5 = vld [vmem:[#allocation15_spill] sm:$0xff]  ;;  %v7071_v28 = vld [vmem:[#allocation64_spill] sm:$0xff]  ;;  %v6395_v16 = vpop.permute.xlu0 %2945  ;;  %v7074_v25 = vld [vmem:[#allocation69_spill] sm:$0xff] }
 0x2e9   :  { %v2672_v10 = vadd.f32 %v7065_v9, %v2632_v45  ;;  %v2773_v2 = vsel %vm1061_vm4, %v6315_v20, %v2760_v62  ;;  %v2812_v17 = vadd.f32 %v2806_v41, %v2754_v59  ;;  %v2886_v27 = vmul.f32 %v2874_v14, %v7060_v1  ;;  %v7073_v45 = vld [vmem:[#allocation51_spill] sm:$0xff] }
 0x2ea   :  { %v2782_v13 = vrot.slane %v2773_v2, %v4083_v53  ;;  %v2786_v29 = vrot.slane %v2772_v36, %v4083_v53  ;;  %v2713_v37 = vadd.f32 %v7067_v3, %v2673_v21  ;;  %v2631_v22 = vadd.f32 %v7068_v24, %v2591_v40 }
 0x2eb   :  { %v2712_v44 = vadd.f32 %v7069_v18, %v2672_v10  ;;  %v2826_v30 = vrot.slane %v2772_v36, %v4088_v55  ;;  %v2852_v8 = vadd.f32 %v2846_v48, %v2812_v17  ;;  %v2926_v26 = vmul.f32 %v2914_v35, %v7064_v61  ;;  %v2938_v17 = vpop.permute.xlu1 %2937 }
 0x2ec   :  { %v2803_v58 = vmul.f32 %v2782_v13, %v7057_v42  ;;  %v2822_v19 = vrot.slane %v2773_v2, %v4088_v55  ;;  %v2753_v46 = vadd.f32 %v7070_v5, %v2713_v37  ;;  %v2671_v62 = vadd.f32 %v7071_v28, %v2631_v22  ;;  %v7076_v13 = vld [vmem:[#allocation68_spill] sm:$0xff] }
 0x2ed   :  { %v2752_v4 = vadd.f32 %v7072_v49, %v2712_v44  ;;  %v2804_v33 = vmul.f32 %v2786_v29, %v7057_v42  ;;  %v2892_v59 = vadd.f32 %v2886_v27, %v2852_v8  ;;  %v2844_v31 = vmul.f32 %v2826_v30, %v7058_v38  ;;  %v7075_v27 = vld [vmem:[#allocation55_spill] sm:$0xff]  ;;  %v7078_v44 = vld [vmem:[#allocation16_spill] sm:$0xff] }
 0x2ee   :  { %v2862_v7 = vrot.slane %v2773_v2, %v4073_v50  ;;  %v2866_v14 = vrot.slane %v2772_v36, %v4073_v50  ;;  %v2811_v43 = vadd.f32 %v2805_v60, %v2753_v46  ;;  %v2711_v57 = vadd.f32 %v7073_v45, %v2671_v62 }
 0x2ef   :  { %v2810_v11 = vadd.f32 %v2804_v33, %v2752_v4  ;;  %v2902_v6 = vrot.slane %v2773_v2, %v4091_v56  ;;  %v6397_v41 = vadd.f32 %v2926_v26, %v2892_v59  ;;  %v2843_v48 = vmul.f32 %v2822_v19, %v7058_v38 }
 0x2f0   :  { %v2883_v35 = vmul.f32 %v2862_v7, %v7060_v1  ;;  %v2906_v9 = vrot.slane %v2772_v36, %v4091_v56  ;;  %v2851_v10 = vadd.f32 %v2845_v39, %v2811_v43  ;;  %v2751_v21 = vadd.f32 %v7074_v25, %v2711_v57 }
 0x2f1   :  { %v2850_v40 = vadd.f32 %v2844_v31, %v2810_v11  ;;  %v2884_v60 = vmul.f32 %v2866_v14, %v7060_v1  ;;  %v2715_v2 = vadd.f32 %v7075_v27, %v6324_v51  ;;  %v2716_v29 = vadd.f32 %v7076_v13, %v6318_v54  ;;  %v7077_v51 = vld [vmem:[#allocation17_spill] sm:$0xff] }
 0x2f2   :  { %v2769_v3 = vsel %vm1061_vm4, %v6239_v32, %v6268_v0  ;;  %v2774_v39 = vsel %vm1061_vm4, %v6268_v0, %v6315_v20  ;;  %v2891_v36 = vadd.f32 %v2885_v12, %v2851_v10  ;;  %v2809_v37 = vadd.f32 %v2803_v58, %v2751_v21  ;;  %v6424_v20 = vpop.permute.xlu1 %3172  ;;  %v6426_v12 = vpop.permute.xlu0 %3113  ;;  %v7079_v13 = vld [vmem:[#allocation57_spill] sm:$0xff] }
 0x2f3   :  { %v2923_v24 = vmul.f32 %v2902_v6, %v7064_v61  ;;  %v2798_v22 = vrot.slane %v2769_v3, %v4083_v53  ;;  %v2755_v18 = vadd.f32 %v7077_v51, %v2715_v2  ;;  %v2756_v54 = vadd.f32 %v7078_v44, %v2716_v29 }
 0x2f4   :  { %v2802_v30 = vrot.slane %v2774_v39, %v4083_v53  ;;  %v2838_v8 = vrot.slane %v2769_v3, %v4088_v55  ;;  %v2849_v32 = vadd.f32 %v2843_v48, %v2809_v37  ;;  %v2890_v26 = vadd.f32 %v2884_v60, %v2850_v40  ;;  %v7081_v37 = vld [vmem:[#allocation60_spill] sm:$0xff] }
 0x2f5   :  { %v2924_v19 = vmul.f32 %v2906_v9, %v7064_v61  ;;  %v2807_v0 = vmul.f32 %v2798_v22, %v7057_v42  ;;  %v2842_v5 = vrot.slane %v2774_v39, %v4088_v55  ;;  %v2878_v28 = vrot.slane %v2769_v3, %v4073_v50 }
 0x2f6   :  { %v2808_v58 = vmul.f32 %v2802_v30, %v7057_v42  ;;  %v2847_v46 = vmul.f32 %v2838_v8, %v7058_v38  ;;  %v2889_v62 = vadd.f32 %v2883_v35, %v2849_v32  ;;  %v2882_v4 = vrot.slane %v2774_v39, %v4073_v50  ;;  %v6449_v25 = vpop.permute.xlu1 %3115 }
 0x2f7   :  { %v2813_v49 = vadd.f32 %v2807_v0, %v2755_v18  ;;  %v2918_v33 = vrot.slane %v2769_v3, %v4091_v56  ;;  %v2931_v59 = vadd.f32 %v6364_v15, %v2891_v36  ;;  %v2848_v7 = vmul.f32 %v2842_v5, %v7058_v38 }
 0x2f8   :  { %v2814_v31 = vadd.f32 %v2808_v58, %v2756_v54  ;;  %v2922_v14 = vrot.slane %v2774_v39, %v4091_v56  ;;  %v2929_v42 = vadd.f32 %v2923_v24, %v2889_v62  ;;  %v2887_v45 = vmul.f32 %v2878_v28, %v7060_v1  ;;  %v7080_v39 = vld [vmem:[#allocation56_spill] sm:$0xff]  ;;  %v7082_v58 = vld [vmem:[#allocation61_spill] sm:$0xff] }
 0x2f9   :  { %v2853_v43 = vadd.f32 %v2847_v46, %v2813_v49  ;;  %v2888_v57 = vmul.f32 %v2882_v4, %v7060_v1  ;;  %v2927_v6 = vmul.f32 %v2918_v33, %v7064_v61  ;;  %v2951_v48 = vsel %vm1240_vm5, %v6289_v63, %v2938_v17  ;;  %v6451_v1 = vpop.permute.xlu0 %3117 }
 0x2fa   :  { %v2854_v11 = vadd.f32 %v2848_v7, %v2814_v31  ;;  %v2950_v15 = vsel %vm1240_vm5, %v2938_v17, %v6309_v34  ;;  %v2960_v35 = vrot.slane %v2951_v48, %v4083_v53  ;;  %v3000_v9 = vrot.slane %v2951_v48, %v4088_v55  ;;  %v6473_v28 = vpop.permute.xlu1 %3212 }
 0x2fb   :  { %v2893_v38 = vadd.f32 %v2887_v45, %v2853_v43  ;;  %v3040_v10 = vrot.slane %v2951_v48, %v4073_v50  ;;  %v2930_v21 = vadd.f32 %v2924_v19, %v2890_v26  ;;  %v2928_v40 = vmul.f32 %v2922_v14, %v7064_v61 }
 0x2fc   :  { %v2964_v60 = vrot.slane %v2950_v15, %v4083_v53  ;;  %v3004_v27 = vrot.slane %v2950_v15, %v4088_v55  ;;  %v2894_v2 = vadd.f32 %v2888_v57, %v2854_v11  ;;  %v2981_v29 = vmul.f32 %v2960_v35, %v7079_v13 }
 0x2fd   :  { %v2933_v17 = vadd.f32 %v2927_v6, %v2893_v38  ;;  %v3080_v3 = vrot.slane %v2951_v48, %v4091_v56  ;;  %v3021_v36 = vmul.f32 %v3000_v9, %v7080_v39  ;;  %v3061_v24 = vmul.f32 %v3040_v10, %v7081_v37  ;;  %v6475_v62 = vpop.permute.xlu0 %3119 }
 0x2fe   :  { %v2982_v22 = vmul.f32 %v2964_v60, %v7079_v13  ;;  %v3022_v51 = vmul.f32 %v3004_v27, %v7080_v39  ;;  %v2987_v18 = vadd.f32 %v2981_v29, %v2929_v42  ;;  %v3044_v61 = vrot.slane %v2950_v15, %v4073_v50  ;;  %v6504_v60 = vpop.permute.xlu1 %3252 }
 0x2ff   :  { %v3084_v44 = vrot.slane %v2950_v15, %v4091_v56  ;;  %v2949_v54 = vsel %vm1240_vm5, %v6309_v34, %v6339_v23  ;;  %v2934_v19 = vadd.f32 %v2928_v40, %v2894_v2  ;;  %v3101_v5 = vmul.f32 %v3080_v3, %v7082_v58 }
 0x300   :  { %v2988_v30 = vadd.f32 %v2982_v22, %v2930_v21  ;;  %v2968_v8 = vrot.slane %v2949_v54, %v4083_v53  ;;  %v3008_v32 = vrot.slane %v2949_v54, %v4088_v55  ;;  %v3048_v26 = vrot.slane %v2949_v54, %v4073_v50 }
 0x301   :  { %v3027_v0 = vadd.f32 %v3021_v36, %v2987_v18  ;;  %v3088_v46 = vrot.slane %v2949_v54, %v4091_v56  ;;  %v3062_v34 = vmul.f32 %v3044_v61, %v7081_v37  ;;  %v3102_v4 = vmul.f32 %v3084_v44, %v7082_v58  ;;  %v6506_v27 = vpop.permute.xlu0 %3121 }
 0x302   :  { %v3028_v49 = vadd.f32 %v3022_v51, %v2988_v30  ;;  %v2983_v33 = vmul.f32 %v2968_v8, %v7079_v13  ;;  %v3023_v7 = vmul.f32 %v3008_v32, %v7080_v39  ;;  %v3063_v14 = vmul.f32 %v3048_v26, %v7081_v37 }
 0x303   :  { %v3067_v31 = vadd.f32 %v3061_v24, %v3027_v0  ;;  %v2948_v42 = vsel %vm1240_vm5, %v6339_v23, %v6374_v52  ;;  %v2947_v11 = vsel %vm1240_vm5, %v6374_v52, %v6395_v16  ;;  %v3103_v6 = vmul.f32 %v3088_v46, %v7082_v58 }
 0x304   :  { %v2989_v43 = vadd.f32 %v2983_v33, %v2931_v59  ;;  %v2972_v45 = vrot.slane %v2948_v42, %v4083_v53  ;;  %v3012_v57 = vrot.slane %v2948_v42, %v4088_v55  ;;  %v3052_v48 = vrot.slane %v2948_v42, %v4073_v50 }
 0x305   :  { %v3092_v15 = vrot.slane %v2948_v42, %v4091_v56  ;;  %v2952_v23 = vsel %vm1240_vm5, %v6395_v16, %v6289_v63  ;;  %v3107_v59 = vadd.f32 %v3101_v5, %v3067_v31  ;;  %v3068_v38 = vadd.f32 %v3062_v34, %v3028_v49  ;;  %v3124_v49 = vpop.permute.xlu0 %3123 }
 0x306   :  { %v3029_v35 = vadd.f32 %v3023_v7, %v2989_v43  ;;  %v2984_v9 = vmul.f32 %v2972_v45, %v7079_v13  ;;  %v3024_v10 = vmul.f32 %v3012_v57, %v7080_v39  ;;  %v3064_v52 = vmul.f32 %v3052_v48, %v7081_v37  ;;  %v7083_v43 = vld [vmem:[#allocation52_spill] sm:$0xff] }
 0x307   :  { %v2976_v21 = vrot.slane %v2947_v11, %v4083_v53  ;;  %v2980_v40 = vrot.slane %v2952_v23, %v4083_v53  ;;  %v3104_v63 = vmul.f32 %v3092_v15, %v7082_v58  ;;  %v3016_v16 = vrot.slane %v2947_v11, %v4088_v55 }
 0x308   :  { %v2990_v2 = vadd.f32 %v2984_v9, %v6397_v41  ;;  %v3020_v29 = vrot.slane %v2952_v23, %v4088_v55  ;;  %v3056_v24 = vrot.slane %v2947_v11, %v4073_v50  ;;  %v3060_v22 = vrot.slane %v2952_v23, %v4073_v50 }
 0x309   :  { %v2985_v3 = vmul.f32 %v2976_v21, %v7079_v13  ;;  %v2986_v36 = vmul.f32 %v2980_v40, %v7079_v13  ;;  %v3069_v51 = vadd.f32 %v3063_v14, %v3029_v35  ;;  %v3025_v61 = vmul.f32 %v3016_v16, %v7080_v39  ;;  %v6554_v40 = vpop.permute.xlu0 %3291 }
 0x30a   :  { %v3030_v18 = vadd.f32 %v3024_v10, %v2990_v2  ;;  %v3026_v41 = vmul.f32 %v3020_v29, %v7080_v39  ;;  %v3065_v30 = vmul.f32 %v3056_v24, %v7081_v37  ;;  %v3066_v8 = vmul.f32 %v3060_v22, %v7081_v37 }
 0x30b   :  { %v2991_v44 = vadd.f32 %v2985_v3, %v2933_v17  ;;  %v2992_v54 = vadd.f32 %v2986_v36, %v2934_v19  ;;  %v3096_v26 = vrot.slane %v2947_v11, %v4091_v56  ;;  %v3100_v13 = vrot.slane %v2952_v23, %v4091_v56  ;;  %v6528_v19 = vpop.permute.xlu1 %3310 }
 0x30c   :  { %v3070_v32 = vadd.f32 %v3064_v52, %v3030_v18  ;;  %v3129_v0 = vsel %vm1419_vm6, %v6426_v12, %v6449_v25  ;;  %v3108_v37 = vadd.f32 %v3102_v4, %v3068_v38  ;;  %v3109_v34 = vadd.f32 %v3103_v6, %v3069_v51 }
 0x30d   :  { %v3031_v5 = vadd.f32 %v3025_v61, %v2991_v44  ;;  %v3032_v46 = vadd.f32 %v3026_v41, %v2992_v54  ;;  %v3138_v39 = vrot.slane %v3129_v0, %v4083_v53  ;;  %v3178_v17 = vrot.slane %v3129_v0, %v4088_v55 }
 0x30e   :  { %v3110_v33 = vadd.f32 %v3104_v63, %v3070_v32  ;;  %v3218_v31 = vrot.slane %v3129_v0, %v4073_v50  ;;  %v3105_v42 = vmul.f32 %v3096_v26, %v7082_v58  ;;  %v3106_v57 = vmul.f32 %v3100_v13, %v7082_v58 }
 0x30f   :  { %v3071_v7 = vadd.f32 %v3065_v30, %v3031_v5  ;;  %v3072_v14 = vadd.f32 %v3066_v8, %v3032_v46  ;;  %v3159_v45 = vmul.f32 %v3138_v39, %v7083_v43  ;;  %v3199_v11 = vmul.f32 %v3178_v17, %v6424_v20 }
 0x310   :  { %v3128_v48 = vsel %vm1419_vm6, %v6449_v25, %v6451_v1  ;;  %v3127_v4 = vsel %vm1419_vm6, %v6451_v1, %v6475_v62  ;;  %v3258_v15 = vrot.slane %v3129_v0, %v4091_v56  ;;  %v3239_v38 = vmul.f32 %v3218_v31, %v6473_v28 }
 0x311   :  { %v3165_v6 = vadd.f32 %v3159_v45, %v3107_v59  ;;  %v3142_v23 = vrot.slane %v3128_v48, %v4083_v53  ;;  %v3111_v58 = vadd.f32 %v3105_v42, %v3071_v7  ;;  %v3182_v35 = vrot.slane %v3128_v48, %v4088_v55  ;;  %v6552_v59 = vpop.permute.xlu1 %3350 }
 0x312   :  { %v3222_v9 = vrot.slane %v3128_v48, %v4073_v50  ;;  %v3146_v10 = vrot.slane %v3127_v4, %v4083_v53  ;;  %v3112_v25 = vadd.f32 %v3106_v57, %v3072_v14  ;;  %v3186_v21 = vrot.slane %v3127_v4, %v4088_v55 }
 0x313   :  { %v3160_v52 = vmul.f32 %v3142_v23, %v7083_v43  ;;  %v3226_v1 = vrot.slane %v3127_v4, %v4073_v50  ;;  %v3205_v2 = vadd.f32 %v3199_v11, %v3165_v6  ;;  %v3200_v63 = vmul.f32 %v3182_v35, %v6424_v20 }
 0x314   :  { %v3262_v16 = vrot.slane %v3128_v48, %v4091_v56  ;;  %v3161_v29 = vmul.f32 %v3146_v10, %v7083_v43  ;;  %v3240_v36 = vmul.f32 %v3222_v9, %v6473_v28  ;;  %v3201_v24 = vmul.f32 %v3186_v21, %v6424_v20 }
 0x315   :  { %v3166_v3 = vadd.f32 %v3160_v52, %v3108_v37  ;;  %v3266_v22 = vrot.slane %v3127_v4, %v4091_v56  ;;  %v3241_v18 = vmul.f32 %v3226_v1, %v6473_v28  ;;  %v3279_v61 = vmul.f32 %v3258_v15, %v6504_v60  ;;  %v3294_v17 = vpop.permute.xlu1 %3293  ;;  %v3296_v37 = vpop.permute.xlu0 %3295 }
 0x316   :  { %v3167_v51 = vadd.f32 %v3161_v29, %v3109_v34  ;;  %v3126_v41 = vsel %vm1419_vm6, %v6475_v62, %v6506_v27  ;;  %v3280_v44 = vmul.f32 %v3262_v16, %v6504_v60  ;;  %v3125_v13 = vsel %vm1419_vm6, %v6506_v27, %v3124_v49 }
 0x317   :  { %v3150_v54 = vrot.slane %v3126_v41, %v4083_v53  ;;  %v3190_v30 = vrot.slane %v3126_v41, %v4088_v55  ;;  %v3230_v8 = vrot.slane %v3126_v41, %v4073_v50  ;;  %v3270_v26 = vrot.slane %v3126_v41, %v4091_v56 }
 0x318   :  { %v3207_v32 = vadd.f32 %v3201_v24, %v3167_v51  ;;  %v3130_v0 = vsel %vm1419_vm6, %v3124_v49, %v6426_v12  ;;  %v3206_v62 = vadd.f32 %v3200_v63, %v3166_v3  ;;  %v3281_v5 = vmul.f32 %v3266_v22, %v6504_v60 }
 0x319   :  { %v3162_v46 = vmul.f32 %v3150_v54, %v7083_v43  ;;  %v3154_v39 = vrot.slane %v3125_v13, %v4083_v53  ;;  %v3202_v34 = vmul.f32 %v3190_v30, %v6424_v20  ;;  %v3242_v31 = vmul.f32 %v3230_v8, %v6473_v28  ;;  %v6600_v63 = vpop.permute.xlu1 %3390 }
 0x31a   :  { %v3158_v7 = vrot.slane %v3130_v0, %v4083_v53  ;;  %v3194_v27 = vrot.slane %v3125_v13, %v4088_v55  ;;  %v3198_v49 = vrot.slane %v3130_v0, %v4088_v55  ;;  %v3234_v42 = vrot.slane %v3125_v13, %v4073_v50 }
 0x31b   :  { %v3168_v14 = vadd.f32 %v3162_v46, %v3110_v33  ;;  %v3163_v12 = vmul.f32 %v3154_v39, %v7083_v43  ;;  %v3247_v45 = vadd.f32 %v3241_v18, %v3207_v32  ;;  %v3282_v57 = vmul.f32 %v3270_v26, %v6504_v60 }
 0x31c   :  { %v3164_v11 = vmul.f32 %v3158_v7, %v7083_v43  ;;  %v3238_v48 = vrot.slane %v3130_v0, %v4073_v50  ;;  %v3203_v15 = vmul.f32 %v3194_v27, %v6424_v20  ;;  %v3274_v23 = vrot.slane %v3125_v13, %v4091_v56 }
 0x31d   :  { %v3208_v4 = vadd.f32 %v3202_v34, %v3168_v14  ;;  %v3169_v6 = vadd.f32 %v3163_v12, %v3111_v58  ;;  %v3204_v35 = vmul.f32 %v3198_v49, %v6424_v20  ;;  %v3243_v9 = vmul.f32 %v3234_v42, %v6473_v28  ;;  %v3298_v58 = vpop.permute.xlu0 %3297 }
 0x31e   :  { %v3170_v33 = vadd.f32 %v3164_v11, %v3112_v25  ;;  %v3278_v10 = vrot.slane %v3130_v0, %v4091_v56  ;;  %v3245_v1 = vadd.f32 %v3239_v38, %v3205_v2  ;;  %v3307_v43 = vsel %vm1598_vm7, %v6554_v40, %v3294_v17 }
 0x31f   :  { %v3248_v52 = vadd.f32 %v3242_v31, %v3208_v4  ;;  %v3209_v21 = vadd.f32 %v3203_v15, %v3169_v6  ;;  %v3244_v29 = vmul.f32 %v3238_v48, %v6473_v28  ;;  %v3316_v25 = vrot.slane %v3307_v43, %v4083_v53  ;;  %v6619_v31 = vpop.permute.xlu1 %3430 }
 0x320   :  { %v3210_v16 = vadd.f32 %v3204_v35, %v3170_v33  ;;  %v3356_v20 = vrot.slane %v3307_v43, %v4088_v55  ;;  %v3283_v24 = vmul.f32 %v3274_v23, %v6504_v60  ;;  %v3284_v22 = vmul.f32 %v3278_v10, %v6504_v60 }
 0x321   :  { %v3249_v3 = vadd.f32 %v3243_v9, %v3209_v21  ;;  %v3396_v38 = vrot.slane %v3307_v43, %v4073_v50  ;;  %v3288_v2 = vadd.f32 %v3282_v57, %v3248_v52  ;;  %v3285_v18 = vadd.f32 %v3279_v61, %v3245_v1  ;;  %v3300_v34 = vpop.permute.xlu0 %3299 }
 0x322   :  { %v3250_v51 = vadd.f32 %v3244_v29, %v3210_v16  ;;  %v3337_v41 = vmul.f32 %v3316_v25, %v6528_v19  ;;  %v3377_v54 = vmul.f32 %v3356_v20, %v6552_v59  ;;  %v3436_v28 = vrot.slane %v3307_v43, %v4091_v56 }
 0x323   :  { %v3246_v30 = vadd.f32 %v3240_v36, %v3206_v62  ;;  %v3306_v8 = vsel %vm1598_vm7, %v3294_v17, %v3296_v37  ;;  %v6613_v32 = vadd.f32 %v3283_v24, %v3249_v3  ;;  %v3417_v39 = vmul.f32 %v3396_v38, %v6600_v63  ;;  %v3302_v52 = vpop.permute.xlu1 %3301 }
 0x324   :  { %v3343_v26 = vadd.f32 %v3337_v41, %v3285_v18  ;;  %v3320_v60 = vrot.slane %v3306_v8, %v4083_v53  ;;  %v3360_v13 = vrot.slane %v3306_v8, %v4088_v55  ;;  %v3290_v0 = vadd.f32 %v3284_v22, %v3250_v51 }
 0x325   :  { %v3286_v46 = vadd.f32 %v3280_v44, %v3246_v30  ;;  %v3400_v61 = vrot.slane %v3306_v8, %v4073_v50  ;;  %v3440_v17 = vrot.slane %v3306_v8, %v4091_v56  ;;  %v3305_v7 = vsel %vm1598_vm7, %v3296_v37, %v3298_v58 }
 0x326   :  { %v3383_v36 = vadd.f32 %v3377_v54, %v3343_v26  ;;  %v3338_v62 = vmul.f32 %v3320_v60, %v6528_v19  ;;  %v3378_v27 = vmul.f32 %v3360_v13, %v6552_v59  ;;  %v3287_v14 = vadd.f32 %v3281_v5, %v3247_v45 }
 0x327   :  { %v3324_v44 = vrot.slane %v3305_v7, %v4083_v53  ;;  %v3364_v12 = vrot.slane %v3305_v7, %v4088_v55  ;;  %v3418_v42 = vmul.f32 %v3400_v61, %v6600_v63  ;;  %v3404_v57 = vrot.slane %v3305_v7, %v4073_v50 }
 0x328   :  { %v3344_v49 = vadd.f32 %v3338_v62, %v3286_v46  ;;  %v3304_v11 = vsel %vm1598_vm7, %v3298_v58, %v3300_v34  ;;  %v3423_v48 = vadd.f32 %v3417_v39, %v3383_v36  ;;  %v3444_v37 = vrot.slane %v3305_v7, %v4091_v56  ;;  %v7084_v62 = vld [vmem:[#allocation43_spill] sm:$0xff] }
 0x329   :  { %v3339_v4 = vmul.f32 %v3324_v44, %v6528_v19  ;;  %v3328_v6 = vrot.slane %v3304_v11, %v4083_v53  ;;  %v3379_v45 = vmul.f32 %v3364_v12, %v6552_v59  ;;  %v3368_v15 = vrot.slane %v3304_v11, %v4088_v55 }
 0x32a   :  { %v3384_v5 = vadd.f32 %v3378_v27, %v3344_v49  ;;  %v3408_v23 = vrot.slane %v3304_v11, %v4073_v50  ;;  %v3457_v9 = vmul.f32 %v3436_v28, %v6619_v31  ;;  %v3458_v10 = vmul.f32 %v3440_v17, %v6619_v31  ;;  %v7085_v17 = vld [vmem:[#allocation44_spill] sm:$0xff]  ;;  %v7086_v27 = vld [vmem:[#allocation37_spill] sm:$0xff] }
 0x32b   :  { %v3345_v33 = vadd.f32 %v3339_v4, %v3287_v14  ;;  %v3340_v35 = vmul.f32 %v3328_v6, %v6528_v19  ;;  %v3419_v1 = vmul.f32 %v3404_v57, %v6600_v63  ;;  %v3380_v43 = vmul.f32 %v3368_v15, %v6552_v59 }
 0x32c   :  { %v3424_v21 = vadd.f32 %v3418_v42, %v3384_v5  ;;  %v3448_v58 = vrot.slane %v3304_v11, %v4091_v56  ;;  %v3420_v25 = vmul.f32 %v3408_v23, %v6600_v63  ;;  %v3459_v20 = vmul.f32 %v3444_v37, %v6619_v31 }
 0x32d   :  { %v3385_v16 = vadd.f32 %v3379_v45, %v3345_v33  ;;  %v3346_v29 = vadd.f32 %v3340_v35, %v3288_v2  ;;  %v6646_v3 = vadd.f32 %v3457_v9, %v3423_v48  ;;  %v3303_v22 = vsel %vm1598_vm7, %v3300_v34, %v3302_v52 }
 0x32e   :  { %v6648_v24 = vadd.f32 %v3458_v10, %v3424_v21  ;;  %v3308_v38 = vsel %vm1598_vm7, %v3302_v52, %v6554_v40  ;;  %v3332_v41 = vrot.slane %v3303_v22, %v4083_v53  ;;  %v3372_v54 = vrot.slane %v3303_v22, %v4088_v55  ;;  %v7088_v10 = vld [vmem:[#allocation41_spill] sm:$0xff]  ;;  %v7089_v21 = vld [vmem:[#allocation42_spill] sm:$0xff] }
 0x32f   :  { %v3425_v51 = vadd.f32 %v3419_v1, %v3385_v16  ;;  %v3386_v18 = vadd.f32 %v3380_v43, %v3346_v29  ;;  %v3336_v2 = vrot.slane %v3308_v38, %v4083_v53  ;;  %v3376_v28 = vrot.slane %v3308_v38, %v4088_v55 }
 0x330   :  { %v3412_v30 = vrot.slane %v3303_v22, %v4073_v50  ;;  %v3416_v8 = vrot.slane %v3308_v38, %v4073_v50  ;;  %v3341_v47 = vmul.f32 %v3332_v41, %v6528_v19  ;;  %v3460_v13 = vmul.f32 %v3448_v58, %v6619_v31 }
 0x331   :  { %v3426_v26 = vadd.f32 %v3420_v25, %v3386_v18  ;;  %v6661_v60 = vadd.f32 %v3459_v20, %v3425_v51  ;;  %v3342_v40 = vmul.f32 %v3336_v2, %v6528_v19  ;;  %v3381_v46 = vmul.f32 %v3372_v54, %v6552_v59 }
 0x332   :  { %v3382_v53 = vmul.f32 %v3376_v28, %v6552_v59  ;;  %v3421_v61 = vmul.f32 %v3412_v30, %v6600_v63  ;;  %v3347_v55 = vadd.f32 %v3341_v47, %v6613_v32  ;;  %v3452_v50 = vrot.slane %v3303_v22, %v4091_v56  ;;  %v3525_v47 = vld [vmem:[%s6736_s6] sm:$0xf]  ;;  %s3820_s6 = smov [#allocation5]  }
 0x333   :  { %v3348_v39 = vadd.f32 %v3342_v40, %v3290_v0  ;;  %v3456_v34 = vrot.slane %v3308_v38, %v4091_v56  ;;  %v6672_v36 = vadd.f32 %v3460_v13, %v3426_v26  ;;  %v3469_v19 = vmul.f32 %v6646_v3, %v7084_v62  ;;  %v7087_v56 = vld [vmem:[#allocation38_spill] sm:$0xff] }
 0x334   :  { %v3470_v7 = vmul.f32 %v6648_v24, %v7085_v17  ;;  %v3471_v59 = vmul.f32 %v6661_v60, %v7086_v27  ;;  %v3387_v14 = vadd.f32 %v3381_v46, %v3347_v55  ;;  %v3422_v32 = vmul.f32 %v3416_v8, %v6600_v63  ;;  %v3537_v26 = vld [vmem:[%s6737_s7] sm:$0xf]  ;;  %s3588_s7 = sshll.u32 %s3820_s6, 4  ;;  %s3589_s7 = int_to_ptr.vmem [resolvable:$true] %s3588_s7 }
 0x335   :  { %v3388_v44 = vadd.f32 %v3382_v53, %v3348_v39  ;;  %v3461_v0 = vmul.f32 %v3452_v50, %v6619_v31  ;;  %v3462_v12 = vmul.f32 %v3456_v34, %v6619_v31  ;;  %v3472_v49 = vmul.f32 %v6672_v36, %v7087_v56  ;;  %s3749_s11 = scalar_lea.vmem %s3589_s7, 384  ;;  %p3754_p9 = scmp.lt.s32.totalorder %s3589_s7, %s3589_s7 }
 0x336   :  { %v3475_v42 = vsel %vm1802_vm8, %v3469_v19, 0.0  ;;  %v3476_v57 = vsel %vm1802_vm8, %v3470_v7, 0.0  ;;  %v3427_v11 = vadd.f32 %v3421_v61, %v3387_v14  ;;  %v3478_v4 = vsel %vm1802_vm8, %v3471_v59, 0.0  ;;  %p3750_p8 = scmp.ne.s32.totalorder %s3589_s7, %s3749_s11  ;;  %p3755_p10 = scmp.lt.s32.totalorder %s3749_s11, %s3749_s11 }
 0x337   :  { %v3428_v48 = vadd.f32 %v3422_v32, %v3388_v44  ;;  %v3488_v37 = vmul.f32 %v3469_v19, %v3469_v19  ;;  %v3477_v6 = vadd.f32 %v3476_v57, %v3475_v42  ;;  %v3480_v5 = vsel %vm1802_vm8, %v3472_v49, 0.0 }
 0x338   :  { %v3489_v63 = vmul.f32 %v3470_v7, %v3470_v7  ;;  %v3490_v45 = vmul.f32 %v3471_v59, %v3471_v59  ;;  %v3467_v15 = vadd.f32 %v3461_v0, %v3427_v11  ;;  %v3491_v31 = vmul.f32 %v3472_v49, %v3472_v49  ;;  %p3756_p11 = por %p3755_p10, %p3754_p9 }
 0x339   :  { %v3468_v23 = vadd.f32 %v3462_v12, %v3428_v48  ;;  %v3494_v33 = vsel %vm1802_vm8, %v3488_v37, 0.0  ;;  %v3479_v35 = vadd.f32 %v3478_v4, %v3477_v6 }
 0x33a   :  { %v3495_v9 = vsel %vm1802_vm8, %v3489_v63, 0.0  ;;  %v3473_v52 = vmul.f32 %v3467_v15, %v7088_v10  ;;  %v3497_v43 = vsel %vm1802_vm8, %v3490_v45, 0.0  ;;  %v3499_v20 = vsel %vm1802_vm8, %v3491_v31, 0.0  ;;  %p3757_p12 = pnand %p3756_p11, %p3750_p8 }
 0x33b   :  { %v3474_v1 = vmul.f32 %v3468_v23, %v7089_v21  ;;  %v3481_v58 = vadd.f32 %v3480_v5, %v3479_v35  ;;  %v3496_v16 = vadd.f32 %v3495_v9, %v3494_v33 }
 0x33c   :  { %v3482_v29 = vsel %vm1802_vm8, %v3473_v52, 0.0  ;;  %v3492_v25 = vmul.f32 %v3473_v52, %v3473_v52 }
 0x33d   :  { %v3483_v22 = vadd.f32 %v3482_v29, %v3481_v58  ;;  %v3498_v38 = vadd.f32 %v3497_v43, %v3496_v16  ;;  %v3484_v51 = vsel %vm1802_vm8, %v3474_v1, 0.0  ;;  %v3493_v18 = vmul.f32 %v3474_v1, %v3474_v1  ;;  %v3724_v43 = vld [vmem:[#allocation2] sm:$0xff] }
 0x33e   :  { %v3501_v41 = vsel %vm1802_vm8, %v3492_v25, 0.0  ;;  %v7090_v16 = vld [vmem:[#allocation10_spill] sm:$0xff]  ;;  %v3725_v25 = vld [vmem:[#allocation2 + $0x8] sm:$0xff] }
 0x33f   :  { %v3485_v2 = vadd.f32 %v3484_v51, %v3483_v22  ;;  %v3500_v54 = vadd.f32 %v3499_v20, %v3498_v38  ;;  %v3503_v30 = vsel %vm1802_vm8, %v3493_v18, 0.0  ;;  %v7091_v22 = vld [vmem:[#allocation8_spill] sm:$0xff]  ;;  %v7092_v18 = vld [vmem:[#allocation9_spill] sm:$0xff] }
 0x340   :  { %v3726_v51 = vld [vmem:[#allocation2 + $0x10] sm:$0xff] }
 0x341   :  { %3486 = vadd.xlane.f32.xlu0 %v3485_v2  ;;  %v3502_v28 = vadd.f32 %v3501_v41, %v3500_v54 }
 0x343   :  { %v3504_v8 = vadd.f32 %v3503_v30, %v3502_v28 }
 0x345   :  { %3505 = vadd.xlane.f32.xlu1 %v3504_v8 }
 0x356   :  { %3540 = vperm.xlu1 %3716, %v3537_v26  }
 0x357   :  { %3528 = vperm.xlu0 %3701, %v3525_v47  }
 0x3ce   :  { %v3487_v40 = vpop.xlane.xlu0 %3486 }
 0x3cf   :  { %v3507_v13 = vmul.f32 0.001953125, %v3487_v40 }
 0x3d1   :  { %v3509_v46 = vmul.f32 %v3507_v13, %v3507_v13  ;;  %v3513_v50 = vsub.f32 %v6646_v3, %v3507_v13  ;;  %v3514_v34 = vsub.f32 %v6648_v24, %v3507_v13  ;;  %v3515_v19 = vsub.f32 %v6661_v60, %v3507_v13 }
 0x3d2   :  { %v3506_v53 = vpop.xlane.xlu1 %3505  ;;  %v3516_v7 = vsub.f32 %v6672_v36, %v3507_v13  ;;  %v3517_v14 = vsub.f32 %v3467_v15, %v3507_v13  ;;  %v3518_v44 = vsub.f32 %v3468_v23, %v3507_v13 }
 0x3d3   :  { %v3508_v61 = vmul.f32 0.001953125, %v3506_v53 }
 0x3d5   :  { %v3510_v55 = vsub.f32 %v3508_v61, %v3509_v46 }
 0x3d6   :  { %v3529_v11 = vpop.permute.xlu0 %3528  ;;  %v3541_v48 = vpop.permute.xlu1 %3540 }
 0x3d7   :  { %v3511_v39 = vadd.f32 1e-05, %v3510_v55 }
 0x3d9   :  { %3722 = vrsqrt.f32 %v3511_v39 }
 0x3e3   :  { %v3723_v59 = vpop.eup %3722 }
 0x3e4   :  { %v3519_v32 = vmul.f32 %v3723_v59, %v3513_v50  ;;  %v3520_v0 = vmul.f32 %v3723_v59, %v3514_v34  ;;  %v3521_v12 = vmul.f32 %v3723_v59, %v3515_v19  ;;  %v3522_v49 = vmul.f32 %v3723_v59, %v3516_v7 }
 0x3e5   :  { %v3523_v42 = vmul.f32 %v3723_v59, %v3517_v14  ;;  %v3524_v57 = vmul.f32 %v3723_v59, %v3518_v44 }
 0x3e6   :  { %v3531_v4 = vmul.f32 %v3529_v11, %v3519_v32  ;;  %v3532_v37 = vmul.f32 %v3529_v11, %v3520_v0  ;;  %v3533_v3 = vmul.f32 %v3529_v11, %v3521_v12  ;;  %v3534_v6 = vmul.f32 %v3529_v11, %v3522_v49 }
 0x3e7   :  { %v3535_v24 = vmul.f32 %v3529_v11, %v3523_v42  ;;  %v3536_v5 = vmul.f32 %v3529_v11, %v3524_v57 }
 0x3e8   :  { %v3543_v60 = vadd.f32 %v3541_v48, %v3531_v4  ;;  %v3544_v63 = vadd.f32 %v3541_v48, %v3532_v37  ;;  %v3545_v36 = vadd.f32 %v3541_v48, %v3533_v3  ;;  %v3546_v45 = vadd.f32 %v3541_v48, %v3534_v6 }
 0x3e9   :  { %v3547_v15 = vadd.f32 %v3541_v48, %v3535_v24  ;;  %v3548_v23 = vadd.f32 %v3541_v48, %v3536_v5 }
 0x3ea   :  { %v3549_v31 = vmul.f32 %v3543_v60, %v7084_v62  ;;  %v3550_v33 = vmul.f32 %v3544_v63, %v7085_v17  ;;  %v3551_v35 = vmul.f32 %v3545_v36, %v7086_v27  ;;  %v3552_v9 = vmul.f32 %v3546_v45, %v7087_v56 }
 0x3eb   :  { %v3553_v52 = vmul.f32 %v3547_v15, %v7088_v10  ;;  %v3554_v1 = vmul.f32 %v3548_v23, %v7089_v21 }
 0x3ec   :  { %v3555_v58 = vadd.f32 %v3724_v43, %v3549_v31  ;;  %v3556_v29 = vadd.f32 %v3550_v33, %v7090_v16  ;;  %v3557_v20 = vadd.f32 %v3725_v25, %v3551_v35  ;;  %v3558_v38 = vadd.f32 %v3552_v9, %v7091_v22 }
 0x3ed   :  { %v3559_v62 = vadd.f32 %v3726_v51, %v3553_v52  ;;  %v3560_v17 = vadd.f32 %v3554_v1, %v7092_v18 }
 0x3ee   :  { %v3561_v41 = vmax.f32 %v3555_v58, 0.0  ;;  %v3562_v27 = vmax.f32 %v3556_v29, 0.0  ;;  %v3563_v2 = vmax.f32 %v3557_v20, 0.0  ;;  %v3564_v56 = vmax.f32 %v3558_v38, 0.0 }
 0x3ef   :  { %v3565_v10 = vmax.f32 %v3559_v62, 0.0  ;;  %v3566_v21 = vmax.f32 %v3560_v17, 0.0 }
 0x3f0   :  { %v3573_v54 = vcombine.low %v3561_v41, %v3562_v27  ;;  %v3574_v28 = vcombine.low %v3563_v2, %v3564_v56 }
 0x3f1   :  { %v3575_v30 = vcombine.low %v3565_v10, %v3566_v21 }
 0x3f2   :  { %3579 = vst [vmem:[#allocation5] sm:$0xff] %v3573_v54  ;;  %3580 = vst [vmem:[#allocation5 + $0x8] sm:$0xff] %v3574_v28 }
 0x3f3   :  { %3581 = vst [vmem:[#allocation5 + $0x10] sm:$0xff] %v3575_v30 }
 0x3f4   :  { %3760 = shalt.err (!%p3757_p12)
}
 0x3f5   :  { %s3761_s14 = scalar_lea.hbm %s6738_s8, 384 }
 0x3f6   :  { %p3762_p13 = scmp.ne.s32.totalorder %s6738_s8, %s3761_s14  ;;  %p3765_p0 = scmp.lt.u32.totalorder %s3761_s14, %s6738_s8 }
 0x3f8   :  { %p3767_p1 = pnand %p3765_p0, %p3762_p13 }
 0x3fa   :  { %3770 = shalt.err (!%p3767_p1)
}
 0x3fb   :  { %3591 = dma.vmem_to_hbm [thread:$0]  %s3589_s7, 384, %s6738_s8, [#allocation4]  }
 0x3fc   :  { %3773 = dma.done.wait [#allocation4], 384  }
 0x3fd   :  { %3774 = vsyncadd [#allocation4], 4294966912 }
 0x3fe   :  { %3595 = vsyncpa [#allocation3], 1 }
 0x3ff   :  { %3596 = vsyncpa [#allocation4], 1 }

</bundles_post_ra>
